<compile_context>
chip_gen: v7x
topology: tpu7x:2x2x1
jax: 0.10.0
libtpu: 0.0.40
codegen_flags: <defaults>
</compile_context>

<pallas_src>
import math

import jax
import jax.numpy as jnp
from jax.experimental import pallas as pl
from jax.experimental.pallas import tpu as pltpu

# ---------------- model hyper-parameters (small, shape-consistent) -----------
INPUT_CHANNEL = 64    # n_unit
N_HIDDEN      = 32    # cond / hidden dim
OUT_DIMS      = 16    # mel channels
N_SPK         = 4
WN_CHANS      = 32    # wavenet residual channels
WN_LAYERS     = 2
SPEC_MIN      = -12.0
SPEC_MAX      = 2.0


# ------------------------------ fused kernel ---------------------------------
def _make_fused_kernel(T, L, S, dt):
    """Build the fused (cond-embed + Euler loop + denorm) kernel body."""
    inv_sqrt2 = 1.0 / math.sqrt(2.0)
    inv_sqrt_layers = 1.0 / math.sqrt(L)

    def kernel(units_ref, f0_ref, vol_ref, extra_ref, x0_ref, d_ref,
               wu_ref, bcond_ref, wf_ref, wv_ref,
               winp_ref, binp_ref,
               wd_ref, bd_ref,
               wdg_ref, bdg_ref, wdf_ref, bdf_ref,
               wcg_ref, bcg_ref, wcf_ref, bcf_ref,
               wres_ref, bres_ref, wskp_ref, bskp_ref,
               wskip_ref, bskip_ref, wout_ref, bout_ref,
               out_ref):
        BT = units_ref.shape[0]
        Cw = winp_ref.shape[1]

        # ---- conditioning embedding (computed once per call) ----------------
        c = jnp.dot(units_ref[...], wu_ref[...],
                    preferred_element_type=jnp.float32)                # [BT, H]
        c = c + jnp.log(1.0 + f0_ref[...] / 700.0) * wf_ref[...]       # f0_embed
        c = c + vol_ref[...] * wv_ref[...]                             # volume_embed
        c = c + bcond_ref[...] + extra_ref[...]                        # biases + spk + aug

        # ---- per-layer conditioner projections: invariant across Euler steps
        cond_g = [jnp.dot(c, wcg_ref[l], preferred_element_type=jnp.float32)
                  + bcg_ref[l] for l in range(L)]
        cond_f = [jnp.dot(c, wcf_ref[l], preferred_element_type=jnp.float32)
                  + bcf_ref[l] for l in range(L)]

        # ---- sequence-boundary masks for the folded [B*T] sublane axis ------
        row = jax.lax.broadcasted_iota(jnp.int32, (BT, 1), 0)
        prev_ok = (row % T != 0).astype(jnp.float32)        # zero pad at t == 0
        next_ok = (row % T != (T - 1)).astype(jnp.float32)  # zero pad at t == T-1

        def euler_step(s, x):
            d = d_ref[pl.ds(s, 1), :]                                  # [1, Cw]
            h = jax.nn.relu(
                jnp.dot(x, winp_ref[...], preferred_element_type=jnp.float32)
                + binp_ref[...])                                       # [BT, Cw]
            skip_acc = jnp.zeros((BT, Cw), jnp.float32)
            for l in range(L):                         # static, small L
                dproj = jnp.dot(d, wd_ref[l],
                                preferred_element_type=jnp.float32) + bd_ref[l]
                y = h + dproj                                          # [BT, Cw]
                # 3-tap conv along T: shifted copies via XLU roll + boundary
                # masks, fused into one K=3*Cw matmul per gate/filter half.
                y_prev = pltpu.roll(y, 1, axis=0) * prev_ok            # y[t-1]
                y_next = pltpu.roll(y, BT - 1, axis=0) * next_ok       # y[t+1]
                yf = jnp.concatenate([y_prev, y, y_next], axis=1)      # [BT, 3Cw]
                gate = (jnp.dot(yf, wdg_ref[l],
                                preferred_element_type=jnp.float32)
                        + bdg_ref[l] + cond_g[l])
                filt = (jnp.dot(yf, wdf_ref[l],
                                preferred_element_type=jnp.float32)
                        + bdf_ref[l] + cond_f[l])
                # torch.chunk order: gate = sigmoid(first half), filter = tanh
                z = jax.nn.sigmoid(gate) * jnp.tanh(filt)              # [BT, Cw]
                res = jnp.dot(z, wres_ref[l],
                              preferred_element_type=jnp.float32) + bres_ref[l]
                skip = jnp.dot(z, wskp_ref[l],
                               preferred_element_type=jnp.float32) + bskp_ref[l]
                h = (h + res) * inv_sqrt2
                skip_acc = skip_acc + skip
            sk = jax.nn.relu(
                jnp.dot(skip_acc * inv_sqrt_layers, wskip_ref[...],
                        preferred_element_type=jnp.float32) + bskip_ref[...])
            v = jnp.dot(sk, wout_ref[...],
                        preferred_element_type=jnp.float32) + bout_ref[...]
            return x + v * dt                                          # Euler update

        x_final = jax.lax.fori_loop(0, S, euler_step, x0_ref[...], unroll=True)
        # RectifiedFlow.denorm_spec
        out_ref[...] = (x_final + 1.0) * (0.5 * (SPEC_MAX - SPEC_MIN)) + SPEC_MIN

    return kernel


# ------------- sinusoidal flow-time embedding + Mish MLP (glue, t-only) ------
def diffusion_step_embed(t_vals, p):
    """[S] -> [S, Cw]; depends only on t so it is precomputed for all steps."""
    Cw = p['mlp_w1'].shape[0]
    half = Cw // 2
    emb = math.log(10000.0) / (half - 1)
    freqs = jnp.exp(jnp.arange(half, dtype=jnp.float32) * -emb)
    e = t_vals[:, None] * freqs[None, :]
    e = jnp.concatenate([jnp.sin(e), jnp.cos(e)], axis=-1)              # [S, Cw]
    h = e @ p['mlp_w1'] + p['mlp_b1']
    h = h * jnp.tanh(jax.nn.softplus(h))                                # Mish
    return h @ p['mlp_w2'] + p['mlp_b2']                                # [S, Cw]


# ------------------------------- full forward --------------------------------
def unit2mel_v2_reflow_forward(params, units, f0, volume, spk_id, aug_shift,
                               noise_key, infer_step=4, t_start=0.0):
    """Inference path: infer=True, gt_spec=None, method='euler'."""
    B, T, C = units.shape
    H = params['unit_w'].shape[1]
    M = params['wn_final_w'].shape[1]
    Cw = params['wn_inp_w'].shape[1]
    L = params['wn_diff_w'].shape[0]
    S = int(infer_step)
    BT = B * T

    # speaker + pitch-aug per-row bias (n_spk>1 / use_pitch_aug branches);
    # tiny gather + [B,1]x[1,H] matmul, done once outside the kernel.
    spk_vec = params['spk_embed'][spk_id[:, 0] - 1]                     # [B, H]
    extra = spk_vec + (aug_shift[:, 0, :] / 5.0) @ params['aug_w']      # [B, H]
    extra_bt = jnp.broadcast_to(extra[:, None, :], (B, T, H)).reshape(BT, H)
    b_cond = params['unit_b'] + params['f0_b'] + params['vol_b']        # [1, H]

    # Euler schedule + diffusion-step embeddings for ALL steps (t-only).
    dt = (1.0 - float(t_start)) / S
    t_vals = float(t_start) + dt * jnp.arange(S, dtype=jnp.float32)
    d_all = diffusion_step_embed(1000.0 * t_vals, params)               # [S, Cw]

    # x ~ N(0, I)  (RectifiedFlow infer init with gt_spec=None)
    x0 = jax.random.normal(noise_key, (BT, M), dtype=jnp.float32)

    kernel = _make_fused_kernel(T=T, L=L, S=S, dt=dt)
    mel2d = pl.pallas_call(
        kernel,
        out_shape=jax.ShapeDtypeStruct((BT, M), jnp.float32),
        # no grid / specs: whole (tiny) working set lives in VMEM for the call
    )(units.reshape(BT, C), f0.reshape(BT, 1), volume.reshape(BT, 1),
      extra_bt, x0, d_all,
      params['unit_w'], b_cond, params['f0_w'], params['vol_w'],
      params['wn_inp_w'], params['wn_inp_b'],
      params['wn_diff_w'], params['wn_diff_b'],
      params['wn_dil_g_w'], params['wn_dil_g_b'],
      params['wn_dil_f_w'], params['wn_dil_f_b'],
      params['wn_cond_g_w'], params['wn_cond_g_b'],
      params['wn_cond_f_w'], params['wn_cond_f_b'],
      params['wn_res_w'], params['wn_res_b'],
      params['wn_skp_w'], params['wn_skp_b'],
      params['wn_skip_w'], params['wn_skip_b'],
      params['wn_final_w'], params['wn_final_b'])

    return mel2d.reshape(B, T, M)   # already de-normalised inside the kernel


# ------------------------------ parameter init -------------------------------
def _w(key, shape, scale=None):
    fan_in = shape[-2] if len(shape) >= 2 else 1
    s = scale if scale is not None else 1.0 / math.sqrt(max(fan_in, 1))
    return (s * jax.random.normal(key, shape)).astype(jnp.float32)


def init_params(key):
    ks = iter(jax.random.split(key, 64))
    C, H, M, Cw, L = INPUT_CHANNEL, N_HIDDEN, OUT_DIMS, WN_CHANS, WN_LAYERS
    p = {}
    # Unit2MelV2 embeddings
    p['unit_w'] = _w(next(ks), (C, H));   p['unit_b'] = _w(next(ks), (1, H), 0.02)
    p['f0_w']   = _w(next(ks), (1, H));   p['f0_b']   = _w(next(ks), (1, H), 0.02)
    p['vol_w']  = _w(next(ks), (1, H));   p['vol_b']  = _w(next(ks), (1, H), 0.02)
    p['aug_w']  = _w(next(ks), (1, H))                    # bias=False in reference
    p['spk_embed'] = _w(next(ks), (N_SPK, H), 0.1)
    # diffusion-step embedding MLP (sinusoid -> Linear -> Mish -> Linear)
    p['mlp_w1'] = _w(next(ks), (Cw, 4 * Cw)); p['mlp_b1'] = _w(next(ks), (4 * Cw,), 0.02)
    p['mlp_w2'] = _w(next(ks), (4 * Cw, Cw)); p['mlp_b2'] = _w(next(ks), (Cw,), 0.02)
    # WaveNet velocity_fn
    p['wn_inp_w']  = _w(next(ks), (M, Cw));        p['wn_inp_b']  = _w(next(ks), (1, Cw), 0.02)
    p['wn_diff_w'] = _w(next(ks), (L, Cw, Cw));    p['wn_diff_b'] = _w(next(ks), (L, 1, Cw), 0.02)
    # dilated conv (kernel=3): taps stacked along rows [y[t-1]; y[t]; y[t+1]];
    # gate / filter halves stored as separate weights (no lane-offset slicing).
    p['wn_dil_g_w'] = _w(next(ks), (L, 3 * Cw, Cw)); p['wn_dil_g_b'] = _w(next(ks), (L, 1, Cw), 0.02)
    p['wn_dil_f_w'] = _w(next(ks), (L, 3 * Cw, Cw)); p['wn_dil_f_b'] = _w(next(ks), (L, 1, Cw), 0.02)
    p['wn_cond_g_w'] = _w(next(ks), (L, H, Cw));     p['wn_cond_g_b'] = _w(next(ks), (L, 1, Cw), 0.02)
    p['wn_cond_f_w'] = _w(next(ks), (L, H, Cw));     p['wn_cond_f_b'] = _w(next(ks), (L, 1, Cw), 0.02)
    # output projection, residual / skip halves pre-split
    p['wn_res_w'] = _w(next(ks), (L, Cw, Cw));  p['wn_res_b'] = _w(next(ks), (L, 1, Cw), 0.02)
    p['wn_skp_w'] = _w(next(ks), (L, Cw, Cw));  p['wn_skp_b'] = _w(next(ks), (L, 1, Cw), 0.02)
    p['wn_skip_w'] = _w(next(ks), (Cw, Cw));    p['wn_skip_b'] = _w(next(ks), (1, Cw), 0.02)
    # NOTE: the real module zero-inits the final projection; use small non-zero
    # weights so the kernel exercises real compute.
    p['wn_final_w'] = _w(next(ks), (Cw, M), 0.05)
    p['wn_final_b'] = _w(next(ks), (1, M), 0.02)
    return p


if __name__ == "__main__":
    key = jax.random.PRNGKey(0)
    kp, ku, kf, kv, ka, ksid, kn = jax.random.split(key, 7)
    params = init_params(kp)

    B, T = 2, 8
    units     = jax.random.normal(ku, (B, T, INPUT_CHANNEL), dtype=jnp.float32)
    f0        = 100.0 + 300.0 * jax.random.uniform(kf, (B, T, 1), dtype=jnp.float32)
    volume    = jax.random.uniform(kv, (B, T, 1), dtype=jnp.float32)
    aug_shift = jax.random.uniform(ka, (B, 1, 1), minval=-5.0, maxval=5.0,
                                   dtype=jnp.float32)
    spk_id    = jax.random.randint(ksid, (B, 1), 1, N_SPK + 1)   # 1-based ids

    fwd = jax.jit(unit2mel_v2_reflow_forward,
                  static_argnames=("infer_step", "t_start"))
    mel = fwd(params, units, f0, volume, spk_id, aug_shift, kn, infer_step=4)
    jax.block_until_ready(mel)
    assert mel.shape == (B, T, OUT_DIMS) and mel.dtype == jnp.float32
    assert bool(jnp.all(jnp.isfinite(mel)))
    print("KERNEL_OK")
</pallas_src>

<mosaic_0001>
module attributes {stable_mosaic.version = 11 : i64} {
  func.func @kernel(%arg0: memref<16x64xf32, #tpu.memory_space<vmem>>, %arg1: memref<16x1xf32, #tpu.memory_space<vmem>>, %arg2: memref<16x1xf32, #tpu.memory_space<vmem>>, %arg3: memref<16x32xf32, #tpu.memory_space<vmem>>, %arg4: memref<16x16xf32, #tpu.memory_space<vmem>>, %arg5: memref<4x32xf32, #tpu.memory_space<vmem>>, %arg6: memref<64x32xf32, #tpu.memory_space<vmem>>, %arg7: memref<1x32xf32, #tpu.memory_space<vmem>>, %arg8: memref<1x32xf32, #tpu.memory_space<vmem>>, %arg9: memref<1x32xf32, #tpu.memory_space<vmem>>, %arg10: memref<16x32xf32, #tpu.memory_space<vmem>>, %arg11: memref<1x32xf32, #tpu.memory_space<vmem>>, %arg12: memref<2x32x32xf32, #tpu.memory_space<vmem>>, %arg13: memref<2x1x32xf32, #tpu.memory_space<vmem>>, %arg14: memref<2x96x32xf32, #tpu.memory_space<vmem>>, %arg15: memref<2x1x32xf32, #tpu.memory_space<vmem>>, %arg16: memref<2x96x32xf32, #tpu.memory_space<vmem>>, %arg17: memref<2x1x32xf32, #tpu.memory_space<vmem>>, %arg18: memref<2x32x32xf32, #tpu.memory_space<vmem>>, %arg19: memref<2x1x32xf32, #tpu.memory_space<vmem>>, %arg20: memref<2x32x32xf32, #tpu.memory_space<vmem>>, %arg21: memref<2x1x32xf32, #tpu.memory_space<vmem>>, %arg22: memref<2x32x32xf32, #tpu.memory_space<vmem>>, %arg23: memref<2x1x32xf32, #tpu.memory_space<vmem>>, %arg24: memref<2x32x32xf32, #tpu.memory_space<vmem>>, %arg25: memref<2x1x32xf32, #tpu.memory_space<vmem>>, %arg26: memref<32x32xf32, #tpu.memory_space<vmem>>, %arg27: memref<1x32xf32, #tpu.memory_space<vmem>>, %arg28: memref<32x16xf32, #tpu.memory_space<vmem>>, %arg29: memref<1x16xf32, #tpu.memory_space<vmem>>, %arg30: memref<16x16xf32, #tpu.memory_space<vmem>>) attributes {dimension_semantics = [], scalar_prefetch = 0 : i64, scratch_operands = 0 : i64, tpu.core_type = #tpu.core_type<tc>} {
    %c0 = arith.constant 0 : index
    %c0_0 = arith.constant 0 : index
    %0 = vector.load %arg0[%c0, %c0_0] : memref<16x64xf32, #tpu.memory_space<vmem>>, vector<16x64xf32>
    %c0_1 = arith.constant 0 : index
    %c0_2 = arith.constant 0 : index
    %1 = vector.load %arg6[%c0_1, %c0_2] : memref<64x32xf32, #tpu.memory_space<vmem>>, vector<64x32xf32>
    %cst = arith.constant dense<0.000000e+00> : vector<16x32xf32>
    %2 = tpu.matmul %0, %1, %cst {dimension_numbers = #tpu.dot_dimension_numbers<[1], [0], [0], [1], [0, 0, 1, 1], [], []>} : vector<16x64xf32>, vector<64x32xf32>, vector<16x32xf32> -> vector<16x32xf32>
    %c0_3 = arith.constant 0 : index
    %c0_4 = arith.constant 0 : index
    %3 = vector.load %arg1[%c0_3, %c0_4] : memref<16x1xf32, #tpu.memory_space<vmem>>, vector<16x1xf32>
    %cst_5 = arith.constant 7.000000e+02 : f32
    %4 = vector.broadcast %cst_5 : f32 to vector<16x1xf32>
    %5 = arith.divf %3, %4 : vector<16x1xf32>
    %cst_6 = arith.constant 1.000000e+00 : f32
    %6 = vector.broadcast %cst_6 : f32 to vector<16x1xf32>
    %7 = arith.addf %6, %5 : vector<16x1xf32>
    %8 = math.log %7 : vector<16x1xf32>
    %c0_7 = arith.constant 0 : index
    %c0_8 = arith.constant 0 : index
    %9 = vector.load %arg8[%c0_7, %c0_8] : memref<1x32xf32, #tpu.memory_space<vmem>>, vector<1x32xf32>
    %10 = vector.broadcast %8 : vector<16x1xf32> to vector<16x32xf32>
    %11 = vector.broadcast %9 : vector<1x32xf32> to vector<16x32xf32>
    %12 = arith.mulf %10, %11 : vector<16x32xf32>
    %13 = arith.addf %2, %12 : vector<16x32xf32>
    %c0_9 = arith.constant 0 : index
    %c0_10 = arith.constant 0 : index
    %14 = vector.load %arg2[%c0_9, %c0_10] : memref<16x1xf32, #tpu.memory_space<vmem>>, vector<16x1xf32>
    %c0_11 = arith.constant 0 : index
    %c0_12 = arith.constant 0 : index
    %15 = vector.load %arg9[%c0_11, %c0_12] : memref<1x32xf32, #tpu.memory_space<vmem>>, vector<1x32xf32>
    %16 = vector.broadcast %14 : vector<16x1xf32> to vector<16x32xf32>
    %17 = vector.broadcast %15 : vector<1x32xf32> to vector<16x32xf32>
    %18 = arith.mulf %16, %17 : vector<16x32xf32>
    %19 = arith.addf %13, %18 : vector<16x32xf32>
    %c0_13 = arith.constant 0 : index
    %c0_14 = arith.constant 0 : index
    %20 = vector.load %arg7[%c0_13, %c0_14] : memref<1x32xf32, #tpu.memory_space<vmem>>, vector<1x32xf32>
    %21 = vector.broadcast %20 : vector<1x32xf32> to vector<16x32xf32>
    %22 = arith.addf %19, %21 : vector<16x32xf32>
    %c0_15 = arith.constant 0 : index
    %c0_16 = arith.constant 0 : index
    %23 = vector.load %arg3[%c0_15, %c0_16] : memref<16x32xf32, #tpu.memory_space<vmem>>, vector<16x32xf32>
    %24 = arith.addf %22, %23 : vector<16x32xf32>
    %c0_17 = arith.constant 0 : index
    %c0_18 = arith.constant 0 : index
    %c0_19 = arith.constant 0 : index
    %25 = vector.load %arg18[%c0_17, %c0_18, %c0_19] : memref<2x32x32xf32, #tpu.memory_space<vmem>>, vector<1x32x32xf32>
    %26 = vector.shape_cast %25 : vector<1x32x32xf32> to vector<32x32xf32>
    %cst_20 = arith.constant dense<0.000000e+00> : vector<16x32xf32>
    %27 = tpu.matmul %24, %26, %cst_20 {dimension_numbers = #tpu.dot_dimension_numbers<[1], [0], [0], [1], [0, 0, 1, 1], [], []>} : vector<16x32xf32>, vector<32x32xf32>, vector<16x32xf32> -> vector<16x32xf32>
    %c0_21 = arith.constant 0 : index
    %c0_22 = arith.constant 0 : index
    %c0_23 = arith.constant 0 : index
    %28 = vector.load %arg19[%c0_21, %c0_22, %c0_23] : memref<2x1x32xf32, #tpu.memory_space<vmem>>, vector<1x1x32xf32>
    %29 = vector.shape_cast %28 : vector<1x1x32xf32> to vector<1x32xf32>
    %30 = vector.broadcast %29 : vector<1x32xf32> to vector<16x32xf32>
    %31 = arith.addf %27, %30 : vector<16x32xf32>
    %c1 = arith.constant 1 : index
    %c0_24 = arith.constant 0 : index
    %c0_25 = arith.constant 0 : index
    %32 = vector.load %arg18[%c1, %c0_24, %c0_25] : memref<2x32x32xf32, #tpu.memory_space<vmem>>, vector<1x32x32xf32>
    %33 = vector.shape_cast %32 : vector<1x32x32xf32> to vector<32x32xf32>
    %cst_26 = arith.constant dense<0.000000e+00> : vector<16x32xf32>
    %34 = tpu.matmul %24, %33, %cst_26 {dimension_numbers = #tpu.dot_dimension_numbers<[1], [0], [0], [1], [0, 0, 1, 1], [], []>} : vector<16x32xf32>, vector<32x32xf32>, vector<16x32xf32> -> vector<16x32xf32>
    %c1_27 = arith.constant 1 : index
    %c0_28 = arith.constant 0 : index
    %c0_29 = arith.constant 0 : index
    %35 = vector.load %arg19[%c1_27, %c0_28, %c0_29] : memref<2x1x32xf32, #tpu.memory_space<vmem>>, vector<1x1x32xf32>
    %36 = vector.shape_cast %35 : vector<1x1x32xf32> to vector<1x32xf32>
    %37 = vector.broadcast %36 : vector<1x32xf32> to vector<16x32xf32>
    %38 = arith.addf %34, %37 : vector<16x32xf32>
    %c0_30 = arith.constant 0 : index
    %c0_31 = arith.constant 0 : index
    %c0_32 = arith.constant 0 : index
    %39 = vector.load %arg20[%c0_30, %c0_31, %c0_32] : memref<2x32x32xf32, #tpu.memory_space<vmem>>, vector<1x32x32xf32>
    %40 = vector.shape_cast %39 : vector<1x32x32xf32> to vector<32x32xf32>
    %cst_33 = arith.constant dense<0.000000e+00> : vector<16x32xf32>
    %41 = tpu.matmul %24, %40, %cst_33 {dimension_numbers = #tpu.dot_dimension_numbers<[1], [0], [0], [1], [0, 0, 1, 1], [], []>} : vector<16x32xf32>, vector<32x32xf32>, vector<16x32xf32> -> vector<16x32xf32>
    %c0_34 = arith.constant 0 : index
    %c0_35 = arith.constant 0 : index
    %c0_36 = arith.constant 0 : index
    %42 = vector.load %arg21[%c0_34, %c0_35, %c0_36] : memref<2x1x32xf32, #tpu.memory_space<vmem>>, vector<1x1x32xf32>
    %43 = vector.shape_cast %42 : vector<1x1x32xf32> to vector<1x32xf32>
    %44 = vector.broadcast %43 : vector<1x32xf32> to vector<16x32xf32>
    %45 = arith.addf %41, %44 : vector<16x32xf32>
    %c1_37 = arith.constant 1 : index
    %c0_38 = arith.constant 0 : index
    %c0_39 = arith.constant 0 : index
    %46 = vector.load %arg20[%c1_37, %c0_38, %c0_39] : memref<2x32x32xf32, #tpu.memory_space<vmem>>, vector<1x32x32xf32>
    %47 = vector.shape_cast %46 : vector<1x32x32xf32> to vector<32x32xf32>
    %cst_40 = arith.constant dense<0.000000e+00> : vector<16x32xf32>
    %48 = tpu.matmul %24, %47, %cst_40 {dimension_numbers = #tpu.dot_dimension_numbers<[1], [0], [0], [1], [0, 0, 1, 1], [], []>} : vector<16x32xf32>, vector<32x32xf32>, vector<16x32xf32> -> vector<16x32xf32>
    %c1_41 = arith.constant 1 : index
    %c0_42 = arith.constant 0 : index
    %c0_43 = arith.constant 0 : index
    %49 = vector.load %arg21[%c1_41, %c0_42, %c0_43] : memref<2x1x32xf32, #tpu.memory_space<vmem>>, vector<1x1x32xf32>
    %50 = vector.shape_cast %49 : vector<1x1x32xf32> to vector<1x32xf32>
    %51 = vector.broadcast %50 : vector<1x32xf32> to vector<16x32xf32>
    %52 = arith.addf %48, %51 : vector<16x32xf32>
    %53 = tpu.iota {dimensions = array<i32: 0>} : vector<16x1xi32>
    %c8_i32 = arith.constant 8 : i32
    %c0_i32 = arith.constant 0 : i32
    %54 = arith.cmpi eq, %c8_i32, %c0_i32 : i32
    %c1_i32 = arith.constant 1 : i32
    %55 = arith.select %54, %c1_i32, %c8_i32 : i32
    %56 = vector.broadcast %55 : i32 to vector<16x1xi32>
    %57 = arith.remsi %53, %56 : vector<16x1xi32>
    %c0_i32_44 = arith.constant 0 : i32
    %58 = vector.broadcast %c0_i32_44 : i32 to vector<16x1xi32>
    %59 = arith.cmpi ne, %57, %58 : vector<16x1xi32>
    %c0_i32_45 = arith.constant 0 : i32
    %60 = vector.broadcast %c0_i32_45 : i32 to vector<16x1xi32>
    %61 = arith.cmpi slt, %57, %60 : vector<16x1xi32>
    %c0_i32_46 = arith.constant 0 : i32
    %62 = arith.cmpi slt, %55, %c0_i32_46 : i32
    %63 = vector.broadcast %62 : i1 to vector<16x1xi1>
    %64 = vector.broadcast %63 : vector<16x1xi1> to vector<16x1xi1>
    %65 = arith.xori %61, %64 : vector<16x1xi1>
    %66 = arith.andi %65, %59 : vector<16x1xi1>
    %67 = vector.broadcast %55 : i32 to vector<16x1xi32>
    %68 = arith.addi %57, %67 : vector<16x1xi32>
    %69 = arith.select %66, %68, %57 : vector<16x1xi1>, vector<16x1xi32>
    %c0_i32_47 = arith.constant 0 : i32
    %70 = vector.broadcast %c0_i32_47 : i32 to vector<16x1xi32>
    %71 = arith.cmpi ne, %69, %70 : vector<16x1xi32>
    %72 = arith.extui %71 : vector<16x1xi1> to vector<16x1xi32>
    %73 = arith.sitofp %72 : vector<16x1xi32> to vector<16x1xf32>
    %c8_i32_48 = arith.constant 8 : i32
    %c0_i32_49 = arith.constant 0 : i32
    %74 = arith.cmpi eq, %c8_i32_48, %c0_i32_49 : i32
    %c1_i32_50 = arith.constant 1 : i32
    %75 = arith.select %74, %c1_i32_50, %c8_i32_48 : i32
    %76 = vector.broadcast %75 : i32 to vector<16x1xi32>
    %77 = arith.remsi %53, %76 : vector<16x1xi32>
    %c0_i32_51 = arith.constant 0 : i32
    %78 = vector.broadcast %c0_i32_51 : i32 to vector<16x1xi32>
    %79 = arith.cmpi ne, %77, %78 : vector<16x1xi32>
    %c0_i32_52 = arith.constant 0 : i32
    %80 = vector.broadcast %c0_i32_52 : i32 to vector<16x1xi32>
    %81 = arith.cmpi slt, %77, %80 : vector<16x1xi32>
    %c0_i32_53 = arith.constant 0 : i32
    %82 = arith.cmpi slt, %75, %c0_i32_53 : i32
    %83 = vector.broadcast %82 : i1 to vector<16x1xi1>
    %84 = vector.broadcast %83 : vector<16x1xi1> to vector<16x1xi1>
    %85 = arith.xori %81, %84 : vector<16x1xi1>
    %86 = arith.andi %85, %79 : vector<16x1xi1>
    %87 = vector.broadcast %75 : i32 to vector<16x1xi32>
    %88 = arith.addi %77, %87 : vector<16x1xi32>
    %89 = arith.select %86, %88, %77 : vector<16x1xi1>, vector<16x1xi32>
    %c7_i32 = arith.constant 7 : i32
    %90 = vector.broadcast %c7_i32 : i32 to vector<16x1xi32>
    %91 = arith.cmpi ne, %89, %90 : vector<16x1xi32>
    %92 = arith.extui %91 : vector<16x1xi1> to vector<16x1xi32>
    %93 = arith.sitofp %92 : vector<16x1xi32> to vector<16x1xf32>
    %c0_54 = arith.constant 0 : index
    %c0_55 = arith.constant 0 : index
    %94 = vector.load %arg4[%c0_54, %c0_55] : memref<16x16xf32, #tpu.memory_space<vmem>>, vector<16x16xf32>
    %c0_i32_56 = arith.constant 0 : i32
    %95 = arith.index_cast %c0_i32_56 : i32 to index
    %c0_57 = arith.constant 0 : index
    %96 = vector.load %arg5[%95, %c0_57] : memref<4x32xf32, #tpu.memory_space<vmem>>, vector<1x32xf32>
    %c0_58 = arith.constant 0 : index
    %c0_59 = arith.constant 0 : index
    %97 = vector.load %arg10[%c0_58, %c0_59] : memref<16x32xf32, #tpu.memory_space<vmem>>, vector<16x32xf32>
    %cst_60 = arith.constant dense<0.000000e+00> : vector<16x32xf32>
    %98 = tpu.matmul %94, %97, %cst_60 {dimension_numbers = #tpu.dot_dimension_numbers<[1], [0], [0], [1], [0, 0, 1, 1], [], []>} : vector<16x16xf32>, vector<16x32xf32>, vector<16x32xf32> -> vector<16x32xf32>
    %c0_61 = arith.constant 0 : index
    %c0_62 = arith.constant 0 : index
    %99 = vector.load %arg11[%c0_61, %c0_62] : memref<1x32xf32, #tpu.memory_space<vmem>>, vector<1x32xf32>
    %100 = vector.broadcast %99 : vector<1x32xf32> to vector<16x32xf32>
    %101 = arith.addf %98, %100 : vector<16x32xf32>
    %cst_63 = arith.constant 0.000000e+00 : f32
    %102 = vector.broadcast %cst_63 : f32 to vector<16x32xf32>
    %103 = arith.maximumf %101, %102 : vector<16x32xf32>
    %cst_64 = arith.constant 0.000000e+00 : f32
    %104 = vector.broadcast %cst_64 : f32 to vector<16x32xf32>
    %c0_65 = arith.constant 0 : index
    %c0_66 = arith.constant 0 : index
    %c0_67 = arith.constant 0 : index
    %105 = vector.load %arg12[%c0_65, %c0_66, %c0_67] : memref<2x32x32xf32, #tpu.memory_space<vmem>>, vector<1x32x32xf32>
    %106 = vector.shape_cast %105 : vector<1x32x32xf32> to vector<32x32xf32>
    %cst_68 = arith.constant dense<0.000000e+00> : vector<1x32xf32>
    %107 = tpu.matmul %96, %106, %cst_68 {dimension_numbers = #tpu.dot_dimension_numbers<[1], [0], [0], [1], [0, 0, 1, 1], [], []>} : vector<1x32xf32>, vector<32x32xf32>, vector<1x32xf32> -> vector<1x32xf32>
    %c0_69 = arith.constant 0 : index
    %c0_70 = arith.constant 0 : index
    %c0_71 = arith.constant 0 : index
    %108 = vector.load %arg13[%c0_69, %c0_70, %c0_71] : memref<2x1x32xf32, #tpu.memory_space<vmem>>, vector<1x1x32xf32>
    %109 = vector.shape_cast %108 : vector<1x1x32xf32> to vector<1x32xf32>
    %110 = arith.addf %107, %109 : vector<1x32xf32>
    %111 = vector.broadcast %110 : vector<1x32xf32> to vector<16x32xf32>
    %112 = arith.addf %103, %111 : vector<16x32xf32>
    %c1_i32_72 = arith.constant 1 : i32
    %113 = tpu.dynamic_rotate %112 by %c1_i32_72 dim 0 : vector<16x32xf32>, i32 -> vector<16x32xf32>
    %114 = vector.broadcast %73 : vector<16x1xf32> to vector<16x32xf32>
    %115 = arith.mulf %113, %114 : vector<16x32xf32>
    %c15_i32 = arith.constant 15 : i32
    %116 = tpu.dynamic_rotate %112 by %c15_i32 dim 0 : vector<16x32xf32>, i32 -> vector<16x32xf32>
    %117 = vector.broadcast %93 : vector<16x1xf32> to vector<16x32xf32>
    %118 = arith.mulf %116, %117 : vector<16x32xf32>
    %119 = tpu.concatenate %115, %112, %118 in 1 : vector<16x32xf32>, vector<16x32xf32>, vector<16x32xf32> -> vector<16x96xf32>
    %c0_73 = arith.constant 0 : index
    %c0_74 = arith.constant 0 : index
    %c0_75 = arith.constant 0 : index
    %120 = vector.load %arg14[%c0_73, %c0_74, %c0_75] : memref<2x96x32xf32, #tpu.memory_space<vmem>>, vector<1x96x32xf32>
    %121 = vector.shape_cast %120 : vector<1x96x32xf32> to vector<96x32xf32>
    %cst_76 = arith.constant dense<0.000000e+00> : vector<16x32xf32>
    %122 = tpu.matmul %119, %121, %cst_76 {dimension_numbers = #tpu.dot_dimension_numbers<[1], [0], [0], [1], [0, 0, 1, 1], [], []>} : vector<16x96xf32>, vector<96x32xf32>, vector<16x32xf32> -> vector<16x32xf32>
    %c0_77 = arith.constant 0 : index
    %c0_78 = arith.constant 0 : index
    %c0_79 = arith.constant 0 : index
    %123 = vector.load %arg15[%c0_77, %c0_78, %c0_79] : memref<2x1x32xf32, #tpu.memory_space<vmem>>, vector<1x1x32xf32>
    %124 = vector.shape_cast %123 : vector<1x1x32xf32> to vector<1x32xf32>
    %125 = vector.broadcast %124 : vector<1x32xf32> to vector<16x32xf32>
    %126 = arith.addf %122, %125 : vector<16x32xf32>
    %127 = arith.addf %126, %31 : vector<16x32xf32>
    %c0_80 = arith.constant 0 : index
    %c0_81 = arith.constant 0 : index
    %c0_82 = arith.constant 0 : index
    %128 = vector.load %arg16[%c0_80, %c0_81, %c0_82] : memref<2x96x32xf32, #tpu.memory_space<vmem>>, vector<1x96x32xf32>
    %129 = vector.shape_cast %128 : vector<1x96x32xf32> to vector<96x32xf32>
    %cst_83 = arith.constant dense<0.000000e+00> : vector<16x32xf32>
    %130 = tpu.matmul %119, %129, %cst_83 {dimension_numbers = #tpu.dot_dimension_numbers<[1], [0], [0], [1], [0, 0, 1, 1], [], []>} : vector<16x96xf32>, vector<96x32xf32>, vector<16x32xf32> -> vector<16x32xf32>
    %c0_84 = arith.constant 0 : index
    %c0_85 = arith.constant 0 : index
    %c0_86 = arith.constant 0 : index
    %131 = vector.load %arg17[%c0_84, %c0_85, %c0_86] : memref<2x1x32xf32, #tpu.memory_space<vmem>>, vector<1x1x32xf32>
    %132 = vector.shape_cast %131 : vector<1x1x32xf32> to vector<1x32xf32>
    %133 = vector.broadcast %132 : vector<1x32xf32> to vector<16x32xf32>
    %134 = arith.addf %130, %133 : vector<16x32xf32>
    %135 = arith.addf %134, %45 : vector<16x32xf32>
    %136 = arith.negf %127 : vector<16x32xf32>
    %137 = math.exp %136 : vector<16x32xf32>
    %cst_87 = arith.constant 1.000000e+00 : f32
    %138 = vector.broadcast %cst_87 : f32 to vector<16x32xf32>
    %139 = arith.addf %138, %137 : vector<16x32xf32>
    %140 = arith.divf %138, %139 : vector<16x32xf32>
    %141 = math.tanh %135 : vector<16x32xf32>
    %142 = arith.mulf %140, %141 : vector<16x32xf32>
    %c0_88 = arith.constant 0 : index
    %c0_89 = arith.constant 0 : index
    %c0_90 = arith.constant 0 : index
    %143 = vector.load %arg22[%c0_88, %c0_89, %c0_90] : memref<2x32x32xf32, #tpu.memory_space<vmem>>, vector<1x32x32xf32>
    %144 = vector.shape_cast %143 : vector<1x32x32xf32> to vector<32x32xf32>
    %cst_91 = arith.constant dense<0.000000e+00> : vector<16x32xf32>
    %145 = tpu.matmul %142, %144, %cst_91 {dimension_numbers = #tpu.dot_dimension_numbers<[1], [0], [0], [1], [0, 0, 1, 1], [], []>} : vector<16x32xf32>, vector<32x32xf32>, vector<16x32xf32> -> vector<16x32xf32>
    %c0_92 = arith.constant 0 : index
    %c0_93 = arith.constant 0 : index
    %c0_94 = arith.constant 0 : index
    %146 = vector.load %arg23[%c0_92, %c0_93, %c0_94] : memref<2x1x32xf32, #tpu.memory_space<vmem>>, vector<1x1x32xf32>
    %147 = vector.shape_cast %146 : vector<1x1x32xf32> to vector<1x32xf32>
    %148 = vector.broadcast %147 : vector<1x32xf32> to vector<16x32xf32>
    %149 = arith.addf %145, %148 : vector<16x32xf32>
    %c0_95 = arith.constant 0 : index
    %c0_96 = arith.constant 0 : index
    %c0_97 = arith.constant 0 : index
    %150 = vector.load %arg24[%c0_95, %c0_96, %c0_97] : memref<2x32x32xf32, #tpu.memory_space<vmem>>, vector<1x32x32xf32>
    %151 = vector.shape_cast %150 : vector<1x32x32xf32> to vector<32x32xf32>
    %cst_98 = arith.constant dense<0.000000e+00> : vector<16x32xf32>
    %152 = tpu.matmul %142, %151, %cst_98 {dimension_numbers = #tpu.dot_dimension_numbers<[1], [0], [0], [1], [0, 0, 1, 1], [], []>} : vector<16x32xf32>, vector<32x32xf32>, vector<16x32xf32> -> vector<16x32xf32>
    %c0_99 = arith.constant 0 : index
    %c0_100 = arith.constant 0 : index
    %c0_101 = arith.constant 0 : index
    %153 = vector.load %arg25[%c0_99, %c0_100, %c0_101] : memref<2x1x32xf32, #tpu.memory_space<vmem>>, vector<1x1x32xf32>
    %154 = vector.shape_cast %153 : vector<1x1x32xf32> to vector<1x32xf32>
    %155 = vector.broadcast %154 : vector<1x32xf32> to vector<16x32xf32>
    %156 = arith.addf %152, %155 : vector<16x32xf32>
    %157 = arith.addf %103, %149 : vector<16x32xf32>
    %cst_102 = arith.constant 0.707106769 : f32
    %158 = vector.broadcast %cst_102 : f32 to vector<16x32xf32>
    %159 = arith.mulf %157, %158 : vector<16x32xf32>
    %160 = arith.addf %104, %156 : vector<16x32xf32>
    %c1_103 = arith.constant 1 : index
    %c0_104 = arith.constant 0 : index
    %c0_105 = arith.constant 0 : index
    %161 = vector.load %arg12[%c1_103, %c0_104, %c0_105] : memref<2x32x32xf32, #tpu.memory_space<vmem>>, vector<1x32x32xf32>
    %162 = vector.shape_cast %161 : vector<1x32x32xf32> to vector<32x32xf32>
    %cst_106 = arith.constant dense<0.000000e+00> : vector<1x32xf32>
    %163 = tpu.matmul %96, %162, %cst_106 {dimension_numbers = #tpu.dot_dimension_numbers<[1], [0], [0], [1], [0, 0, 1, 1], [], []>} : vector<1x32xf32>, vector<32x32xf32>, vector<1x32xf32> -> vector<1x32xf32>
    %c1_107 = arith.constant 1 : index
    %c0_108 = arith.constant 0 : index
    %c0_109 = arith.constant 0 : index
    %164 = vector.load %arg13[%c1_107, %c0_108, %c0_109] : memref<2x1x32xf32, #tpu.memory_space<vmem>>, vector<1x1x32xf32>
    %165 = vector.shape_cast %164 : vector<1x1x32xf32> to vector<1x32xf32>
    %166 = arith.addf %163, %165 : vector<1x32xf32>
    %167 = vector.broadcast %166 : vector<1x32xf32> to vector<16x32xf32>
    %168 = arith.addf %159, %167 : vector<16x32xf32>
    %c1_i32_110 = arith.constant 1 : i32
    %169 = tpu.dynamic_rotate %168 by %c1_i32_110 dim 0 : vector<16x32xf32>, i32 -> vector<16x32xf32>
    %170 = vector.broadcast %73 : vector<16x1xf32> to vector<16x32xf32>
    %171 = arith.mulf %169, %170 : vector<16x32xf32>
    %c15_i32_111 = arith.constant 15 : i32
    %172 = tpu.dynamic_rotate %168 by %c15_i32_111 dim 0 : vector<16x32xf32>, i32 -> vector<16x32xf32>
    %173 = vector.broadcast %93 : vector<16x1xf32> to vector<16x32xf32>
    %174 = arith.mulf %172, %173 : vector<16x32xf32>
    %175 = tpu.concatenate %171, %168, %174 in 1 : vector<16x32xf32>, vector<16x32xf32>, vector<16x32xf32> -> vector<16x96xf32>
    %c1_112 = arith.constant 1 : index
    %c0_113 = arith.constant 0 : index
    %c0_114 = arith.constant 0 : index
    %176 = vector.load %arg14[%c1_112, %c0_113, %c0_114] : memref<2x96x32xf32, #tpu.memory_space<vmem>>, vector<1x96x32xf32>
    %177 = vector.shape_cast %176 : vector<1x96x32xf32> to vector<96x32xf32>
    %cst_115 = arith.constant dense<0.000000e+00> : vector<16x32xf32>
    %178 = tpu.matmul %175, %177, %cst_115 {dimension_numbers = #tpu.dot_dimension_numbers<[1], [0], [0], [1], [0, 0, 1, 1], [], []>} : vector<16x96xf32>, vector<96x32xf32>, vector<16x32xf32> -> vector<16x32xf32>
    %c1_116 = arith.constant 1 : index
    %c0_117 = arith.constant 0 : index
    %c0_118 = arith.constant 0 : index
    %179 = vector.load %arg15[%c1_116, %c0_117, %c0_118] : memref<2x1x32xf32, #tpu.memory_space<vmem>>, vector<1x1x32xf32>
    %180 = vector.shape_cast %179 : vector<1x1x32xf32> to vector<1x32xf32>
    %181 = vector.broadcast %180 : vector<1x32xf32> to vector<16x32xf32>
    %182 = arith.addf %178, %181 : vector<16x32xf32>
    %183 = arith.addf %182, %38 : vector<16x32xf32>
    %c1_119 = arith.constant 1 : index
    %c0_120 = arith.constant 0 : index
    %c0_121 = arith.constant 0 : index
    %184 = vector.load %arg16[%c1_119, %c0_120, %c0_121] : memref<2x96x32xf32, #tpu.memory_space<vmem>>, vector<1x96x32xf32>
    %185 = vector.shape_cast %184 : vector<1x96x32xf32> to vector<96x32xf32>
    %cst_122 = arith.constant dense<0.000000e+00> : vector<16x32xf32>
    %186 = tpu.matmul %175, %185, %cst_122 {dimension_numbers = #tpu.dot_dimension_numbers<[1], [0], [0], [1], [0, 0, 1, 1], [], []>} : vector<16x96xf32>, vector<96x32xf32>, vector<16x32xf32> -> vector<16x32xf32>
    %c1_123 = arith.constant 1 : index
    %c0_124 = arith.constant 0 : index
    %c0_125 = arith.constant 0 : index
    %187 = vector.load %arg17[%c1_123, %c0_124, %c0_125] : memref<2x1x32xf32, #tpu.memory_space<vmem>>, vector<1x1x32xf32>
    %188 = vector.shape_cast %187 : vector<1x1x32xf32> to vector<1x32xf32>
    %189 = vector.broadcast %188 : vector<1x32xf32> to vector<16x32xf32>
    %190 = arith.addf %186, %189 : vector<16x32xf32>
    %191 = arith.addf %190, %52 : vector<16x32xf32>
    %192 = arith.negf %183 : vector<16x32xf32>
    %193 = math.exp %192 : vector<16x32xf32>
    %cst_126 = arith.constant 1.000000e+00 : f32
    %194 = vector.broadcast %cst_126 : f32 to vector<16x32xf32>
    %195 = arith.addf %194, %193 : vector<16x32xf32>
    %196 = arith.divf %194, %195 : vector<16x32xf32>
    %197 = math.tanh %191 : vector<16x32xf32>
    %198 = arith.mulf %196, %197 : vector<16x32xf32>
    %c1_127 = arith.constant 1 : index
    %c0_128 = arith.constant 0 : index
    %c0_129 = arith.constant 0 : index
    %199 = vector.load %arg24[%c1_127, %c0_128, %c0_129] : memref<2x32x32xf32, #tpu.memory_space<vmem>>, vector<1x32x32xf32>
    %200 = vector.shape_cast %199 : vector<1x32x32xf32> to vector<32x32xf32>
    %cst_130 = arith.constant dense<0.000000e+00> : vector<16x32xf32>
    %201 = tpu.matmul %198, %200, %cst_130 {dimension_numbers = #tpu.dot_dimension_numbers<[1], [0], [0], [1], [0, 0, 1, 1], [], []>} : vector<16x32xf32>, vector<32x32xf32>, vector<16x32xf32> -> vector<16x32xf32>
    %c1_131 = arith.constant 1 : index
    %c0_132 = arith.constant 0 : index
    %c0_133 = arith.constant 0 : index
    %202 = vector.load %arg25[%c1_131, %c0_132, %c0_133] : memref<2x1x32xf32, #tpu.memory_space<vmem>>, vector<1x1x32xf32>
    %203 = vector.shape_cast %202 : vector<1x1x32xf32> to vector<1x32xf32>
    %204 = vector.broadcast %203 : vector<1x32xf32> to vector<16x32xf32>
    %205 = arith.addf %201, %204 : vector<16x32xf32>
    %206 = arith.addf %160, %205 : vector<16x32xf32>
    %cst_134 = arith.constant 0.707106769 : f32
    %207 = vector.broadcast %cst_134 : f32 to vector<16x32xf32>
    %208 = arith.mulf %206, %207 : vector<16x32xf32>
    %c0_135 = arith.constant 0 : index
    %c0_136 = arith.constant 0 : index
    %209 = vector.load %arg26[%c0_135, %c0_136] : memref<32x32xf32, #tpu.memory_space<vmem>>, vector<32x32xf32>
    %cst_137 = arith.constant dense<0.000000e+00> : vector<16x32xf32>
    %210 = tpu.matmul %208, %209, %cst_137 {dimension_numbers = #tpu.dot_dimension_numbers<[1], [0], [0], [1], [0, 0, 1, 1], [], []>} : vector<16x32xf32>, vector<32x32xf32>, vector<16x32xf32> -> vector<16x32xf32>
    %c0_138 = arith.constant 0 : index
    %c0_139 = arith.constant 0 : index
    %211 = vector.load %arg27[%c0_138, %c0_139] : memref<1x32xf32, #tpu.memory_space<vmem>>, vector<1x32xf32>
    %212 = vector.broadcast %211 : vector<1x32xf32> to vector<16x32xf32>
    %213 = arith.addf %210, %212 : vector<16x32xf32>
    %cst_140 = arith.constant 0.000000e+00 : f32
    %214 = vector.broadcast %cst_140 : f32 to vector<16x32xf32>
    %215 = arith.maximumf %213, %214 : vector<16x32xf32>
    %c0_141 = arith.constant 0 : index
    %c0_142 = arith.constant 0 : index
    %216 = vector.load %arg28[%c0_141, %c0_142] : memref<32x16xf32, #tpu.memory_space<vmem>>, vector<32x16xf32>
    %cst_143 = arith.constant dense<0.000000e+00> : vector<16x16xf32>
    %217 = tpu.matmul %215, %216, %cst_143 {dimension_numbers = #tpu.dot_dimension_numbers<[1], [0], [0], [1], [0, 0, 1, 1], [], []>} : vector<16x32xf32>, vector<32x16xf32>, vector<16x16xf32> -> vector<16x16xf32>
    %c0_144 = arith.constant 0 : index
    %c0_145 = arith.constant 0 : index
    %218 = vector.load %arg29[%c0_144, %c0_145] : memref<1x16xf32, #tpu.memory_space<vmem>>, vector<1x16xf32>
    %219 = vector.broadcast %218 : vector<1x16xf32> to vector<16x16xf32>
    %220 = arith.addf %217, %219 : vector<16x16xf32>
    %cst_146 = arith.constant 2.500000e-01 : f32
    %221 = vector.broadcast %cst_146 : f32 to vector<16x16xf32>
    %222 = arith.mulf %220, %221 : vector<16x16xf32>
    %223 = arith.addf %94, %222 : vector<16x16xf32>
    %c1_i32_147 = arith.constant 1 : i32
    %224 = arith.index_cast %c1_i32_147 : i32 to index
    %c0_148 = arith.constant 0 : index
    %225 = vector.load %arg5[%224, %c0_148] : memref<4x32xf32, #tpu.memory_space<vmem>>, vector<1x32xf32>
    %c0_149 = arith.constant 0 : index
    %c0_150 = arith.constant 0 : index
    %226 = vector.load %arg10[%c0_149, %c0_150] : memref<16x32xf32, #tpu.memory_space<vmem>>, vector<16x32xf32>
    %cst_151 = arith.constant dense<0.000000e+00> : vector<16x32xf32>
    %227 = tpu.matmul %223, %226, %cst_151 {dimension_numbers = #tpu.dot_dimension_numbers<[1], [0], [0], [1], [0, 0, 1, 1], [], []>} : vector<16x16xf32>, vector<16x32xf32>, vector<16x32xf32> -> vector<16x32xf32>
    %c0_152 = arith.constant 0 : index
    %c0_153 = arith.constant 0 : index
    %228 = vector.load %arg11[%c0_152, %c0_153] : memref<1x32xf32, #tpu.memory_space<vmem>>, vector<1x32xf32>
    %229 = vector.broadcast %228 : vector<1x32xf32> to vector<16x32xf32>
    %230 = arith.addf %227, %229 : vector<16x32xf32>
    %cst_154 = arith.constant 0.000000e+00 : f32
    %231 = vector.broadcast %cst_154 : f32 to vector<16x32xf32>
    %232 = arith.maximumf %230, %231 : vector<16x32xf32>
    %cst_155 = arith.constant 0.000000e+00 : f32
    %233 = vector.broadcast %cst_155 : f32 to vector<16x32xf32>
    %c0_156 = arith.constant 0 : index
    %c0_157 = arith.constant 0 : index
    %c0_158 = arith.constant 0 : index
    %234 = vector.load %arg12[%c0_156, %c0_157, %c0_158] : memref<2x32x32xf32, #tpu.memory_space<vmem>>, vector<1x32x32xf32>
    %235 = vector.shape_cast %234 : vector<1x32x32xf32> to vector<32x32xf32>
    %cst_159 = arith.constant dense<0.000000e+00> : vector<1x32xf32>
    %236 = tpu.matmul %225, %235, %cst_159 {dimension_numbers = #tpu.dot_dimension_numbers<[1], [0], [0], [1], [0, 0, 1, 1], [], []>} : vector<1x32xf32>, vector<32x32xf32>, vector<1x32xf32> -> vector<1x32xf32>
    %c0_160 = arith.constant 0 : index
    %c0_161 = arith.constant 0 : index
    %c0_162 = arith.constant 0 : index
    %237 = vector.load %arg13[%c0_160, %c0_161, %c0_162] : memref<2x1x32xf32, #tpu.memory_space<vmem>>, vector<1x1x32xf32>
    %238 = vector.shape_cast %237 : vector<1x1x32xf32> to vector<1x32xf32>
    %239 = arith.addf %236, %238 : vector<1x32xf32>
    %240 = vector.broadcast %239 : vector<1x32xf32> to vector<16x32xf32>
    %241 = arith.addf %232, %240 : vector<16x32xf32>
    %c1_i32_163 = arith.constant 1 : i32
    %242 = tpu.dynamic_rotate %241 by %c1_i32_163 dim 0 : vector<16x32xf32>, i32 -> vector<16x32xf32>
    %243 = vector.broadcast %73 : vector<16x1xf32> to vector<16x32xf32>
    %244 = arith.mulf %242, %243 : vector<16x32xf32>
    %c15_i32_164 = arith.constant 15 : i32
    %245 = tpu.dynamic_rotate %241 by %c15_i32_164 dim 0 : vector<16x32xf32>, i32 -> vector<16x32xf32>
    %246 = vector.broadcast %93 : vector<16x1xf32> to vector<16x32xf32>
    %247 = arith.mulf %245, %246 : vector<16x32xf32>
    %248 = tpu.concatenate %244, %241, %247 in 1 : vector<16x32xf32>, vector<16x32xf32>, vector<16x32xf32> -> vector<16x96xf32>
    %c0_165 = arith.constant 0 : index
    %c0_166 = arith.constant 0 : index
    %c0_167 = arith.constant 0 : index
    %249 = vector.load %arg14[%c0_165, %c0_166, %c0_167] : memref<2x96x32xf32, #tpu.memory_space<vmem>>, vector<1x96x32xf32>
    %250 = vector.shape_cast %249 : vector<1x96x32xf32> to vector<96x32xf32>
    %cst_168 = arith.constant dense<0.000000e+00> : vector<16x32xf32>
    %251 = tpu.matmul %248, %250, %cst_168 {dimension_numbers = #tpu.dot_dimension_numbers<[1], [0], [0], [1], [0, 0, 1, 1], [], []>} : vector<16x96xf32>, vector<96x32xf32>, vector<16x32xf32> -> vector<16x32xf32>
    %c0_169 = arith.constant 0 : index
    %c0_170 = arith.constant 0 : index
    %c0_171 = arith.constant 0 : index
    %252 = vector.load %arg15[%c0_169, %c0_170, %c0_171] : memref<2x1x32xf32, #tpu.memory_space<vmem>>, vector<1x1x32xf32>
    %253 = vector.shape_cast %252 : vector<1x1x32xf32> to vector<1x32xf32>
    %254 = vector.broadcast %253 : vector<1x32xf32> to vector<16x32xf32>
    %255 = arith.addf %251, %254 : vector<16x32xf32>
    %256 = arith.addf %255, %31 : vector<16x32xf32>
    %c0_172 = arith.constant 0 : index
    %c0_173 = arith.constant 0 : index
    %c0_174 = arith.constant 0 : index
    %257 = vector.load %arg16[%c0_172, %c0_173, %c0_174] : memref<2x96x32xf32, #tpu.memory_space<vmem>>, vector<1x96x32xf32>
    %258 = vector.shape_cast %257 : vector<1x96x32xf32> to vector<96x32xf32>
    %cst_175 = arith.constant dense<0.000000e+00> : vector<16x32xf32>
    %259 = tpu.matmul %248, %258, %cst_175 {dimension_numbers = #tpu.dot_dimension_numbers<[1], [0], [0], [1], [0, 0, 1, 1], [], []>} : vector<16x96xf32>, vector<96x32xf32>, vector<16x32xf32> -> vector<16x32xf32>
    %c0_176 = arith.constant 0 : index
    %c0_177 = arith.constant 0 : index
    %c0_178 = arith.constant 0 : index
    %260 = vector.load %arg17[%c0_176, %c0_177, %c0_178] : memref<2x1x32xf32, #tpu.memory_space<vmem>>, vector<1x1x32xf32>
    %261 = vector.shape_cast %260 : vector<1x1x32xf32> to vector<1x32xf32>
    %262 = vector.broadcast %261 : vector<1x32xf32> to vector<16x32xf32>
    %263 = arith.addf %259, %262 : vector<16x32xf32>
    %264 = arith.addf %263, %45 : vector<16x32xf32>
    %265 = arith.negf %256 : vector<16x32xf32>
    %266 = math.exp %265 : vector<16x32xf32>
    %cst_179 = arith.constant 1.000000e+00 : f32
    %267 = vector.broadcast %cst_179 : f32 to vector<16x32xf32>
    %268 = arith.addf %267, %266 : vector<16x32xf32>
    %269 = arith.divf %267, %268 : vector<16x32xf32>
    %270 = math.tanh %264 : vector<16x32xf32>
    %271 = arith.mulf %269, %270 : vector<16x32xf32>
    %c0_180 = arith.constant 0 : index
    %c0_181 = arith.constant 0 : index
    %c0_182 = arith.constant 0 : index
    %272 = vector.load %arg22[%c0_180, %c0_181, %c0_182] : memref<2x32x32xf32, #tpu.memory_space<vmem>>, vector<1x32x32xf32>
    %273 = vector.shape_cast %272 : vector<1x32x32xf32> to vector<32x32xf32>
    %cst_183 = arith.constant dense<0.000000e+00> : vector<16x32xf32>
    %274 = tpu.matmul %271, %273, %cst_183 {dimension_numbers = #tpu.dot_dimension_numbers<[1], [0], [0], [1], [0, 0, 1, 1], [], []>} : vector<16x32xf32>, vector<32x32xf32>, vector<16x32xf32> -> vector<16x32xf32>
    %c0_184 = arith.constant 0 : index
    %c0_185 = arith.constant 0 : index
    %c0_186 = arith.constant 0 : index
    %275 = vector.load %arg23[%c0_184, %c0_185, %c0_186] : memref<2x1x32xf32, #tpu.memory_space<vmem>>, vector<1x1x32xf32>
    %276 = vector.shape_cast %275 : vector<1x1x32xf32> to vector<1x32xf32>
    %277 = vector.broadcast %276 : vector<1x32xf32> to vector<16x32xf32>
    %278 = arith.addf %274, %277 : vector<16x32xf32>
    %c0_187 = arith.constant 0 : index
    %c0_188 = arith.constant 0 : index
    %c0_189 = arith.constant 0 : index
    %279 = vector.load %arg24[%c0_187, %c0_188, %c0_189] : memref<2x32x32xf32, #tpu.memory_space<vmem>>, vector<1x32x32xf32>
    %280 = vector.shape_cast %279 : vector<1x32x32xf32> to vector<32x32xf32>
    %cst_190 = arith.constant dense<0.000000e+00> : vector<16x32xf32>
    %281 = tpu.matmul %271, %280, %cst_190 {dimension_numbers = #tpu.dot_dimension_numbers<[1], [0], [0], [1], [0, 0, 1, 1], [], []>} : vector<16x32xf32>, vector<32x32xf32>, vector<16x32xf32> -> vector<16x32xf32>
    %c0_191 = arith.constant 0 : index
    %c0_192 = arith.constant 0 : index
    %c0_193 = arith.constant 0 : index
    %282 = vector.load %arg25[%c0_191, %c0_192, %c0_193] : memref<2x1x32xf32, #tpu.memory_space<vmem>>, vector<1x1x32xf32>
    %283 = vector.shape_cast %282 : vector<1x1x32xf32> to vector<1x32xf32>
    %284 = vector.broadcast %283 : vector<1x32xf32> to vector<16x32xf32>
    %285 = arith.addf %281, %284 : vector<16x32xf32>
    %286 = arith.addf %232, %278 : vector<16x32xf32>
    %cst_194 = arith.constant 0.707106769 : f32
    %287 = vector.broadcast %cst_194 : f32 to vector<16x32xf32>
    %288 = arith.mulf %286, %287 : vector<16x32xf32>
    %289 = arith.addf %233, %285 : vector<16x32xf32>
    %c1_195 = arith.constant 1 : index
    %c0_196 = arith.constant 0 : index
    %c0_197 = arith.constant 0 : index
    %290 = vector.load %arg12[%c1_195, %c0_196, %c0_197] : memref<2x32x32xf32, #tpu.memory_space<vmem>>, vector<1x32x32xf32>
    %291 = vector.shape_cast %290 : vector<1x32x32xf32> to vector<32x32xf32>
    %cst_198 = arith.constant dense<0.000000e+00> : vector<1x32xf32>
    %292 = tpu.matmul %225, %291, %cst_198 {dimension_numbers = #tpu.dot_dimension_numbers<[1], [0], [0], [1], [0, 0, 1, 1], [], []>} : vector<1x32xf32>, vector<32x32xf32>, vector<1x32xf32> -> vector<1x32xf32>
    %c1_199 = arith.constant 1 : index
    %c0_200 = arith.constant 0 : index
    %c0_201 = arith.constant 0 : index
    %293 = vector.load %arg13[%c1_199, %c0_200, %c0_201] : memref<2x1x32xf32, #tpu.memory_space<vmem>>, vector<1x1x32xf32>
    %294 = vector.shape_cast %293 : vector<1x1x32xf32> to vector<1x32xf32>
    %295 = arith.addf %292, %294 : vector<1x32xf32>
    %296 = vector.broadcast %295 : vector<1x32xf32> to vector<16x32xf32>
    %297 = arith.addf %288, %296 : vector<16x32xf32>
    %c1_i32_202 = arith.constant 1 : i32
    %298 = tpu.dynamic_rotate %297 by %c1_i32_202 dim 0 : vector<16x32xf32>, i32 -> vector<16x32xf32>
    %299 = vector.broadcast %73 : vector<16x1xf32> to vector<16x32xf32>
    %300 = arith.mulf %298, %299 : vector<16x32xf32>
    %c15_i32_203 = arith.constant 15 : i32
    %301 = tpu.dynamic_rotate %297 by %c15_i32_203 dim 0 : vector<16x32xf32>, i32 -> vector<16x32xf32>
    %302 = vector.broadcast %93 : vector<16x1xf32> to vector<16x32xf32>
    %303 = arith.mulf %301, %302 : vector<16x32xf32>
    %304 = tpu.concatenate %300, %297, %303 in 1 : vector<16x32xf32>, vector<16x32xf32>, vector<16x32xf32> -> vector<16x96xf32>
    %c1_204 = arith.constant 1 : index
    %c0_205 = arith.constant 0 : index
    %c0_206 = arith.constant 0 : index
    %305 = vector.load %arg14[%c1_204, %c0_205, %c0_206] : memref<2x96x32xf32, #tpu.memory_space<vmem>>, vector<1x96x32xf32>
    %306 = vector.shape_cast %305 : vector<1x96x32xf32> to vector<96x32xf32>
    %cst_207 = arith.constant dense<0.000000e+00> : vector<16x32xf32>
    %307 = tpu.matmul %304, %306, %cst_207 {dimension_numbers = #tpu.dot_dimension_numbers<[1], [0], [0], [1], [0, 0, 1, 1], [], []>} : vector<16x96xf32>, vector<96x32xf32>, vector<16x32xf32> -> vector<16x32xf32>
    %c1_208 = arith.constant 1 : index
    %c0_209 = arith.constant 0 : index
    %c0_210 = arith.constant 0 : index
    %308 = vector.load %arg15[%c1_208, %c0_209, %c0_210] : memref<2x1x32xf32, #tpu.memory_space<vmem>>, vector<1x1x32xf32>
    %309 = vector.shape_cast %308 : vector<1x1x32xf32> to vector<1x32xf32>
    %310 = vector.broadcast %309 : vector<1x32xf32> to vector<16x32xf32>
    %311 = arith.addf %307, %310 : vector<16x32xf32>
    %312 = arith.addf %311, %38 : vector<16x32xf32>
    %c1_211 = arith.constant 1 : index
    %c0_212 = arith.constant 0 : index
    %c0_213 = arith.constant 0 : index
    %313 = vector.load %arg16[%c1_211, %c0_212, %c0_213] : memref<2x96x32xf32, #tpu.memory_space<vmem>>, vector<1x96x32xf32>
    %314 = vector.shape_cast %313 : vector<1x96x32xf32> to vector<96x32xf32>
    %cst_214 = arith.constant dense<0.000000e+00> : vector<16x32xf32>
    %315 = tpu.matmul %304, %314, %cst_214 {dimension_numbers = #tpu.dot_dimension_numbers<[1], [0], [0], [1], [0, 0, 1, 1], [], []>} : vector<16x96xf32>, vector<96x32xf32>, vector<16x32xf32> -> vector<16x32xf32>
    %c1_215 = arith.constant 1 : index
    %c0_216 = arith.constant 0 : index
    %c0_217 = arith.constant 0 : index
    %316 = vector.load %arg17[%c1_215, %c0_216, %c0_217] : memref<2x1x32xf32, #tpu.memory_space<vmem>>, vector<1x1x32xf32>
    %317 = vector.shape_cast %316 : vector<1x1x32xf32> to vector<1x32xf32>
    %318 = vector.broadcast %317 : vector<1x32xf32> to vector<16x32xf32>
    %319 = arith.addf %315, %318 : vector<16x32xf32>
    %320 = arith.addf %319, %52 : vector<16x32xf32>
    %321 = arith.negf %312 : vector<16x32xf32>
    %322 = math.exp %321 : vector<16x32xf32>
    %cst_218 = arith.constant 1.000000e+00 : f32
    %323 = vector.broadcast %cst_218 : f32 to vector<16x32xf32>
    %324 = arith.addf %323, %322 : vector<16x32xf32>
    %325 = arith.divf %323, %324 : vector<16x32xf32>
    %326 = math.tanh %320 : vector<16x32xf32>
    %327 = arith.mulf %325, %326 : vector<16x32xf32>
    %c1_219 = arith.constant 1 : index
    %c0_220 = arith.constant 0 : index
    %c0_221 = arith.constant 0 : index
    %328 = vector.load %arg24[%c1_219, %c0_220, %c0_221] : memref<2x32x32xf32, #tpu.memory_space<vmem>>, vector<1x32x32xf32>
    %329 = vector.shape_cast %328 : vector<1x32x32xf32> to vector<32x32xf32>
    %cst_222 = arith.constant dense<0.000000e+00> : vector<16x32xf32>
    %330 = tpu.matmul %327, %329, %cst_222 {dimension_numbers = #tpu.dot_dimension_numbers<[1], [0], [0], [1], [0, 0, 1, 1], [], []>} : vector<16x32xf32>, vector<32x32xf32>, vector<16x32xf32> -> vector<16x32xf32>
    %c1_223 = arith.constant 1 : index
    %c0_224 = arith.constant 0 : index
    %c0_225 = arith.constant 0 : index
    %331 = vector.load %arg25[%c1_223, %c0_224, %c0_225] : memref<2x1x32xf32, #tpu.memory_space<vmem>>, vector<1x1x32xf32>
    %332 = vector.shape_cast %331 : vector<1x1x32xf32> to vector<1x32xf32>
    %333 = vector.broadcast %332 : vector<1x32xf32> to vector<16x32xf32>
    %334 = arith.addf %330, %333 : vector<16x32xf32>
    %335 = arith.addf %289, %334 : vector<16x32xf32>
    %cst_226 = arith.constant 0.707106769 : f32
    %336 = vector.broadcast %cst_226 : f32 to vector<16x32xf32>
    %337 = arith.mulf %335, %336 : vector<16x32xf32>
    %c0_227 = arith.constant 0 : index
    %c0_228 = arith.constant 0 : index
    %338 = vector.load %arg26[%c0_227, %c0_228] : memref<32x32xf32, #tpu.memory_space<vmem>>, vector<32x32xf32>
    %cst_229 = arith.constant dense<0.000000e+00> : vector<16x32xf32>
    %339 = tpu.matmul %337, %338, %cst_229 {dimension_numbers = #tpu.dot_dimension_numbers<[1], [0], [0], [1], [0, 0, 1, 1], [], []>} : vector<16x32xf32>, vector<32x32xf32>, vector<16x32xf32> -> vector<16x32xf32>
    %c0_230 = arith.constant 0 : index
    %c0_231 = arith.constant 0 : index
    %340 = vector.load %arg27[%c0_230, %c0_231] : memref<1x32xf32, #tpu.memory_space<vmem>>, vector<1x32xf32>
    %341 = vector.broadcast %340 : vector<1x32xf32> to vector<16x32xf32>
    %342 = arith.addf %339, %341 : vector<16x32xf32>
    %cst_232 = arith.constant 0.000000e+00 : f32
    %343 = vector.broadcast %cst_232 : f32 to vector<16x32xf32>
    %344 = arith.maximumf %342, %343 : vector<16x32xf32>
    %c0_233 = arith.constant 0 : index
    %c0_234 = arith.constant 0 : index
    %345 = vector.load %arg28[%c0_233, %c0_234] : memref<32x16xf32, #tpu.memory_space<vmem>>, vector<32x16xf32>
    %cst_235 = arith.constant dense<0.000000e+00> : vector<16x16xf32>
    %346 = tpu.matmul %344, %345, %cst_235 {dimension_numbers = #tpu.dot_dimension_numbers<[1], [0], [0], [1], [0, 0, 1, 1], [], []>} : vector<16x32xf32>, vector<32x16xf32>, vector<16x16xf32> -> vector<16x16xf32>
    %c0_236 = arith.constant 0 : index
    %c0_237 = arith.constant 0 : index
    %347 = vector.load %arg29[%c0_236, %c0_237] : memref<1x16xf32, #tpu.memory_space<vmem>>, vector<1x16xf32>
    %348 = vector.broadcast %347 : vector<1x16xf32> to vector<16x16xf32>
    %349 = arith.addf %346, %348 : vector<16x16xf32>
    %cst_238 = arith.constant 2.500000e-01 : f32
    %350 = vector.broadcast %cst_238 : f32 to vector<16x16xf32>
    %351 = arith.mulf %349, %350 : vector<16x16xf32>
    %352 = arith.addf %223, %351 : vector<16x16xf32>
    %c2_i32 = arith.constant 2 : i32
    %353 = arith.index_cast %c2_i32 : i32 to index
    %c0_239 = arith.constant 0 : index
    %354 = vector.load %arg5[%353, %c0_239] : memref<4x32xf32, #tpu.memory_space<vmem>>, vector<1x32xf32>
    %c0_240 = arith.constant 0 : index
    %c0_241 = arith.constant 0 : index
    %355 = vector.load %arg10[%c0_240, %c0_241] : memref<16x32xf32, #tpu.memory_space<vmem>>, vector<16x32xf32>
    %cst_242 = arith.constant dense<0.000000e+00> : vector<16x32xf32>
    %356 = tpu.matmul %352, %355, %cst_242 {dimension_numbers = #tpu.dot_dimension_numbers<[1], [0], [0], [1], [0, 0, 1, 1], [], []>} : vector<16x16xf32>, vector<16x32xf32>, vector<16x32xf32> -> vector<16x32xf32>
    %c0_243 = arith.constant 0 : index
    %c0_244 = arith.constant 0 : index
    %357 = vector.load %arg11[%c0_243, %c0_244] : memref<1x32xf32, #tpu.memory_space<vmem>>, vector<1x32xf32>
    %358 = vector.broadcast %357 : vector<1x32xf32> to vector<16x32xf32>
    %359 = arith.addf %356, %358 : vector<16x32xf32>
    %cst_245 = arith.constant 0.000000e+00 : f32
    %360 = vector.broadcast %cst_245 : f32 to vector<16x32xf32>
    %361 = arith.maximumf %359, %360 : vector<16x32xf32>
    %cst_246 = arith.constant 0.000000e+00 : f32
    %362 = vector.broadcast %cst_246 : f32 to vector<16x32xf32>
    %c0_247 = arith.constant 0 : index
    %c0_248 = arith.constant 0 : index
    %c0_249 = arith.constant 0 : index
    %363 = vector.load %arg12[%c0_247, %c0_248, %c0_249] : memref<2x32x32xf32, #tpu.memory_space<vmem>>, vector<1x32x32xf32>
    %364 = vector.shape_cast %363 : vector<1x32x32xf32> to vector<32x32xf32>
    %cst_250 = arith.constant dense<0.000000e+00> : vector<1x32xf32>
    %365 = tpu.matmul %354, %364, %cst_250 {dimension_numbers = #tpu.dot_dimension_numbers<[1], [0], [0], [1], [0, 0, 1, 1], [], []>} : vector<1x32xf32>, vector<32x32xf32>, vector<1x32xf32> -> vector<1x32xf32>
    %c0_251 = arith.constant 0 : index
    %c0_252 = arith.constant 0 : index
    %c0_253 = arith.constant 0 : index
    %366 = vector.load %arg13[%c0_251, %c0_252, %c0_253] : memref<2x1x32xf32, #tpu.memory_space<vmem>>, vector<1x1x32xf32>
    %367 = vector.shape_cast %366 : vector<1x1x32xf32> to vector<1x32xf32>
    %368 = arith.addf %365, %367 : vector<1x32xf32>
    %369 = vector.broadcast %368 : vector<1x32xf32> to vector<16x32xf32>
    %370 = arith.addf %361, %369 : vector<16x32xf32>
    %c1_i32_254 = arith.constant 1 : i32
    %371 = tpu.dynamic_rotate %370 by %c1_i32_254 dim 0 : vector<16x32xf32>, i32 -> vector<16x32xf32>
    %372 = vector.broadcast %73 : vector<16x1xf32> to vector<16x32xf32>
    %373 = arith.mulf %371, %372 : vector<16x32xf32>
    %c15_i32_255 = arith.constant 15 : i32
    %374 = tpu.dynamic_rotate %370 by %c15_i32_255 dim 0 : vector<16x32xf32>, i32 -> vector<16x32xf32>
    %375 = vector.broadcast %93 : vector<16x1xf32> to vector<16x32xf32>
    %376 = arith.mulf %374, %375 : vector<16x32xf32>
    %377 = tpu.concatenate %373, %370, %376 in 1 : vector<16x32xf32>, vector<16x32xf32>, vector<16x32xf32> -> vector<16x96xf32>
    %c0_256 = arith.constant 0 : index
    %c0_257 = arith.constant 0 : index
    %c0_258 = arith.constant 0 : index
    %378 = vector.load %arg14[%c0_256, %c0_257, %c0_258] : memref<2x96x32xf32, #tpu.memory_space<vmem>>, vector<1x96x32xf32>
    %379 = vector.shape_cast %378 : vector<1x96x32xf32> to vector<96x32xf32>
    %cst_259 = arith.constant dense<0.000000e+00> : vector<16x32xf32>
    %380 = tpu.matmul %377, %379, %cst_259 {dimension_numbers = #tpu.dot_dimension_numbers<[1], [0], [0], [1], [0, 0, 1, 1], [], []>} : vector<16x96xf32>, vector<96x32xf32>, vector<16x32xf32> -> vector<16x32xf32>
    %c0_260 = arith.constant 0 : index
    %c0_261 = arith.constant 0 : index
    %c0_262 = arith.constant 0 : index
    %381 = vector.load %arg15[%c0_260, %c0_261, %c0_262] : memref<2x1x32xf32, #tpu.memory_space<vmem>>, vector<1x1x32xf32>
    %382 = vector.shape_cast %381 : vector<1x1x32xf32> to vector<1x32xf32>
    %383 = vector.broadcast %382 : vector<1x32xf32> to vector<16x32xf32>
    %384 = arith.addf %380, %383 : vector<16x32xf32>
    %385 = arith.addf %384, %31 : vector<16x32xf32>
    %c0_263 = arith.constant 0 : index
    %c0_264 = arith.constant 0 : index
    %c0_265 = arith.constant 0 : index
    %386 = vector.load %arg16[%c0_263, %c0_264, %c0_265] : memref<2x96x32xf32, #tpu.memory_space<vmem>>, vector<1x96x32xf32>
    %387 = vector.shape_cast %386 : vector<1x96x32xf32> to vector<96x32xf32>
    %cst_266 = arith.constant dense<0.000000e+00> : vector<16x32xf32>
    %388 = tpu.matmul %377, %387, %cst_266 {dimension_numbers = #tpu.dot_dimension_numbers<[1], [0], [0], [1], [0, 0, 1, 1], [], []>} : vector<16x96xf32>, vector<96x32xf32>, vector<16x32xf32> -> vector<16x32xf32>
    %c0_267 = arith.constant 0 : index
    %c0_268 = arith.constant 0 : index
    %c0_269 = arith.constant 0 : index
    %389 = vector.load %arg17[%c0_267, %c0_268, %c0_269] : memref<2x1x32xf32, #tpu.memory_space<vmem>>, vector<1x1x32xf32>
    %390 = vector.shape_cast %389 : vector<1x1x32xf32> to vector<1x32xf32>
    %391 = vector.broadcast %390 : vector<1x32xf32> to vector<16x32xf32>
    %392 = arith.addf %388, %391 : vector<16x32xf32>
    %393 = arith.addf %392, %45 : vector<16x32xf32>
    %394 = arith.negf %385 : vector<16x32xf32>
    %395 = math.exp %394 : vector<16x32xf32>
    %cst_270 = arith.constant 1.000000e+00 : f32
    %396 = vector.broadcast %cst_270 : f32 to vector<16x32xf32>
    %397 = arith.addf %396, %395 : vector<16x32xf32>
    %398 = arith.divf %396, %397 : vector<16x32xf32>
    %399 = math.tanh %393 : vector<16x32xf32>
    %400 = arith.mulf %398, %399 : vector<16x32xf32>
    %c0_271 = arith.constant 0 : index
    %c0_272 = arith.constant 0 : index
    %c0_273 = arith.constant 0 : index
    %401 = vector.load %arg22[%c0_271, %c0_272, %c0_273] : memref<2x32x32xf32, #tpu.memory_space<vmem>>, vector<1x32x32xf32>
    %402 = vector.shape_cast %401 : vector<1x32x32xf32> to vector<32x32xf32>
    %cst_274 = arith.constant dense<0.000000e+00> : vector<16x32xf32>
    %403 = tpu.matmul %400, %402, %cst_274 {dimension_numbers = #tpu.dot_dimension_numbers<[1], [0], [0], [1], [0, 0, 1, 1], [], []>} : vector<16x32xf32>, vector<32x32xf32>, vector<16x32xf32> -> vector<16x32xf32>
    %c0_275 = arith.constant 0 : index
    %c0_276 = arith.constant 0 : index
    %c0_277 = arith.constant 0 : index
    %404 = vector.load %arg23[%c0_275, %c0_276, %c0_277] : memref<2x1x32xf32, #tpu.memory_space<vmem>>, vector<1x1x32xf32>
    %405 = vector.shape_cast %404 : vector<1x1x32xf32> to vector<1x32xf32>
    %406 = vector.broadcast %405 : vector<1x32xf32> to vector<16x32xf32>
    %407 = arith.addf %403, %406 : vector<16x32xf32>
    %c0_278 = arith.constant 0 : index
    %c0_279 = arith.constant 0 : index
    %c0_280 = arith.constant 0 : index
    %408 = vector.load %arg24[%c0_278, %c0_279, %c0_280] : memref<2x32x32xf32, #tpu.memory_space<vmem>>, vector<1x32x32xf32>
    %409 = vector.shape_cast %408 : vector<1x32x32xf32> to vector<32x32xf32>
    %cst_281 = arith.constant dense<0.000000e+00> : vector<16x32xf32>
    %410 = tpu.matmul %400, %409, %cst_281 {dimension_numbers = #tpu.dot_dimension_numbers<[1], [0], [0], [1], [0, 0, 1, 1], [], []>} : vector<16x32xf32>, vector<32x32xf32>, vector<16x32xf32> -> vector<16x32xf32>
    %c0_282 = arith.constant 0 : index
    %c0_283 = arith.constant 0 : index
    %c0_284 = arith.constant 0 : index
    %411 = vector.load %arg25[%c0_282, %c0_283, %c0_284] : memref<2x1x32xf32, #tpu.memory_space<vmem>>, vector<1x1x32xf32>
    %412 = vector.shape_cast %411 : vector<1x1x32xf32> to vector<1x32xf32>
    %413 = vector.broadcast %412 : vector<1x32xf32> to vector<16x32xf32>
    %414 = arith.addf %410, %413 : vector<16x32xf32>
    %415 = arith.addf %361, %407 : vector<16x32xf32>
    %cst_285 = arith.constant 0.707106769 : f32
    %416 = vector.broadcast %cst_285 : f32 to vector<16x32xf32>
    %417 = arith.mulf %415, %416 : vector<16x32xf32>
    %418 = arith.addf %362, %414 : vector<16x32xf32>
    %c1_286 = arith.constant 1 : index
    %c0_287 = arith.constant 0 : index
    %c0_288 = arith.constant 0 : index
    %419 = vector.load %arg12[%c1_286, %c0_287, %c0_288] : memref<2x32x32xf32, #tpu.memory_space<vmem>>, vector<1x32x32xf32>
    %420 = vector.shape_cast %419 : vector<1x32x32xf32> to vector<32x32xf32>
    %cst_289 = arith.constant dense<0.000000e+00> : vector<1x32xf32>
    %421 = tpu.matmul %354, %420, %cst_289 {dimension_numbers = #tpu.dot_dimension_numbers<[1], [0], [0], [1], [0, 0, 1, 1], [], []>} : vector<1x32xf32>, vector<32x32xf32>, vector<1x32xf32> -> vector<1x32xf32>
    %c1_290 = arith.constant 1 : index
    %c0_291 = arith.constant 0 : index
    %c0_292 = arith.constant 0 : index
    %422 = vector.load %arg13[%c1_290, %c0_291, %c0_292] : memref<2x1x32xf32, #tpu.memory_space<vmem>>, vector<1x1x32xf32>
    %423 = vector.shape_cast %422 : vector<1x1x32xf32> to vector<1x32xf32>
    %424 = arith.addf %421, %423 : vector<1x32xf32>
    %425 = vector.broadcast %424 : vector<1x32xf32> to vector<16x32xf32>
    %426 = arith.addf %417, %425 : vector<16x32xf32>
    %c1_i32_293 = arith.constant 1 : i32
    %427 = tpu.dynamic_rotate %426 by %c1_i32_293 dim 0 : vector<16x32xf32>, i32 -> vector<16x32xf32>
    %428 = vector.broadcast %73 : vector<16x1xf32> to vector<16x32xf32>
    %429 = arith.mulf %427, %428 : vector<16x32xf32>
    %c15_i32_294 = arith.constant 15 : i32
    %430 = tpu.dynamic_rotate %426 by %c15_i32_294 dim 0 : vector<16x32xf32>, i32 -> vector<16x32xf32>
    %431 = vector.broadcast %93 : vector<16x1xf32> to vector<16x32xf32>
    %432 = arith.mulf %430, %431 : vector<16x32xf32>
    %433 = tpu.concatenate %429, %426, %432 in 1 : vector<16x32xf32>, vector<16x32xf32>, vector<16x32xf32> -> vector<16x96xf32>
    %c1_295 = arith.constant 1 : index
    %c0_296 = arith.constant 0 : index
    %c0_297 = arith.constant 0 : index
    %434 = vector.load %arg14[%c1_295, %c0_296, %c0_297] : memref<2x96x32xf32, #tpu.memory_space<vmem>>, vector<1x96x32xf32>
    %435 = vector.shape_cast %434 : vector<1x96x32xf32> to vector<96x32xf32>
    %cst_298 = arith.constant dense<0.000000e+00> : vector<16x32xf32>
    %436 = tpu.matmul %433, %435, %cst_298 {dimension_numbers = #tpu.dot_dimension_numbers<[1], [0], [0], [1], [0, 0, 1, 1], [], []>} : vector<16x96xf32>, vector<96x32xf32>, vector<16x32xf32> -> vector<16x32xf32>
    %c1_299 = arith.constant 1 : index
    %c0_300 = arith.constant 0 : index
    %c0_301 = arith.constant 0 : index
    %437 = vector.load %arg15[%c1_299, %c0_300, %c0_301] : memref<2x1x32xf32, #tpu.memory_space<vmem>>, vector<1x1x32xf32>
    %438 = vector.shape_cast %437 : vector<1x1x32xf32> to vector<1x32xf32>
    %439 = vector.broadcast %438 : vector<1x32xf32> to vector<16x32xf32>
    %440 = arith.addf %436, %439 : vector<16x32xf32>
    %441 = arith.addf %440, %38 : vector<16x32xf32>
    %c1_302 = arith.constant 1 : index
    %c0_303 = arith.constant 0 : index
    %c0_304 = arith.constant 0 : index
    %442 = vector.load %arg16[%c1_302, %c0_303, %c0_304] : memref<2x96x32xf32, #tpu.memory_space<vmem>>, vector<1x96x32xf32>
    %443 = vector.shape_cast %442 : vector<1x96x32xf32> to vector<96x32xf32>
    %cst_305 = arith.constant dense<0.000000e+00> : vector<16x32xf32>
    %444 = tpu.matmul %433, %443, %cst_305 {dimension_numbers = #tpu.dot_dimension_numbers<[1], [0], [0], [1], [0, 0, 1, 1], [], []>} : vector<16x96xf32>, vector<96x32xf32>, vector<16x32xf32> -> vector<16x32xf32>
    %c1_306 = arith.constant 1 : index
    %c0_307 = arith.constant 0 : index
    %c0_308 = arith.constant 0 : index
    %445 = vector.load %arg17[%c1_306, %c0_307, %c0_308] : memref<2x1x32xf32, #tpu.memory_space<vmem>>, vector<1x1x32xf32>
    %446 = vector.shape_cast %445 : vector<1x1x32xf32> to vector<1x32xf32>
    %447 = vector.broadcast %446 : vector<1x32xf32> to vector<16x32xf32>
    %448 = arith.addf %444, %447 : vector<16x32xf32>
    %449 = arith.addf %448, %52 : vector<16x32xf32>
    %450 = arith.negf %441 : vector<16x32xf32>
    %451 = math.exp %450 : vector<16x32xf32>
    %cst_309 = arith.constant 1.000000e+00 : f32
    %452 = vector.broadcast %cst_309 : f32 to vector<16x32xf32>
    %453 = arith.addf %452, %451 : vector<16x32xf32>
    %454 = arith.divf %452, %453 : vector<16x32xf32>
    %455 = math.tanh %449 : vector<16x32xf32>
    %456 = arith.mulf %454, %455 : vector<16x32xf32>
    %c1_310 = arith.constant 1 : index
    %c0_311 = arith.constant 0 : index
    %c0_312 = arith.constant 0 : index
    %457 = vector.load %arg24[%c1_310, %c0_311, %c0_312] : memref<2x32x32xf32, #tpu.memory_space<vmem>>, vector<1x32x32xf32>
    %458 = vector.shape_cast %457 : vector<1x32x32xf32> to vector<32x32xf32>
    %cst_313 = arith.constant dense<0.000000e+00> : vector<16x32xf32>
    %459 = tpu.matmul %456, %458, %cst_313 {dimension_numbers = #tpu.dot_dimension_numbers<[1], [0], [0], [1], [0, 0, 1, 1], [], []>} : vector<16x32xf32>, vector<32x32xf32>, vector<16x32xf32> -> vector<16x32xf32>
    %c1_314 = arith.constant 1 : index
    %c0_315 = arith.constant 0 : index
    %c0_316 = arith.constant 0 : index
    %460 = vector.load %arg25[%c1_314, %c0_315, %c0_316] : memref<2x1x32xf32, #tpu.memory_space<vmem>>, vector<1x1x32xf32>
    %461 = vector.shape_cast %460 : vector<1x1x32xf32> to vector<1x32xf32>
    %462 = vector.broadcast %461 : vector<1x32xf32> to vector<16x32xf32>
    %463 = arith.addf %459, %462 : vector<16x32xf32>
    %464 = arith.addf %418, %463 : vector<16x32xf32>
    %cst_317 = arith.constant 0.707106769 : f32
    %465 = vector.broadcast %cst_317 : f32 to vector<16x32xf32>
    %466 = arith.mulf %464, %465 : vector<16x32xf32>
    %c0_318 = arith.constant 0 : index
    %c0_319 = arith.constant 0 : index
    %467 = vector.load %arg26[%c0_318, %c0_319] : memref<32x32xf32, #tpu.memory_space<vmem>>, vector<32x32xf32>
    %cst_320 = arith.constant dense<0.000000e+00> : vector<16x32xf32>
    %468 = tpu.matmul %466, %467, %cst_320 {dimension_numbers = #tpu.dot_dimension_numbers<[1], [0], [0], [1], [0, 0, 1, 1], [], []>} : vector<16x32xf32>, vector<32x32xf32>, vector<16x32xf32> -> vector<16x32xf32>
    %c0_321 = arith.constant 0 : index
    %c0_322 = arith.constant 0 : index
    %469 = vector.load %arg27[%c0_321, %c0_322] : memref<1x32xf32, #tpu.memory_space<vmem>>, vector<1x32xf32>
    %470 = vector.broadcast %469 : vector<1x32xf32> to vector<16x32xf32>
    %471 = arith.addf %468, %470 : vector<16x32xf32>
    %cst_323 = arith.constant 0.000000e+00 : f32
    %472 = vector.broadcast %cst_323 : f32 to vector<16x32xf32>
    %473 = arith.maximumf %471, %472 : vector<16x32xf32>
    %c0_324 = arith.constant 0 : index
    %c0_325 = arith.constant 0 : index
    %474 = vector.load %arg28[%c0_324, %c0_325] : memref<32x16xf32, #tpu.memory_space<vmem>>, vector<32x16xf32>
    %cst_326 = arith.constant dense<0.000000e+00> : vector<16x16xf32>
    %475 = tpu.matmul %473, %474, %cst_326 {dimension_numbers = #tpu.dot_dimension_numbers<[1], [0], [0], [1], [0, 0, 1, 1], [], []>} : vector<16x32xf32>, vector<32x16xf32>, vector<16x16xf32> -> vector<16x16xf32>
    %c0_327 = arith.constant 0 : index
    %c0_328 = arith.constant 0 : index
    %476 = vector.load %arg29[%c0_327, %c0_328] : memref<1x16xf32, #tpu.memory_space<vmem>>, vector<1x16xf32>
    %477 = vector.broadcast %476 : vector<1x16xf32> to vector<16x16xf32>
    %478 = arith.addf %475, %477 : vector<16x16xf32>
    %cst_329 = arith.constant 2.500000e-01 : f32
    %479 = vector.broadcast %cst_329 : f32 to vector<16x16xf32>
    %480 = arith.mulf %478, %479 : vector<16x16xf32>
    %481 = arith.addf %352, %480 : vector<16x16xf32>
    %c3_i32 = arith.constant 3 : i32
    %482 = arith.index_cast %c3_i32 : i32 to index
    %c0_330 = arith.constant 0 : index
    %483 = vector.load %arg5[%482, %c0_330] : memref<4x32xf32, #tpu.memory_space<vmem>>, vector<1x32xf32>
    %c0_331 = arith.constant 0 : index
    %c0_332 = arith.constant 0 : index
    %484 = vector.load %arg10[%c0_331, %c0_332] : memref<16x32xf32, #tpu.memory_space<vmem>>, vector<16x32xf32>
    %cst_333 = arith.constant dense<0.000000e+00> : vector<16x32xf32>
    %485 = tpu.matmul %481, %484, %cst_333 {dimension_numbers = #tpu.dot_dimension_numbers<[1], [0], [0], [1], [0, 0, 1, 1], [], []>} : vector<16x16xf32>, vector<16x32xf32>, vector<16x32xf32> -> vector<16x32xf32>
    %c0_334 = arith.constant 0 : index
    %c0_335 = arith.constant 0 : index
    %486 = vector.load %arg11[%c0_334, %c0_335] : memref<1x32xf32, #tpu.memory_space<vmem>>, vector<1x32xf32>
    %487 = vector.broadcast %486 : vector<1x32xf32> to vector<16x32xf32>
    %488 = arith.addf %485, %487 : vector<16x32xf32>
    %cst_336 = arith.constant 0.000000e+00 : f32
    %489 = vector.broadcast %cst_336 : f32 to vector<16x32xf32>
    %490 = arith.maximumf %488, %489 : vector<16x32xf32>
    %cst_337 = arith.constant 0.000000e+00 : f32
    %491 = vector.broadcast %cst_337 : f32 to vector<16x32xf32>
    %c0_338 = arith.constant 0 : index
    %c0_339 = arith.constant 0 : index
    %c0_340 = arith.constant 0 : index
    %492 = vector.load %arg12[%c0_338, %c0_339, %c0_340] : memref<2x32x32xf32, #tpu.memory_space<vmem>>, vector<1x32x32xf32>
    %493 = vector.shape_cast %492 : vector<1x32x32xf32> to vector<32x32xf32>
    %cst_341 = arith.constant dense<0.000000e+00> : vector<1x32xf32>
    %494 = tpu.matmul %483, %493, %cst_341 {dimension_numbers = #tpu.dot_dimension_numbers<[1], [0], [0], [1], [0, 0, 1, 1], [], []>} : vector<1x32xf32>, vector<32x32xf32>, vector<1x32xf32> -> vector<1x32xf32>
    %c0_342 = arith.constant 0 : index
    %c0_343 = arith.constant 0 : index
    %c0_344 = arith.constant 0 : index
    %495 = vector.load %arg13[%c0_342, %c0_343, %c0_344] : memref<2x1x32xf32, #tpu.memory_space<vmem>>, vector<1x1x32xf32>
    %496 = vector.shape_cast %495 : vector<1x1x32xf32> to vector<1x32xf32>
    %497 = arith.addf %494, %496 : vector<1x32xf32>
    %498 = vector.broadcast %497 : vector<1x32xf32> to vector<16x32xf32>
    %499 = arith.addf %490, %498 : vector<16x32xf32>
    %c1_i32_345 = arith.constant 1 : i32
    %500 = tpu.dynamic_rotate %499 by %c1_i32_345 dim 0 : vector<16x32xf32>, i32 -> vector<16x32xf32>
    %501 = vector.broadcast %73 : vector<16x1xf32> to vector<16x32xf32>
    %502 = arith.mulf %500, %501 : vector<16x32xf32>
    %c15_i32_346 = arith.constant 15 : i32
    %503 = tpu.dynamic_rotate %499 by %c15_i32_346 dim 0 : vector<16x32xf32>, i32 -> vector<16x32xf32>
    %504 = vector.broadcast %93 : vector<16x1xf32> to vector<16x32xf32>
    %505 = arith.mulf %503, %504 : vector<16x32xf32>
    %506 = tpu.concatenate %502, %499, %505 in 1 : vector<16x32xf32>, vector<16x32xf32>, vector<16x32xf32> -> vector<16x96xf32>
    %c0_347 = arith.constant 0 : index
    %c0_348 = arith.constant 0 : index
    %c0_349 = arith.constant 0 : index
    %507 = vector.load %arg14[%c0_347, %c0_348, %c0_349] : memref<2x96x32xf32, #tpu.memory_space<vmem>>, vector<1x96x32xf32>
    %508 = vector.shape_cast %507 : vector<1x96x32xf32> to vector<96x32xf32>
    %cst_350 = arith.constant dense<0.000000e+00> : vector<16x32xf32>
    %509 = tpu.matmul %506, %508, %cst_350 {dimension_numbers = #tpu.dot_dimension_numbers<[1], [0], [0], [1], [0, 0, 1, 1], [], []>} : vector<16x96xf32>, vector<96x32xf32>, vector<16x32xf32> -> vector<16x32xf32>
    %c0_351 = arith.constant 0 : index
    %c0_352 = arith.constant 0 : index
    %c0_353 = arith.constant 0 : index
    %510 = vector.load %arg15[%c0_351, %c0_352, %c0_353] : memref<2x1x32xf32, #tpu.memory_space<vmem>>, vector<1x1x32xf32>
    %511 = vector.shape_cast %510 : vector<1x1x32xf32> to vector<1x32xf32>
    %512 = vector.broadcast %511 : vector<1x32xf32> to vector<16x32xf32>
    %513 = arith.addf %509, %512 : vector<16x32xf32>
    %514 = arith.addf %513, %31 : vector<16x32xf32>
    %c0_354 = arith.constant 0 : index
    %c0_355 = arith.constant 0 : index
    %c0_356 = arith.constant 0 : index
    %515 = vector.load %arg16[%c0_354, %c0_355, %c0_356] : memref<2x96x32xf32, #tpu.memory_space<vmem>>, vector<1x96x32xf32>
    %516 = vector.shape_cast %515 : vector<1x96x32xf32> to vector<96x32xf32>
    %cst_357 = arith.constant dense<0.000000e+00> : vector<16x32xf32>
    %517 = tpu.matmul %506, %516, %cst_357 {dimension_numbers = #tpu.dot_dimension_numbers<[1], [0], [0], [1], [0, 0, 1, 1], [], []>} : vector<16x96xf32>, vector<96x32xf32>, vector<16x32xf32> -> vector<16x32xf32>
    %c0_358 = arith.constant 0 : index
    %c0_359 = arith.constant 0 : index
    %c0_360 = arith.constant 0 : index
    %518 = vector.load %arg17[%c0_358, %c0_359, %c0_360] : memref<2x1x32xf32, #tpu.memory_space<vmem>>, vector<1x1x32xf32>
    %519 = vector.shape_cast %518 : vector<1x1x32xf32> to vector<1x32xf32>
    %520 = vector.broadcast %519 : vector<1x32xf32> to vector<16x32xf32>
    %521 = arith.addf %517, %520 : vector<16x32xf32>
    %522 = arith.addf %521, %45 : vector<16x32xf32>
    %523 = arith.negf %514 : vector<16x32xf32>
    %524 = math.exp %523 : vector<16x32xf32>
    %cst_361 = arith.constant 1.000000e+00 : f32
    %525 = vector.broadcast %cst_361 : f32 to vector<16x32xf32>
    %526 = arith.addf %525, %524 : vector<16x32xf32>
    %527 = arith.divf %525, %526 : vector<16x32xf32>
    %528 = math.tanh %522 : vector<16x32xf32>
    %529 = arith.mulf %527, %528 : vector<16x32xf32>
    %c0_362 = arith.constant 0 : index
    %c0_363 = arith.constant 0 : index
    %c0_364 = arith.constant 0 : index
    %530 = vector.load %arg22[%c0_362, %c0_363, %c0_364] : memref<2x32x32xf32, #tpu.memory_space<vmem>>, vector<1x32x32xf32>
    %531 = vector.shape_cast %530 : vector<1x32x32xf32> to vector<32x32xf32>
    %cst_365 = arith.constant dense<0.000000e+00> : vector<16x32xf32>
    %532 = tpu.matmul %529, %531, %cst_365 {dimension_numbers = #tpu.dot_dimension_numbers<[1], [0], [0], [1], [0, 0, 1, 1], [], []>} : vector<16x32xf32>, vector<32x32xf32>, vector<16x32xf32> -> vector<16x32xf32>
    %c0_366 = arith.constant 0 : index
    %c0_367 = arith.constant 0 : index
    %c0_368 = arith.constant 0 : index
    %533 = vector.load %arg23[%c0_366, %c0_367, %c0_368] : memref<2x1x32xf32, #tpu.memory_space<vmem>>, vector<1x1x32xf32>
    %534 = vector.shape_cast %533 : vector<1x1x32xf32> to vector<1x32xf32>
    %535 = vector.broadcast %534 : vector<1x32xf32> to vector<16x32xf32>
    %536 = arith.addf %532, %535 : vector<16x32xf32>
    %c0_369 = arith.constant 0 : index
    %c0_370 = arith.constant 0 : index
    %c0_371 = arith.constant 0 : index
    %537 = vector.load %arg24[%c0_369, %c0_370, %c0_371] : memref<2x32x32xf32, #tpu.memory_space<vmem>>, vector<1x32x32xf32>
    %538 = vector.shape_cast %537 : vector<1x32x32xf32> to vector<32x32xf32>
    %cst_372 = arith.constant dense<0.000000e+00> : vector<16x32xf32>
    %539 = tpu.matmul %529, %538, %cst_372 {dimension_numbers = #tpu.dot_dimension_numbers<[1], [0], [0], [1], [0, 0, 1, 1], [], []>} : vector<16x32xf32>, vector<32x32xf32>, vector<16x32xf32> -> vector<16x32xf32>
    %c0_373 = arith.constant 0 : index
    %c0_374 = arith.constant 0 : index
    %c0_375 = arith.constant 0 : index
    %540 = vector.load %arg25[%c0_373, %c0_374, %c0_375] : memref<2x1x32xf32, #tpu.memory_space<vmem>>, vector<1x1x32xf32>
    %541 = vector.shape_cast %540 : vector<1x1x32xf32> to vector<1x32xf32>
    %542 = vector.broadcast %541 : vector<1x32xf32> to vector<16x32xf32>
    %543 = arith.addf %539, %542 : vector<16x32xf32>
    %544 = arith.addf %490, %536 : vector<16x32xf32>
    %cst_376 = arith.constant 0.707106769 : f32
    %545 = vector.broadcast %cst_376 : f32 to vector<16x32xf32>
    %546 = arith.mulf %544, %545 : vector<16x32xf32>
    %547 = arith.addf %491, %543 : vector<16x32xf32>
    %c1_377 = arith.constant 1 : index
    %c0_378 = arith.constant 0 : index
    %c0_379 = arith.constant 0 : index
    %548 = vector.load %arg12[%c1_377, %c0_378, %c0_379] : memref<2x32x32xf32, #tpu.memory_space<vmem>>, vector<1x32x32xf32>
    %549 = vector.shape_cast %548 : vector<1x32x32xf32> to vector<32x32xf32>
    %cst_380 = arith.constant dense<0.000000e+00> : vector<1x32xf32>
    %550 = tpu.matmul %483, %549, %cst_380 {dimension_numbers = #tpu.dot_dimension_numbers<[1], [0], [0], [1], [0, 0, 1, 1], [], []>} : vector<1x32xf32>, vector<32x32xf32>, vector<1x32xf32> -> vector<1x32xf32>
    %c1_381 = arith.constant 1 : index
    %c0_382 = arith.constant 0 : index
    %c0_383 = arith.constant 0 : index
    %551 = vector.load %arg13[%c1_381, %c0_382, %c0_383] : memref<2x1x32xf32, #tpu.memory_space<vmem>>, vector<1x1x32xf32>
    %552 = vector.shape_cast %551 : vector<1x1x32xf32> to vector<1x32xf32>
    %553 = arith.addf %550, %552 : vector<1x32xf32>
    %554 = vector.broadcast %553 : vector<1x32xf32> to vector<16x32xf32>
    %555 = arith.addf %546, %554 : vector<16x32xf32>
    %c1_i32_384 = arith.constant 1 : i32
    %556 = tpu.dynamic_rotate %555 by %c1_i32_384 dim 0 : vector<16x32xf32>, i32 -> vector<16x32xf32>
    %557 = vector.broadcast %73 : vector<16x1xf32> to vector<16x32xf32>
    %558 = arith.mulf %556, %557 : vector<16x32xf32>
    %c15_i32_385 = arith.constant 15 : i32
    %559 = tpu.dynamic_rotate %555 by %c15_i32_385 dim 0 : vector<16x32xf32>, i32 -> vector<16x32xf32>
    %560 = vector.broadcast %93 : vector<16x1xf32> to vector<16x32xf32>
    %561 = arith.mulf %559, %560 : vector<16x32xf32>
    %562 = tpu.concatenate %558, %555, %561 in 1 : vector<16x32xf32>, vector<16x32xf32>, vector<16x32xf32> -> vector<16x96xf32>
    %c1_386 = arith.constant 1 : index
    %c0_387 = arith.constant 0 : index
    %c0_388 = arith.constant 0 : index
    %563 = vector.load %arg14[%c1_386, %c0_387, %c0_388] : memref<2x96x32xf32, #tpu.memory_space<vmem>>, vector<1x96x32xf32>
    %564 = vector.shape_cast %563 : vector<1x96x32xf32> to vector<96x32xf32>
    %cst_389 = arith.constant dense<0.000000e+00> : vector<16x32xf32>
    %565 = tpu.matmul %562, %564, %cst_389 {dimension_numbers = #tpu.dot_dimension_numbers<[1], [0], [0], [1], [0, 0, 1, 1], [], []>} : vector<16x96xf32>, vector<96x32xf32>, vector<16x32xf32> -> vector<16x32xf32>
    %c1_390 = arith.constant 1 : index
    %c0_391 = arith.constant 0 : index
    %c0_392 = arith.constant 0 : index
    %566 = vector.load %arg15[%c1_390, %c0_391, %c0_392] : memref<2x1x32xf32, #tpu.memory_space<vmem>>, vector<1x1x32xf32>
    %567 = vector.shape_cast %566 : vector<1x1x32xf32> to vector<1x32xf32>
    %568 = vector.broadcast %567 : vector<1x32xf32> to vector<16x32xf32>
    %569 = arith.addf %565, %568 : vector<16x32xf32>
    %570 = arith.addf %569, %38 : vector<16x32xf32>
    %c1_393 = arith.constant 1 : index
    %c0_394 = arith.constant 0 : index
    %c0_395 = arith.constant 0 : index
    %571 = vector.load %arg16[%c1_393, %c0_394, %c0_395] : memref<2x96x32xf32, #tpu.memory_space<vmem>>, vector<1x96x32xf32>
    %572 = vector.shape_cast %571 : vector<1x96x32xf32> to vector<96x32xf32>
    %cst_396 = arith.constant dense<0.000000e+00> : vector<16x32xf32>
    %573 = tpu.matmul %562, %572, %cst_396 {dimension_numbers = #tpu.dot_dimension_numbers<[1], [0], [0], [1], [0, 0, 1, 1], [], []>} : vector<16x96xf32>, vector<96x32xf32>, vector<16x32xf32> -> vector<16x32xf32>
    %c1_397 = arith.constant 1 : index
    %c0_398 = arith.constant 0 : index
    %c0_399 = arith.constant 0 : index
    %574 = vector.load %arg17[%c1_397, %c0_398, %c0_399] : memref<2x1x32xf32, #tpu.memory_space<vmem>>, vector<1x1x32xf32>
    %575 = vector.shape_cast %574 : vector<1x1x32xf32> to vector<1x32xf32>
    %576 = vector.broadcast %575 : vector<1x32xf32> to vector<16x32xf32>
    %577 = arith.addf %573, %576 : vector<16x32xf32>
    %578 = arith.addf %577, %52 : vector<16x32xf32>
    %579 = arith.negf %570 : vector<16x32xf32>
    %580 = math.exp %579 : vector<16x32xf32>
    %cst_400 = arith.constant 1.000000e+00 : f32
    %581 = vector.broadcast %cst_400 : f32 to vector<16x32xf32>
    %582 = arith.addf %581, %580 : vector<16x32xf32>
    %583 = arith.divf %581, %582 : vector<16x32xf32>
    %584 = math.tanh %578 : vector<16x32xf32>
    %585 = arith.mulf %583, %584 : vector<16x32xf32>
    %c1_401 = arith.constant 1 : index
    %c0_402 = arith.constant 0 : index
    %c0_403 = arith.constant 0 : index
    %586 = vector.load %arg24[%c1_401, %c0_402, %c0_403] : memref<2x32x32xf32, #tpu.memory_space<vmem>>, vector<1x32x32xf32>
    %587 = vector.shape_cast %586 : vector<1x32x32xf32> to vector<32x32xf32>
    %cst_404 = arith.constant dense<0.000000e+00> : vector<16x32xf32>
    %588 = tpu.matmul %585, %587, %cst_404 {dimension_numbers = #tpu.dot_dimension_numbers<[1], [0], [0], [1], [0, 0, 1, 1], [], []>} : vector<16x32xf32>, vector<32x32xf32>, vector<16x32xf32> -> vector<16x32xf32>
    %c1_405 = arith.constant 1 : index
    %c0_406 = arith.constant 0 : index
    %c0_407 = arith.constant 0 : index
    %589 = vector.load %arg25[%c1_405, %c0_406, %c0_407] : memref<2x1x32xf32, #tpu.memory_space<vmem>>, vector<1x1x32xf32>
    %590 = vector.shape_cast %589 : vector<1x1x32xf32> to vector<1x32xf32>
    %591 = vector.broadcast %590 : vector<1x32xf32> to vector<16x32xf32>
    %592 = arith.addf %588, %591 : vector<16x32xf32>
    %593 = arith.addf %547, %592 : vector<16x32xf32>
    %cst_408 = arith.constant 0.707106769 : f32
    %594 = vector.broadcast %cst_408 : f32 to vector<16x32xf32>
    %595 = arith.mulf %593, %594 : vector<16x32xf32>
    %c0_409 = arith.constant 0 : index
    %c0_410 = arith.constant 0 : index
    %596 = vector.load %arg26[%c0_409, %c0_410] : memref<32x32xf32, #tpu.memory_space<vmem>>, vector<32x32xf32>
    %cst_411 = arith.constant dense<0.000000e+00> : vector<16x32xf32>
    %597 = tpu.matmul %595, %596, %cst_411 {dimension_numbers = #tpu.dot_dimension_numbers<[1], [0], [0], [1], [0, 0, 1, 1], [], []>} : vector<16x32xf32>, vector<32x32xf32>, vector<16x32xf32> -> vector<16x32xf32>
    %c0_412 = arith.constant 0 : index
    %c0_413 = arith.constant 0 : index
    %598 = vector.load %arg27[%c0_412, %c0_413] : memref<1x32xf32, #tpu.memory_space<vmem>>, vector<1x32xf32>
    %599 = vector.broadcast %598 : vector<1x32xf32> to vector<16x32xf32>
    %600 = arith.addf %597, %599 : vector<16x32xf32>
    %cst_414 = arith.constant 0.000000e+00 : f32
    %601 = vector.broadcast %cst_414 : f32 to vector<16x32xf32>
    %602 = arith.maximumf %600, %601 : vector<16x32xf32>
    %c0_415 = arith.constant 0 : index
    %c0_416 = arith.constant 0 : index
    %603 = vector.load %arg28[%c0_415, %c0_416] : memref<32x16xf32, #tpu.memory_space<vmem>>, vector<32x16xf32>
    %cst_417 = arith.constant dense<0.000000e+00> : vector<16x16xf32>
    %604 = tpu.matmul %602, %603, %cst_417 {dimension_numbers = #tpu.dot_dimension_numbers<[1], [0], [0], [1], [0, 0, 1, 1], [], []>} : vector<16x32xf32>, vector<32x16xf32>, vector<16x16xf32> -> vector<16x16xf32>
    %c0_418 = arith.constant 0 : index
    %c0_419 = arith.constant 0 : index
    %605 = vector.load %arg29[%c0_418, %c0_419] : memref<1x16xf32, #tpu.memory_space<vmem>>, vector<1x16xf32>
    %606 = vector.broadcast %605 : vector<1x16xf32> to vector<16x16xf32>
    %607 = arith.addf %604, %606 : vector<16x16xf32>
    %cst_420 = arith.constant 2.500000e-01 : f32
    %608 = vector.broadcast %cst_420 : f32 to vector<16x16xf32>
    %609 = arith.mulf %607, %608 : vector<16x16xf32>
    %610 = arith.addf %481, %609 : vector<16x16xf32>
    %c4_i32 = arith.constant 4 : i32
    %cst_421 = arith.constant 1.000000e+00 : f32
    %611 = vector.broadcast %cst_421 : f32 to vector<16x16xf32>
    %612 = arith.addf %610, %611 : vector<16x16xf32>
    %cst_422 = arith.constant 7.000000e+00 : f32
    %613 = vector.broadcast %cst_422 : f32 to vector<16x16xf32>
    %614 = arith.mulf %612, %613 : vector<16x16xf32>
    %cst_423 = arith.constant -1.200000e+01 : f32
    %615 = vector.broadcast %cst_423 : f32 to vector<16x16xf32>
    %616 = arith.addf %614, %615 : vector<16x16xf32>
    %c0_424 = arith.constant 0 : index
    %c0_425 = arith.constant 0 : index
    %617 = vector.load %arg30[%c0_424, %c0_425] : memref<16x16xf32, #tpu.memory_space<vmem>>, vector<16x16xf32>
    tpu.vector_store %arg30[%c0_424, %c0_425], %616 {strides = array<i32>} : memref<16x16xf32, #tpu.memory_space<vmem>>, vector<16x16xf32>,
    return
  }
}

</mosaic_0001>

<bundles_post_ra>
// kernel: unit2mel_v2_reflow_forward.1
= control target key start
LH: loop header
LB: loop body
LE: loop exit
PB: predicated region body
PF: predicated region fallthrough
CT: control target
= control target key end

     0   :  { %s7478_s6 = smov 1   ;;  %s7479_s10 = smov 2   ;;  %s8827_s0 = inlined_call_operand.smem [shape: u32[31], index: -1, kind: input, shape index: {}] }
   0x1   :  { %s7525_s5 = sld [smem:[%s8827_s0]]   ;;  %s7480_s14 = smov 3  }
   0x2   :  { %s7530_s9 = sld [smem:[%s8827_s0 + %s7478_s6]]   ;;  %s7481_s18 = smov 4  }
   0x3   :  { %s7535_s13 = sld [smem:[%s8827_s0 + %s7479_s10]]   ;;  %s7482_s22 = smov 5  }
   0x4   :  { %s7540_s17 = sld [smem:[%s8827_s0 + %s7480_s14]]   ;;  %s7483_s26 = smov 6  }
   0x5   :  { %s7545_s21 = sld [smem:[%s8827_s0 + %s7481_s18]]   ;;  %s7484_s30 = smov 7  }
   0x6   :  { %s7550_s25 = sld [smem:[%s8827_s0 + %s7482_s22]]   ;;  %s7485_s4 = smov 8  }
   0x7   :  { %s7555_s29 = sld [smem:[%s8827_s0 + %s7483_s26]]   ;;  %s7486_s10 = smov 9  }
   0x8   :  { %s7560_s3 = sld [smem:[%s8827_s0 + %s7484_s30]]   ;;  %s7487_s15 = smov 10  }
   0x9   :  { %s7565_s8 = sld [smem:[%s8827_s0 + %s7485_s4]]   ;;  %s7488_s20 = smov 11  }
   0xa   :  { %s7570_s14 = sld [smem:[%s8827_s0 + %s7486_s10]]   ;;  %s7489_s26 = smov 12  }
   0xb   :  { %s7575_s19 = sld [smem:[%s8827_s0 + %s7487_s15]]   ;;  %s7490_s1 = smov 13  }
   0xc   :  { %s7580_s24 = sld [smem:[%s8827_s0 + %s7488_s20]]   ;;  %s7491_s7 = smov 14  }
   0xd   :  { %s7585_s30 = sld [smem:[%s8827_s0 + %s7489_s26]]   ;;  %s7492_s15 = smov 15  }
   0xe   :  { %s7590_s6 = sld [smem:[%s8827_s0 + %s7490_s1]]   ;;  %s7493_s22 = smov 16  }
   0xf   :  { %s7595_s12 = sld [smem:[%s8827_s0 + %s7491_s7]]   ;;  %s7494_s28 = smov 17  }
  0x10   :  { %s7600_s20 = sld [smem:[%s8827_s0 + %s7492_s15]]   ;;  %s7495_s7 = smov 18  }
  0x11   :  { %s7605_s27 = sld [smem:[%s8827_s0 + %s7493_s22]]   ;;  %s7496_s15 = smov 19  }
  0x12   :  { %8920 = sst [smem:[#allocation5_spill]] %s7580_s24  ;;  %s7497_s22 = smov 20  }
  0x13   :  { %s7610_s4 = sld [smem:[%s8827_s0 + %s7494_s28]]   ;;  %s7498_s28 = smov 21  }
  0x14   :  { %8921 = sst [smem:[#allocation6_spill]] %s7590_s6 }
  0x15   :  { %8922 = sst [smem:[#allocation7_spill]] %s7595_s12 }
  0x16   :  { %8923 = sst [smem:[#allocation8_spill]] %s7600_s20 }
  0x17   :  { %8924 = sst [smem:[#allocation9_spill]] %s7605_s27 }
  0x18   :  { %s7615_s6 = sld [smem:[%s8827_s0 + %s7495_s7]]   ;;  %s7499_s7 = smov 22  }
  0x19   :  { %8925 = sst [smem:[#allocation10_spill]] %s7610_s4 }
  0x1a   :  { %s7620_s20 = sld [smem:[%s8827_s0 + %s7496_s15]]   ;;  %s7500_s15 = smov 23  }
  0x1b   :  { %s7625_s24 = sld [smem:[%s8827_s0 + %s7497_s22]]   ;;  %s7501_s22 = smov 24  }
  0x1c   :  { %s7630_s4 = sld [smem:[%s8827_s0 + %s7498_s28]]   ;;  %s7502_s28 = smov 25  }
  0x1d   :  { %s7635_s27 = sld [smem:[%s8827_s0 + %s7499_s7]]   ;;  %s7503_s7 = smov 26  }
  0x1e   :  { %s7645_s12 = sld [smem:[%s8827_s0 + %s7501_s22]]   ;;  %s7505_s22 = smov 28  }
  0x20   :  { %8926 = sst [smem:[#allocation11_spill]] %s7620_s20 }
  0x21   :  { %s7640_s20 = sld [smem:[%s8827_s0 + %s7500_s15]]   ;;  %s7504_s15 = smov 27  }
  0x22   :  { %8927 = sst [smem:[#allocation12_spill]] %s7630_s4 }
  0x23   :  { %8928 = sst [smem:[#allocation13_spill]] %s7635_s27 }
  0x24   :  { %8930 = sst [smem:[#allocation15_spill]] %s7645_s12 }
  0x25   :  { %s7650_s4 = sld [smem:[%s8827_s0 + %s7502_s28]]   ;;  %s7506_s28 = smov 29  }
  0x26   :  { %s7655_s27 = sld [smem:[%s8827_s0 + %s7503_s7]]   ;;  %s7507_s7 = smov 30  }
  0x27   :  { %8929 = sst [smem:[#allocation14_spill]] %s7640_s20 }
  0x28   :  { %s7660_s20 = sld [smem:[%s8827_s0 + %s7504_s15]]  }
  0x29   :  { %s7665_s12 = sld [smem:[%s8827_s0 + %s7505_s22]]  }
  0x2b   :  { %8931 = sst [smem:[#allocation16_spill]] %s7650_s4 }
  0x2c   :  { %8932 = sst [smem:[#allocation17_spill]] %s7655_s27 }
  0x2d   :  { %s7670_s4 = sld [smem:[%s8827_s0 + %s7506_s28]]  }
  0x2e   :  { %s7675_s27 = sld [smem:[%s8827_s0 + %s7507_s7]]  }
  0x2f   :  { %v129_v0 = vld [vmem:[%s7555_s29] sm:$0xff]  ;;  %v130_v1 = vld [vmem:[%s7555_s29 + $0x8] sm:$0xff]  ;;  %v131_v2 = vld [vmem:[%s7555_s29 + $0x10] sm:$0xff]  ;;  %vm167_vm0 = vcmask 523264   ;;  %v7508_v5 = vmov 0  }
  0x30   :  { %v6623_v3 = vpack.c.bf16 %v130_v1, %v129_v0  ;;  %v132_v4 = vld [vmem:[%s7555_s29 + $0x18] sm:$0xff]  ;;  %7342 = vset.pattern.permute.xlu0 %v7508_v5  ;;  %7343 = vset.pattern.permute.xlu1 %v7508_v5  ;;  %v133_v7 = vld [vmem:[%s7555_s29 + $0x20] sm:$0xff]  ;;  %v134_v8 = vld [vmem:[%s7555_s29 + $0x28] sm:$0xff] }
  0x31   :  { %v6627_v6 = vpack.c.bf16 %v132_v4, %v131_v2  ;;  %v127_v9 = vld [vmem:[%s7525_s5] sm:$0xff]  ;;  %v138_v13 = vld [vmem:[%s7530_s9 + $0x8] sm:$0xff]  ;;  %v6631_v14 = vpack.c.bf16 %v134_v8, %v133_v7 }
  0x32   :  { %6624 = vmatprep.subr.bf16.mxu0 %v6623_v3  ;;  %5808 = vmatprep.mubr.msk.f32.mxu0 %vm167_vm0, %v127_v9  ;;  %v137_v10 = vld [vmem:[%s7530_s9] sm:$0xff]  ;;  %v141_v15 = vmul.f32 0.0014285714, %v138_v13  ;;  %v250_v16 = vld [vmem:[%s7535_s13 + $0x8] sm:$0xff] }
  0x33   :  { %v249_v11 = vld [vmem:[%s7535_s13] sm:$0xff]  ;;  %6626 = vmatpush3.bf16.msra.mxu0 %v6623_v3  ;;  %v140_v12 = vmul.f32 0.0014285714, %v137_v10 }
  0x34   :  { %254 = vperm.xlu1 %7343, %v249_v11   ;;  %6628 = vmatprep.subr.bf16.mxu0 %v6627_v6 }
  0x35   :  { %66 = vsyncpa [#allocation3], 0  ;;  %v135_v17 = vld [vmem:[%s7555_s29 + $0x30] sm:$0xff]  ;;  %v136_v18 = vld [vmem:[%s7555_s29 + $0x38] sm:$0xff]  ;;  %v142_v19 = vadd.f32 1.0, %v140_v12  ;;  %v143_v20 = vadd.f32 1.0, %v141_v15 }
  0x36   :  { %v6635_v21 = vpack.c.bf16 %v136_v18, %v135_v17  ;;  %v128_v22 = vld [vmem:[%s7525_s5 + $0x8] sm:$0xff]  ;;  %v285_v27 = vld [vmem:[%s7615_s6] sm:$0xff]  ;;  %v287_v33 = vld [vmem:[%s7615_s6 + $0x10] sm:$0xff]  ;;  %vm296_vm1 = vcmask 261120   ;;  %vm691_vm2 = vcmask 130048   ;;  %s8933_s0 = sld [smem:[#allocation7_spill]] }
  0x37   :  { %6630 = vmatpush3.bf16.msra.mxu0 %v6627_v6  ;;  %7344 = vlog2.f32 %v142_v19  ;;  %v286_v28 = vld [vmem:[%s7615_s6 + $0x8] sm:$0xff]  ;;  %v466_v30 = vld [vmem:[%s7625_s24] sm:$0xff]  ;;  %v288_v34 = vld [vmem:[%s7615_s6 + $0x18] sm:$0xff]  ;;  %v8843_v18 = vmov 0.0|0.0   ;;  %s8935_s5 = sld [smem:[#allocation9_spill]]  ;;  %vm7510_vm3 = vmmov 0  }
  0x38   :  { %259 = vperm.xlu1 %7343, %v250_v16   ;;  %6632 = vmatprep.subr.bf16.mxu0 %v6631_v14  ;;  %7346 = vlog2.f32 %v143_v20  ;;  %v6639_v29 = vpack.c.bf16 %v286_v28, %v285_v27  ;;  %v467_v31 = vld [vmem:[%s7625_s24 + $0x8] sm:$0xff]  ;;  %v6643_v35 = vpack.c.bf16 %v288_v34, %v287_v33  ;;  %v468_v36 = vld [vmem:[%s7625_s24 + $0x10] sm:$0xff]  ;;  %v469_v37 = vld [vmem:[%s7625_s24 + $0x18] sm:$0xff]  ;;  %s8943_s9 = sld [smem:[#allocation5_spill]]  ;;  %s8944_s13 = sld [smem:[#allocation6_spill]]  ;;  %vm912_vm10 = vcmask 785408  }
  0x39   :  { %v6655_v32 = vpack.c.bf16 %v467_v31, %v466_v30  ;;  %v6659_v38 = vpack.c.bf16 %v469_v37, %v468_v36  ;;  %v5185_v39 = vld [vmem:[%s7615_s6 + $0x20] sm:$0xff]  ;;  %v5186_v40 = vld [vmem:[%s7615_s6 + $0x28] sm:$0xff]  ;;  %v5187_v63 = vld [vmem:[%s7615_s6 + $0x30] sm:$0xff]  ;;  %s8946_s29 = sld [smem:[#allocation13_spill]]  ;;  %s8970_s15 = sld [smem:[#allocation16_spill]] }
  0x3a   :  { %6640 = vmatprep.subr.bf16.mxu1 %v6639_v29  ;;  %v6647_v41 = vpack.c.bf16 %v5186_v40, %v5185_v39  ;;  %v5177_v44 = vld [vmem:[%s7565_s8] ss:$0 sm:$0xff]  ;;  %v282_v61 = vld [vmem:[%s7540_s17 + $0x8] sm:$0xff]  ;;  %v5188_v0 = vld [vmem:[%s7615_s6 + $0x38] sm:$0xff]  ;;  %s8948_s8 = sld [smem:[#allocation11_spill]]  ;;  %s8969_s6 = sld [smem:[#allocation17_spill]] }
  0x3b   :  { %6634 = vmatpush3.bf16.msra.mxu0 %v6631_v14  ;;  %6642 = vmatpush3.bf16.msra.mxu1 %v6639_v29  ;;  %v5180_v46 = vld [vmem:[%s7570_s14] ss:$0 sm:$0xff]  ;;  %v6651_v3 = vpack.c.bf16 %v5188_v0, %v5187_v63  ;;  %v5197_v5 = vld [vmem:[%s7625_s24 + $0x28] sm:$0xff]  ;;  %v5198_v7 = vld [vmem:[%s7625_s24 + $0x30] sm:$0xff]  ;;  %s8949_s14 = sld [smem:[#allocation8_spill]] }
  0x3c   :  { %6636 = vmatprep.subr.bf16.mxu0 %v6635_v21  ;;  %6644 = vmatprep.subr.bf16.mxu1 %v6643_v35  ;;  %v5181_v55 = vld [vmem:[%s7560_s3] ss:$0 sm:$0xff]  ;;  %v5199_v8 = vld [vmem:[%s7625_s24 + $0x38] sm:$0xff]  ;;  %v683_v11 = vld [vmem:[%s7575_s19 + $0x8] sm:$0xff]  ;;  %s8947_s3 = sld [smem:[#allocation15_spill]] }
  0x3d   :  { %v281_v60 = vld [vmem:[%s7540_s17] sm:$0xff]  ;;  %v6667_v9 = vpack.c.bf16 %v5199_v8, %v5198_v7  ;;  %v776_v15 = vld [vmem:[%s7585_s30 + $0x8] sm:$0xff]  ;;  %v777_v19 = vld [vmem:[%s7585_s30 + $0x10] sm:$0xff]  ;;  %s7512_s17 = smov 32  }
  0x3e   :  { %v5196_v4 = vld [vmem:[%s7625_s24 + $0x20] sm:$0xff]  ;;  %v7736_v16 = vld [vmem:[%s7545_s21 + $0x8] sm:$0xff]  ;;  %v778_v20 = vld [vmem:[%s7585_s30 + $0x18] sm:$0xff]  ;;  %s8953_s24 = sld [smem:[#allocation12_spill]] }
  0x3f   :  { %6638 = vmatpush3.bf16.msra.mxu0 %v6635_v21  ;;  %6646 = vmatpush3.bf16.msra.mxu1 %v6643_v35  ;;  %v6663_v6 = vpack.c.bf16 %v5197_v5, %v5196_v4  ;;  %v682_v10 = vld [vmem:[%s7575_s19] sm:$0xff]  ;;  %v7746_v21 = vpack.c.bf16 %v778_v20, %v777_v19  ;;  %v997_v28 = vld [vmem:[%s8935_s5 + $0x8] sm:$0xff]  ;;  %v895_v29 = vld [vmem:[%s8933_s0 + $0x10] sm:$0xff]  ;;  %s8952_s19 = sld [smem:[#allocation10_spill]] }
  0x40   :  { %6656 = vmatprep.subr.bf16.mxu0 %v6655_v32  ;;  %6648 = vmatprep.subr.bf16.mxu1 %v6647_v41  ;;  %v7723_v12 = vpack.c.bf16 %v683_v11, %v682_v10  ;;  %v7727_v13 = vld [vmem:[%s7545_s21] sm:$0xff]  ;;  %v896_v30 = vld [vmem:[%s8933_s0 + $0x18] sm:$0xff]  ;;  %v998_v33 = vld [vmem:[%s8935_s5 + $0x10] sm:$0xff]  ;;  %s7513_s21 = smov 64  }
  0x41   :  { %v7345_v23 = vpop.eup %7344  ;;  %v775_v14 = vld [vmem:[%s7585_s30] sm:$0xff]  ;;  %8936 = vst [vmem:[#allocation19_spill] sm:$0xff] %v7746_v21  ;;  %v999_v34 = vld [vmem:[%s8935_s5 + $0x18] sm:$0xff]  ;;  %v898_v37 = vld [vmem:[%s8933_s0 + $0x28] sm:$0xff] }
  0x42   :  { %v7347_v24 = vpop.eup %7346  ;;  %5809 = vmatmul.mubr.msk.f32.vlgmr.msra.gmra.mrb[0].mxu0 %vm167_vm0, %v128_v22  ;;  %v145_v25 = vmul.f32 0.6931472, %v7345_v23  ;;  %v7738_v17 = vpack.c.bf16 %v776_v15, %v775_v14  ;;  %v8841_v22 = vmov 0.0   ;;  %v7753_v23 = vld [vmem:[%s7550_s25] sm:$0x1]  ;;  %v7773_v36 = vpack.c.bf16 %v999_v34, %v998_v33  ;;  %v1001_v39 = vld [vmem:[%s8935_s5 + $0x28] sm:$0xff] }
  0x43   :  { %v147_v26 = vmul.f32 0.6931472, %v7347_v24  ;;  %6658 = vmatpush3.bf16.msra.mxu0 %v6655_v32  ;;  %v893_v24 = vld [vmem:[%s8933_s0] sm:$0xff]  ;;  %v7767_v32 = vpack.c.bf16 %v896_v30, %v895_v29  ;;  %v904_v4 = vld [vmem:[%s8933_s0 + $0x58] sm:$0xff]  ;;  %v1006_v5 = vld [vmem:[%s8935_s5 + $0x50] sm:$0xff] }
  0x44   :  { %151 = vperm.xlu0 %7342, %v145_v25   ;;  %6660 = vmatprep.subr.bf16.mxu0 %v6659_v38  ;;  %8934 = vst [vmem:[#allocation18_spill] sm:$0xff] %v7738_v17  ;;  %v894_v25 = vld [vmem:[%s8933_s0 + $0x8] sm:$0xff]  ;;  %v897_v35 = vld [vmem:[%s8933_s0 + $0x20] sm:$0xff]  ;;  %8938 = vst [vmem:[#allocation21_spill] sm:$0xff] %v7773_v36 }
  0x45   :  { %v7760_v27 = vpack.c.bf16 %v894_v25, %v893_v24  ;;  %v7782_v40 = vpack.c.bf16 %v898_v37, %v897_v35  ;;  %v1007_v7 = vld [vmem:[%s8935_s5 + $0x58] sm:$0xff]  ;;  %v7843_v8 = vld [vmem:[%s8943_s9] ss:$0 sm:$0xff] }
  0x46   :  { %v7849_v10 = vld [vmem:[%s8944_s13] sm:$0x1] }
  0x47   :  { %6662 = vmatpush3.bf16.msra.mxu0 %v6659_v38  ;;  %v1000_v38 = vld [vmem:[%s8935_s5 + $0x20] sm:$0xff] }
  0x48   :  { %156 = vperm.xlu0 %7342, %v147_v26   ;;  %v996_v26 = vld [vmem:[%s8935_s5] sm:$0xff]  ;;  %6682 = vmatprep.subr.bf16.mxu0 %v7760_v27 }
  0x49   :  { %v7765_v31 = vpack.c.bf16 %v997_v28, %v996_v26 }
  0x4b   :  { %8937 = vst [vmem:[#allocation20_spill] sm:$0xff] %v7765_v31 }
  0xb3   :  { %v255_v43 = vpop.permute.xlu1 %254 }
  0xb4   :  { %v268_v54 = vmul.f32 %v5180_v46, %v255_v43  ;;  %v900_v43 = vld [vmem:[%s8933_s0 + $0x38] sm:$0xff] }
  0xb7   :  { %v260_v47 = vpop.permute.xlu1 %259 }
  0xb8   :  { %v269_v51 = vmul.f32 %v5180_v46, %v260_v47 }
  0xc3   :  { %v152_v42 = vpop.permute.xlu0 %151 }
  0xc4   :  { %v165_v49 = vmul.f32 %v5177_v44, %v152_v42  ;;  %v899_v42 = vld [vmem:[%s8933_s0 + $0x30] sm:$0xff] }
  0xc5   :  { %v7794_v46 = vpack.c.bf16 %v900_v43, %v899_v42 }
  0xc7   :  { %v157_v45 = vpop.permute.xlu0 %156 }
  0xc8   :  { %v166_v48 = vmul.f32 %v5177_v44, %v157_v45  ;;  %v1002_v44 = vld [vmem:[%s8935_s5 + $0x30] sm:$0xff]  ;;  %v1003_v45 = vld [vmem:[%s8935_s5 + $0x38] sm:$0xff] }
  0xc9   :  { %v7797_v47 = vpack.c.bf16 %v1003_v45, %v1002_v44 }
  0xcb   :  { %8940 = vst [vmem:[#allocation23_spill] sm:$0xff] %v7797_v47 }
 0x115   :  { %v5810_v50 = vpop.f32.mrb[0].mxu0 }
 0x116   :  { %v246_v52 = vadd.f32 %v5810_v50, %v166_v48  ;;  %v240_v53 = vpop.f32.mrb[1].mxu0  ;;  %v901_v48 = vld [vmem:[%s8933_s0 + $0x40] sm:$0xff] }
 0x117   :  { %v241_v56 = vadd.f32 %v240_v53, %v165_v49  ;;  %v902_v49 = vld [vmem:[%s8933_s0 + $0x48] sm:$0xff]  ;;  %v1004_v50 = vld [vmem:[%s8935_s5 + $0x40] sm:$0xff] }
 0x118   :  { %v271_v57 = vadd.f32 %v269_v51, %v246_v52  ;;  %v1005_v51 = vld [vmem:[%s8935_s5 + $0x48] sm:$0xff]  ;;  %v7806_v52 = vpack.c.bf16 %v902_v49, %v901_v48 }
 0x119   :  { %v270_v58 = vadd.f32 %v268_v54, %v241_v56  ;;  %v7809_v53 = vpack.c.bf16 %v1005_v51, %v1004_v50 }
 0x11a   :  { %v280_v59 = vadd.f32 %v5181_v55, %v271_v57  ;;  %8941 = vst [vmem:[#allocation24_spill] sm:$0xff] %v7806_v52 }
 0x11b   :  { %v279_v62 = vadd.f32 %v5181_v55, %v270_v58  ;;  %8942 = vst [vmem:[#allocation25_spill] sm:$0xff] %v7809_v53 }
 0x11c   :  { %v284_v2 = vadd.f32 %v282_v61, %v280_v59  ;;  %v640_v61 = vlaneseq }
 0x11d   :  { %v283_v1 = vadd.f32 %v281_v60, %v279_v62 }
 0x11e   :  { %v7833_v0 = vshrl.u32 %v640_v61, 7 }
 0x11f   :  { %5819 = vmatprep.mubr.msk.f32.mxu1 %vm296_vm1, %v283_v1  ;;  %5841 = vmatprep.mubr.msk.f32.mxu0 %vm296_vm1, %v283_v1 }
 0x120   :  { %5820 = vmatmul.mubr.msk.f32.vlgmr.msra.gmra.mrb[0].mxu1 %vm296_vm1, %v284_v2  ;;  %5842 = vmatmul.mubr.msk.f32.vlgmr.msra.gmra.mrb[2].mxu0 %vm296_vm1, %v284_v2  ;;  %v7860_v19 = vsub.s32 0, %v7833_v0  ;;  %v647_v20 = vand.u32 7, %v7833_v0  ;;  %vm861_vm6 = vcmp.lt.s32.totalorder %v7833_v0, 1  ;;  %vm868_vm7 = vcmp.lt.s32.totalorder %v7833_v0, 7 }
 0x121   :  { %6650 = vmatpush3.bf16.msra.mxu1 %v6647_v41  ;;  %5830 = vmatprep.mubr.msk.f32.mxu1 %vm296_vm1, %v283_v1  ;;  %v7785_v41 = vpack.c.bf16 %v1001_v39, %v1000_v38 }
 0x122   :  { %6652 = vmatprep.subr.bf16.mxu1 %v6651_v3  ;;  %6684 = vmatpush3.bf16.msra.mxu0 %v7760_v27  ;;  %vm673_vm5 = vcmp.ne.s32.totalorder %v647_v20, 7  ;;  %vm667_vm9 = vcmp.ne.s32.totalorder %v647_v20, 0 }
 0x123   :  { %6686 = vmatprep.subr.bf16.mxu0 %v7767_v32  ;;  %8939 = vst [vmem:[#allocation22_spill] sm:$0xff] %v7785_v41  ;;  %v7878_v37 = vsel %vm673_vm5, 1.0, %v8841_v22 }
 0x125   :  { %6654 = vmatpush3.bf16.msra.mxu1 %v6651_v3  ;;  %v903_v3 = vld [vmem:[%s8933_s0 + $0x50] sm:$0xff] }
 0x126   :  { %6664 = vmatprep.subr.bf16.mxu1 %v6663_v6  ;;  %6688 = vmatpush3.bf16.msra.mxu0 %v7767_v32 }
 0x127   :  { %6690 = vmatprep.subr.bf16.mxu0 %v7782_v40 }
 0x128   :  { %5831 = vmatmul.mubr.msk.f32.vlgmr.msra.gmra.mrb[2].mxu1 %vm296_vm1, %v284_v2 }
 0x129   :  { %6666 = vmatpush3.bf16.msra.mxu1 %v6663_v6  ;;  %5852 = vmatprep.mubr.msk.f32.mxu1 %vm296_vm1, %v283_v1  ;;  %v7839_v6 = vpack.c.bf16 %v904_v4, %v903_v3 }
 0x12a   :  { %6668 = vmatprep.subr.bf16.mxu1 %v6667_v9  ;;  %6692 = vmatpush3.bf16.msra.mxu0 %v7782_v40 }
 0x12b   :  { %6694 = vmatprep.subr.bf16.mxu0 %v7794_v46 }
 0x12d   :  { %6670 = vmatpush3.bf16.msra.mxu1 %v6667_v9  ;;  %v7845_v9 = vpack.c.bf16 %v1007_v7, %v1006_v5 }
 0x12e   :  { %6672 = vmatprep.subr.bf16.mxu1 %v7723_v12  ;;  %6696 = vmatpush3.bf16.msra.mxu0 %v7794_v46 }
 0x12f   :  { %6698 = vmatprep.subr.bf16.mxu0 %v7806_v52  ;;  %8945 = vst [vmem:[#allocation26_spill] sm:$0xff] %v7845_v9 }
 0x130   :  { %5853 = vmatmul.mubr.msk.f32.vlgmr.msra.gmra.mrb[4].mxu1 %vm296_vm1, %v284_v2  ;;  %v642_v2 = vadd.s32 8, %v7833_v0 }
 0x131   :  { %6674 = vmatpush3.bf16.msra.mxu1 %v7723_v12  ;;  %5859 = vmatprep.mubr.msk.f32.mxu1 %vm691_vm2, %v7727_v13 }
 0x132   :  { %6675 = vmatprep.subr.bf16.mxu1 %v8843_v18  ;;  %6700 = vmatpush3.bf16.msra.mxu0 %v7806_v52  ;;  %v654_v11 = vand.u32 7, %v642_v2 }
 0x133   :  { %6702 = vmatprep.subr.bf16.mxu0 %v7839_v6 }
 0x134   :  { %5860 = vmatmul.mubr.msk.f32.vlgmr.msra.gmra.mrb[6].mxu1 %vm691_vm2, %v7736_v16  ;;  %vm674_vm4 = vcmp.ne.s32.totalorder %v654_v11, 7  ;;  %vm668_vm8 = vcmp.ne.s32.totalorder %v654_v11, 0 }
 0x135   :  { %6677 = vmatpush3.bf16.msra.mxu1 %v7738_v17  ;;  %5870 = vmatprep.mubr.msk.f32.mxu1 %vm7510_vm3, %v8841_v22  ;;  %v7875_v35 = vsel %vm674_vm4, 1.0, %v8841_v22  ;;  %v7895_v61 = vsel %vm668_vm8, 1.0, %v8841_v22 }
 0x136   :  { %6678 = vmatprep.subr.bf16.mxu1 %v8843_v18  ;;  %6704 = vmatpush3.bf16.msra.mxu0 %v7839_v6 }
 0x139   :  { %6680 = vmatpush3.bf16.msra.mxu1 %v7746_v21 }
 0x13a   :  { %6706 = vmatprep.subr.bf16.mxu1 %v7765_v31 }
 0x13c   :  { %5871 = vmatmul.mubr.msk.f32.vlgmr.msra.gmra.mrb[8].mxu1 %vm296_vm1, %v7753_v23 }
 0x13d   :  { %6708 = vmatpush3.bf16.msra.mxu1 %v7765_v31 }
 0x13e   :  { %6710 = vmatprep.subr.bf16.mxu1 %v7773_v36 }
 0x141   :  { %6712 = vmatpush3.bf16.msra.mxu1 %v7773_v36 }
 0x142   :  { %6714 = vmatprep.subr.bf16.mxu1 %v7785_v41 }
 0x145   :  { %6716 = vmatpush3.bf16.msra.mxu1 %v7785_v41 }
 0x146   :  { %6718 = vmatprep.subr.bf16.mxu1 %v7797_v47 }
 0x149   :  { %6720 = vmatpush3.bf16.msra.mxu1 %v7797_v47 }
 0x14a   :  { %6722 = vmatprep.subr.bf16.mxu1 %v7809_v53 }
 0x14d   :  { %6724 = vmatpush3.bf16.msra.mxu1 %v7809_v53 }
 0x14e   :  { %6726 = vmatprep.subr.bf16.mxu1 %v7845_v9 }
 0x151   :  { %6728 = vmatpush3.bf16.msra.mxu1 %v7845_v9 }
 0x1f3   :  { %v7817_v54 = vpop.f32.mrb[0].mxu1  ;;  %v7819_v55 = vpop.f32.mrb[2].mxu0 }
 0x1f4   :  { %v7821_v56 = vpop.f32.mrb[1].mxu1  ;;  %v7823_v57 = vpop.f32.mrb[3].mxu0 }
 0x1fb   :  { %v7825_v58 = vpop.f32.mrb[2].mxu1 }
 0x1fc   :  { %v7827_v59 = vpop.f32.mrb[3].mxu1 }
 0x203   :  { %v7829_v60 = vpop.f32.mrb[4].mxu1 }
 0x204   :  { %v7831_v62 = vpop.f32.mrb[5].mxu1 }
 0x207   :  { %v5861_v63 = vpop.f32.mrb[6].mxu1 }
 0x208   :  { %v764_v1 = vpop.f32.mrb[7].mxu1  ;;  %v7854_v14 = vadd.f32 %v5861_v63, %v7843_v8 }
 0x209   :  { %v7857_v15 = vadd.f32 %v7843_v8, %v764_v1  ;;  %v7898_v1 = vsel %vm667_vm9, 1.0, %v8841_v22 }
 0x20a   :  { %v8846_v28 = vmax.f32 %v7854_v14, 0.0 }
 0x20b   :  { %v8845_v29 = vmax.f32 %v7857_v15, 0.0 }
 0x20f   :  { %v849_v24 = vpop.f32.mrb[8].mxu1 }
 0x210   :  { %v850_v25 = vadd.f32 %v849_v24, %v7849_v10  ;;  %v5872_v26 = vpop.f32.mrb[9].mxu1 }
 0x211   :  { %v1108_v26 = vld [vmem:[%s8946_s29] sm:$0xff] }
 0x212   :  { %v856_v30 = vrot.slane %v850_v25, %v7860_v19 }
 0x214   :  { %v858_v33 = vadd.f32 %v856_v30, %v8846_v28  ;;  %v857_v34 = vadd.f32 %v856_v30, %v8845_v29  ;;  %v1109_v30 = vld [vmem:[%s8946_s29 + $0x8] sm:$0xff]  ;;  %v5259_v29 = vld [vmem:[%s8935_s5 + $0xb8] sm:$0xff] }
 0x216   :  { %877 = vrot.lane.b32.xlu1 %v858_v33, %s7512_s17  ;;  %v860_v38 = vrot.slane %v858_v33, 7  ;;  %v867_v39 = vrot.slane %v858_v33, 1  ;;  %875 = vrot.lane.b32.xlu0 %v857_v34, %s7512_s17  ;;  %v859_v42 = vrot.slane %v857_v34, 7  ;;  %v866_v43 = vrot.slane %v857_v34, 1  ;;  %v1200_v33 = vld [vmem:[%s8947_s3] sm:$0xff] }
 0x217   :  { %v7913_v34 = vpack.c.bf16 %v1109_v30, %v1108_v26 }
 0x218   :  { %v870_v44 = vsel %vm868_vm7, %v867_v39, %v866_v43  ;;  %v869_v45 = vsel %vm868_vm7, %v866_v43, %v867_v39  ;;  %v862_v48 = vsel %vm861_vm6, %v859_v42, %v860_v38  ;;  %v863_v49 = vsel %vm861_vm6, %v860_v38, %v859_v42  ;;  %v1201_v38 = vld [vmem:[%s8947_s3 + $0x8] sm:$0xff]  ;;  %v1110_v39 = vld [vmem:[%s8946_s29 + $0x10] sm:$0xff]  ;;  %v1111_v42 = vld [vmem:[%s8946_s29 + $0x18] sm:$0xff] }
 0x219   :  { %v872_v50 = vmul.f32 %v7875_v35, %v870_v44  ;;  %v871_v51 = vmul.f32 %v7878_v37, %v869_v45  ;;  %v865_v3 = vmul.f32 %v7895_v61, %v862_v48  ;;  %v864_v4 = vmul.f32 %v7898_v1, %v863_v49  ;;  %v1202_v45 = vld [vmem:[%s8947_s3 + $0x10] sm:$0xff]  ;;  %v1203_v48 = vld [vmem:[%s8947_s3 + $0x18] sm:$0xff]  ;;  %6730 = vmatprep.subr.bf16.mxu0 %v7913_v34 }
 0x21a   :  { %v7918_v43 = vpack.c.bf16 %v1201_v38, %v1200_v33  ;;  %v7920_v44 = vpack.c.bf16 %v1111_v42, %v1110_v39  ;;  %v7925_v49 = vpack.c.bf16 %v1203_v48, %v1202_v45  ;;  %v7950_v33 = vld [vmem:[%s8952_s19] ss:$0 sm:$0xff] }
 0x21b   :  { %885 = vrot.lane.b32.xlu1 %v872_v50, %s7513_s21  ;;  %883 = vrot.lane.b32.xlu0 %v871_v51, %s7513_s21  ;;  %v5182_v50 = vld [vmem:[%s8948_s8] ss:$0 sm:$0xff] }
 0x21c   :  { %8950 = vst [vmem:[#allocation27_spill] sm:$0xff] %v7920_v44  ;;  %8951 = vst [vmem:[#allocation28_spill] sm:$0xff] %v7925_v49  ;;  %6738 = vmatprep.subr.bf16.mxu1 %v7918_v43  ;;  %v7937_v51 = vld [vmem:[%s8949_s14] ss:$0 sm:$0xff] }
 0x288   :  { %v878_v63 = vpop.permute.xlu1 %877  ;;  %v876_v2 = vpop.permute.xlu0 %875 }
 0x289   :  { %v890_v5 = vsel %vm296_vm1, %v865_v3, %v878_v63  ;;  %v889_v7 = vsel %vm296_vm1, %v864_v4, %v876_v2  ;;  %v7940_v3 = vadd.f32 %v7817_v54, %v5182_v50  ;;  %v5193_v54 = vld [vmem:[%s8953_s24] ss:$0 sm:$0xff] }
 0x28a   :  { %v7959_v42 = vadd.f32 %v5193_v54, %v7823_v57 }
 0x28d   :  { %v886_v11 = vpop.permute.xlu1 %885  ;;  %v884_v20 = vpop.permute.xlu0 %883 }
 0x28e   :  { %v892_v24 = vsel %vm167_vm0, %v890_v5, %v886_v11  ;;  %v891_v25 = vsel %vm167_vm0, %v889_v7, %v884_v20  ;;  %v7944_v11 = vadd.f32 %v5182_v50, %v7821_v56  ;;  %v7956_v56 = vadd.f32 %v7819_v55, %v5193_v54  ;;  %v5228_v54 = vld [vmem:[%s7585_s30 + $0x30] sm:$0xff] }
 0x28f   :  { %5897 = vmatprep.mubr.msk.f32.mxu0 %vm912_vm10, %v891_v25  ;;  %5924 = vmatprep.mubr.msk.f32.mxu1 %vm912_vm10, %v891_v25 }
 0x290   :  { %5898 = vmatmul.mubr.msk.f32.vlgmr.msra.gmra.mrb[4].mxu0 %vm912_vm10, %v892_v24  ;;  %5925 = vmatmul.mubr.msk.f32.vlgmr.msra.gmra.mrb[10].mxu1 %vm912_vm10, %v892_v24 }
 0x291   :  { %6732 = vmatpush3.bf16.msra.mxu0 %v7913_v34  ;;  %6740 = vmatpush3.bf16.msra.mxu1 %v7918_v43 }
 0x292   :  { %6734 = vmatprep.subr.bf16.mxu0 %v7920_v44  ;;  %6742 = vmatprep.subr.bf16.mxu1 %v7925_v49 }
 0x295   :  { %6736 = vmatpush3.bf16.msra.mxu0 %v7920_v44  ;;  %6744 = vmatpush3.bf16.msra.mxu1 %v7925_v49 }
 0x296   :  { %6745 = vmatprep.subr.bf16.mxu0 %v8843_v18 }
 0x363   :  { %v5899_v63 = vpop.f32.mrb[4].mxu0  ;;  %v5926_v2 = vpop.f32.mrb[10].mxu1 }
 0x364   :  { %v991_v4 = vadd.f32 %v5899_v63, %v7937_v51  ;;  %v985_v5 = vpop.f32.mrb[5].mxu0  ;;  %v1081_v7 = vpop.f32.mrb[11].mxu1  ;;  %v1087_v38 = vadd.f32 %v5926_v2, %v7950_v33 }
 0x365   :  { %v986_v20 = vadd.f32 %v7937_v51, %v985_v5  ;;  %v1082_v39 = vadd.f32 %v7950_v33, %v1081_v7  ;;  %v5226_v7 = vld [vmem:[%s7585_s30 + $0x20] sm:$0xff] }
 0x366   :  { %v995_v24 = vadd.f32 %v991_v4, %v7940_v3  ;;  %v1091_v45 = vadd.f32 %v1087_v38, %v7956_v56  ;;  %v5229_v38 = vld [vmem:[%s7585_s30 + $0x38] sm:$0xff] }
 0x367   :  { %v994_v25 = vadd.f32 %v986_v20, %v7944_v11  ;;  %v1090_v48 = vadd.f32 %v1082_v39, %v7959_v42  ;;  %v5227_v20 = vld [vmem:[%s7585_s30 + $0x28] sm:$0xff]  ;;  %v7974_v39 = vpack.c.bf16 %v5229_v38, %v5228_v54  ;;  %s8958_s30 = sld [smem:[#allocation14_spill]] }
 0x368   :  { %v5219_v26 = vmul.f32 -1.442695, %v995_v24  ;;  %v5253_v54 = vld [vmem:[%s8935_s5 + $0x88] sm:$0xff] }
 0x369   :  { %v5218_v30 = vmul.f32 -1.442695, %v994_v25 }
 0x36a   :  { %7348 = vpow2.f32 %v5219_v26 }
 0x36b   :  { %7350 = vpow2.f32 %v5218_v30  ;;  %v7965_v30 = vpack.c.bf16 %v5227_v20, %v5226_v7  ;;  %v5250_v20 = vld [vmem:[%s8935_s5 + $0x70] sm:$0xff] }
 0x36c   :  { %7352 = vtanh.f32 %v1091_v45  ;;  %v5232_v45 = vld [vmem:[%s8933_s0 + $0x60] sm:$0xff] }
 0x36d   :  { %7354 = vtanh.f32 %v1090_v48  ;;  %v5233_v48 = vld [vmem:[%s8933_s0 + $0x68] sm:$0xff] }
 0x374   :  { %v7349_v50 = vpop.eup %7348 }
 0x375   :  { %v7351_v63 = vpop.eup %7350  ;;  %v1099_v4 = vadd.f32 1.0, %v7349_v50  ;;  %v5248_v50 = vld [vmem:[%s8935_s5 + $0x60] sm:$0xff] }
 0x376   :  { %v1098_v2 = vadd.f32 1.0, %v7351_v63  ;;  %v7353_v5 = vpop.eup %7352  ;;  %v7985_v63 = vpack.c.bf16 %v5233_v48, %v5232_v45  ;;  %v5238_v48 = vld [vmem:[%s8933_s0 + $0x90] sm:$0xff] }
 0x377   :  { %7356 = vrcp.f32 %v1099_v4  ;;  %v7355_v55 = vpop.eup %7354  ;;  %v5249_v4 = vld [vmem:[%s8935_s5 + $0x68] sm:$0xff] }
 0x378   :  { %7358 = vrcp.f32 %v1098_v2  ;;  %v5234_v2 = vld [vmem:[%s8933_s0 + $0x70] sm:$0xff]  ;;  %6752 = vmatprep.subr.bf16.mxu1 %v7985_v63 }
 0x381   :  { %v7357_v57 = vpop.eup %7356 }
 0x382   :  { %v7359_v24 = vpop.eup %7358  ;;  %v1107_v25 = vmul.f32 %v7357_v57, %v7353_v5  ;;  %v5235_v5 = vld [vmem:[%s8933_s0 + $0x78] sm:$0xff] }
 0x383   :  { %v1106_v26 = vmul.f32 %v7359_v24, %v7355_v55  ;;  %v7990_v55 = vpack.c.bf16 %v5249_v4, %v5248_v50  ;;  %v7992_v7 = vpack.c.bf16 %v5235_v5, %v5234_v2  ;;  %v5251_v57 = vld [vmem:[%s8935_s5 + $0x78] sm:$0xff]  ;;  %v5254_v4 = vld [vmem:[%s8935_s5 + $0x90] sm:$0xff] }
 0x384   :  { %v7998_v24 = vpack.c.bf16 %v5251_v57, %v5250_v20  ;;  %v5239_v50 = vld [vmem:[%s8933_s0 + $0x98] sm:$0xff]  ;;  %v5240_v57 = vld [vmem:[%s8933_s0 + $0xa0] sm:$0xff] }
 0x385   :  { %5935 = vmatprep.mubr.msk.f32.mxu0 %vm296_vm1, %v1106_v26  ;;  %5946 = vmatprep.mubr.msk.f32.mxu1 %vm296_vm1, %v1106_v26  ;;  %v5252_v26 = vld [vmem:[%s8935_s5 + $0x80] sm:$0xff]  ;;  %v5255_v2 = vld [vmem:[%s8935_s5 + $0x98] sm:$0xff]  ;;  %v8019_v5 = vpack.c.bf16 %v5239_v50, %v5238_v48 }
 0x386   :  { %5936 = vmatmul.mubr.msk.f32.vlgmr.msra.gmra.mrb[6].mxu0 %vm296_vm1, %v1107_v25  ;;  %5947 = vmatmul.mubr.msk.f32.vlgmr.msra.gmra.mrb[12].mxu1 %vm296_vm1, %v1107_v25  ;;  %8954 = vst [vmem:[#allocation29_spill] sm:$0xff] %v7998_v24  ;;  %v5237_v25 = vld [vmem:[%s8933_s0 + $0x88] sm:$0xff]  ;;  %v8010_v45 = vpack.c.bf16 %v5253_v54, %v5252_v26  ;;  %v8022_v20 = vpack.c.bf16 %v5255_v2, %v5254_v4  ;;  %v8043_v4 = vld [vmem:[%s8958_s30] ss:$0 sm:$0xff] }
 0x387   :  { %6747 = vmatpush3.bf16.msra.mxu0 %v7965_v30  ;;  %5957 = vmatprep.mubr.msk.f32.mxu0 %vm7510_vm3, %v8841_v22  ;;  %8956 = vst [vmem:[#allocation31_spill] sm:$0xff] %v8019_v5  ;;  %v5257_v26 = vld [vmem:[%s8935_s5 + $0xa8] sm:$0xff]  ;;  %8961 = vst [vmem:[#allocation35_spill] sm:$0xff] %v8043_v4 }
 0x388   :  { %6748 = vmatprep.subr.bf16.mxu0 %v8843_v18  ;;  %6754 = vmatpush3.bf16.msra.mxu1 %v7985_v63  ;;  %8955 = vst [vmem:[#allocation30_spill] sm:$0xff] %v8010_v45  ;;  %8957 = vst [vmem:[#allocation32_spill] sm:$0xff] %v8022_v20 }
 0x389   :  { %6756 = vmatprep.subr.bf16.mxu1 %v7992_v7 }
 0x38b   :  { %6750 = vmatpush3.bf16.msra.mxu0 %v7974_v39 }
 0x38c   :  { %6776 = vmatprep.subr.bf16.mxu0 %v7990_v55  ;;  %6758 = vmatpush3.bf16.msra.mxu1 %v7992_v7 }
 0x38e   :  { %5958 = vmatmul.mubr.msk.f32.vlgmr.msra.gmra.mrb[8].mxu0 %vm296_vm1, %v7753_v23  ;;  %v5236_v23 = vld [vmem:[%s8933_s0 + $0x80] sm:$0xff] }
 0x38f   :  { %6778 = vmatpush3.bf16.msra.mxu0 %v7990_v55  ;;  %v8007_v38 = vpack.c.bf16 %v5237_v25, %v5236_v23  ;;  %v5241_v23 = vld [vmem:[%s8933_s0 + $0xa8] sm:$0xff]  ;;  %v5256_v25 = vld [vmem:[%s8935_s5 + $0xa0] sm:$0xff] }
 0x390   :  { %6780 = vmatprep.subr.bf16.mxu0 %v7998_v24  ;;  %v8031_v54 = vpack.c.bf16 %v5241_v23, %v5240_v57  ;;  %v8034_v48 = vpack.c.bf16 %v5257_v26, %v5256_v25  ;;  %v5242_v57 = vld [vmem:[%s8933_s0 + $0xb0] sm:$0xff]  ;;  %v5243_v23 = vld [vmem:[%s8933_s0 + $0xb8] sm:$0xff] }
 0x391   :  { %6760 = vmatprep.subr.bf16.mxu1 %v8007_v38  ;;  %v5258_v25 = vld [vmem:[%s8935_s5 + $0xb0] sm:$0xff]  ;;  %v8050_v18 = vpack.c.bf16 %v5243_v23, %v5242_v57 }
 0x392   :  { %6762 = vmatpush3.bf16.msra.mxu1 %v8007_v38  ;;  %8959 = vst [vmem:[#allocation33_spill] sm:$0xff] %v8031_v54  ;;  %8960 = vst [vmem:[#allocation34_spill] sm:$0xff] %v8034_v48  ;;  %v8053_v28 = vpack.c.bf16 %v5259_v29, %v5258_v25 }
 0x393   :  { %6782 = vmatpush3.bf16.msra.mxu0 %v7998_v24  ;;  %6764 = vmatprep.subr.bf16.mxu1 %v8019_v5  ;;  %8962 = vst [vmem:[#allocation36_spill] sm:$0xff] %v8050_v18 }
 0x394   :  { %6784 = vmatprep.subr.bf16.mxu0 %v8010_v45  ;;  %8963 = vst [vmem:[#allocation37_spill] sm:$0xff] %v8053_v28 }
 0x396   :  { %6766 = vmatpush3.bf16.msra.mxu1 %v8019_v5 }
 0x397   :  { %6786 = vmatpush3.bf16.msra.mxu0 %v8010_v45  ;;  %6768 = vmatprep.subr.bf16.mxu1 %v8031_v54 }
 0x398   :  { %6788 = vmatprep.subr.bf16.mxu0 %v8022_v20 }
 0x39a   :  { %6770 = vmatpush3.bf16.msra.mxu1 %v8031_v54 }
 0x39b   :  { %6790 = vmatpush3.bf16.msra.mxu0 %v8022_v20  ;;  %6772 = vmatprep.subr.bf16.mxu1 %v8050_v18  ;;  %v8057_v20 = vld [vmem:[%s8944_s13 + $0x1] sm:$0x1] }
 0x39c   :  { %6792 = vmatprep.subr.bf16.mxu0 %v8034_v48 }
 0x39e   :  { %6774 = vmatpush3.bf16.msra.mxu1 %v8050_v18 }
 0x39f   :  { %6794 = vmatpush3.bf16.msra.mxu0 %v8034_v48  ;;  %v8964_v48 = vmax.f32 %v7854_v14, 0.0 }
 0x3a0   :  { %6796 = vmatprep.subr.bf16.mxu0 %v8053_v28 }
 0x3a3   :  { %6798 = vmatpush3.bf16.msra.mxu0 %v8053_v28 }
 0x459   :  { %v5937_v50 = vpop.f32.mrb[6].mxu0 }
 0x45a   :  { %v1191_v2 = vpop.f32.mrb[7].mxu0  ;;  %v1197_v26 = vadd.f32 %v5937_v50, %v8043_v4  ;;  %v8965_v50 = vmax.f32 %v7857_v15, 0.0 }
 0x45b   :  { %v1192_v22 = vadd.f32 %v8043_v4, %v1191_v2 }
 0x45c   :  { %v1287_v54 = vadd.f32 %v1197_v26, %v8964_v48 }
 0x45d   :  { %v1286_v45 = vadd.f32 %v1192_v22, %v8965_v50 }
 0x45e   :  { %v1289_v23 = vmul.f32 0.70710677, %v1287_v54 }
 0x45f   :  { %v1288_v25 = vmul.f32 0.70710677, %v1286_v45 }
 0x461   :  { %v1365_v2 = vpop.f32.mrb[8].mxu0 }
 0x462   :  { %v1366_v29 = vadd.f32 %v8057_v20, %v1365_v2  ;;  %v5959_v57 = vpop.f32.mrb[9].mxu0 }
 0x464   :  { %v1372_v4 = vrot.slane %v1366_v29, %v7860_v19 }
 0x466   :  { %v1374_v5 = vadd.f32 %v1372_v4, %v1289_v23  ;;  %v1373_v24 = vadd.f32 %v1372_v4, %v1288_v25 }
 0x468   :  { %1391 = vrot.lane.b32.xlu1 %v1374_v5, %s7512_s17  ;;  %v1376_v18 = vrot.slane %v1374_v5, 7  ;;  %v1382_v14 = vrot.slane %v1374_v5, 1  ;;  %1389 = vrot.lane.b32.xlu0 %v1373_v24, %s7512_s17  ;;  %v1375_v15 = vrot.slane %v1373_v24, 7  ;;  %v1381_v22 = vrot.slane %v1373_v24, 1 }
 0x46a   :  { %v1384_v48 = vsel %vm868_vm7, %v1382_v14, %v1381_v22  ;;  %v1383_v26 = vsel %vm868_vm7, %v1381_v22, %v1382_v14  ;;  %v1377_v45 = vsel %vm861_vm6, %v1375_v15, %v1376_v18  ;;  %v1378_v54 = vsel %vm861_vm6, %v1376_v18, %v1375_v15  ;;  %v5266_v22 = vld [vmem:[%s8947_s3 + $0x20] sm:$0xff] }
 0x46b   :  { %v1386_v4 = vmul.f32 %v7875_v35, %v1384_v48  ;;  %v1385_v5 = vmul.f32 %v7878_v37, %v1383_v26  ;;  %v1380_v2 = vmul.f32 %v7895_v61, %v1377_v45  ;;  %v1379_v29 = vmul.f32 %v7898_v1, %v1378_v54  ;;  %v5267_v48 = vld [vmem:[%s8947_s3 + $0x28] sm:$0xff]  ;;  %v5268_v26 = vld [vmem:[%s8947_s3 + $0x30] sm:$0xff]  ;;  %v5269_v54 = vld [vmem:[%s8947_s3 + $0x38] sm:$0xff] }
 0x46c   :  { %v8095_v45 = vpack.c.bf16 %v5267_v48, %v5266_v22 }
 0x46d   :  { %1399 = vrot.lane.b32.xlu1 %v1386_v4, %s7513_s21  ;;  %1397 = vrot.lane.b32.xlu0 %v1385_v5, %s7513_s21  ;;  %v8098_v4 = vpack.c.bf16 %v5269_v54, %v5268_v26  ;;  %v5190_v5 = vld [vmem:[%s8948_s8 + $0x1] ss:$0 sm:$0xff] }
 0x46e   :  { %6800 = vmatprep.subr.bf16.mxu1 %v8095_v45  ;;  %v8119_v54 = vld [vmem:[%s8952_s19 + $0x1] ss:$0 sm:$0xff] }
 0x46f   :  { %8966 = vst [vmem:[#allocation38_spill] sm:$0xff] %v8098_v4 }
 0x4da   :  { %v1392_v24 = vpop.permute.xlu1 %1391  ;;  %v1390_v50 = vpop.permute.xlu0 %1389 }
 0x4db   :  { %v1404_v18 = vsel %vm296_vm1, %v1380_v2, %v1392_v24  ;;  %v1403_v57 = vsel %vm296_vm1, %v1379_v29, %v1390_v50  ;;  %v8106_v24 = vld [vmem:[%s8949_s14 + $0x1] ss:$0 sm:$0xff]  ;;  %v8109_v29 = vadd.f32 %v7825_v58, %v5190_v5 }
 0x4dc   :  { %v5201_v58 = vld [vmem:[%s8953_s24 + $0x1] ss:$0 sm:$0xff] }
 0x4df   :  { %v1400_v23 = vpop.permute.xlu1 %1399  ;;  %v1398_v25 = vpop.permute.xlu0 %1397 }
 0x4e0   :  { %v1406_v14 = vsel %vm167_vm0, %v1404_v18, %v1400_v23  ;;  %v1405_v15 = vsel %vm167_vm0, %v1403_v57, %v1398_v25  ;;  %v8113_v25 = vadd.f32 %v5190_v5, %v7827_v59  ;;  %v8125_v59 = vadd.f32 %v7829_v60, %v5201_v58 }
 0x4e1   :  { %5984 = vmatprep.mubr.msk.f32.mxu1 %vm912_vm10, %v1405_v15  ;;  %6011 = vmatprep.mubr.msk.f32.mxu0 %vm912_vm10, %v1405_v15  ;;  %v8128_v5 = vadd.f32 %v5201_v58, %v7831_v62  ;;  %v1723_v58 = vld [vmem:[%s8969_s6] sm:$0xff] }
 0x4e2   :  { %5985 = vmatmul.mubr.msk.f32.vlgmr.msra.gmra.mrb[14].mxu1 %vm912_vm10, %v1406_v14  ;;  %6012 = vmatmul.mubr.msk.f32.vlgmr.msra.gmra.mrb[10].mxu0 %vm912_vm10, %v1406_v14  ;;  %8967 = vst [vmem:[#allocation39_spill] sm:$0xff] %v8125_v59 }
 0x4e3   :  { %6802 = vmatpush3.bf16.msra.mxu1 %v8095_v45  ;;  %8968 = vst [vmem:[#allocation40_spill] sm:$0xff] %v8128_v5 }
 0x4e4   :  { %6804 = vmatprep.subr.bf16.mxu1 %v8098_v4 }
 0x4e7   :  { %6806 = vmatpush3.bf16.msra.mxu1 %v8098_v4 }
 0x5b5   :  { %v5986_v50 = vpop.f32.mrb[14].mxu1  ;;  %v6013_v2 = vpop.f32.mrb[10].mxu0 }
 0x5b6   :  { %v1506_v18 = vadd.f32 %v5986_v50, %v8106_v24  ;;  %v1500_v57 = vpop.f32.mrb[15].mxu1  ;;  %v1598_v23 = vpop.f32.mrb[11].mxu0  ;;  %v1604_v50 = vadd.f32 %v6013_v2, %v8119_v54 }
 0x5b7   :  { %v1501_v14 = vadd.f32 %v8106_v24, %v1500_v57  ;;  %v1599_v4 = vadd.f32 %v8119_v54, %v1598_v23 }
 0x5b8   :  { %v1510_v15 = vadd.f32 %v1506_v18, %v8109_v29  ;;  %v1608_v18 = vadd.f32 %v1604_v50, %v8125_v59  ;;  %v1724_v50 = vld [vmem:[%s8969_s6 + $0x8] sm:$0xff] }
 0x5b9   :  { %v1509_v22 = vadd.f32 %v1501_v14, %v8113_v25  ;;  %v1607_v57 = vadd.f32 %v1599_v4, %v8128_v5  ;;  %v1819_v5 = vld [vmem:[%s7665_s12 + $0x10] sm:$0xff] }
 0x5ba   :  { %v5265_v48 = vmul.f32 -1.442695, %v1510_v15 }
 0x5bb   :  { %v5264_v26 = vmul.f32 -1.442695, %v1509_v22 }
 0x5bc   :  { %7360 = vpow2.f32 %v5265_v48 }
 0x5bd   :  { %7362 = vpow2.f32 %v5264_v26 }
 0x5be   :  { %7364 = vtanh.f32 %v1608_v18  ;;  %v8136_v18 = vpack.c.bf16 %v1724_v50, %v1723_v58 }
 0x5bf   :  { %7366 = vtanh.f32 %v1607_v57  ;;  %v1725_v57 = vld [vmem:[%s8969_s6 + $0x10] sm:$0xff] }
 0x5c0   :  { %6808 = vmatprep.subr.bf16.mxu0 %v8136_v18 }
 0x5c1   :  { %6810 = vmatpush3.bf16.msra.mxu0 %v8136_v18 }
 0x5c6   :  { %v7361_v14 = vpop.eup %7360 }
 0x5c7   :  { %v7363_v15 = vpop.eup %7362  ;;  %v1616_v22 = vadd.f32 1.0, %v7361_v14  ;;  %v1726_v14 = vld [vmem:[%s8969_s6 + $0x18] sm:$0xff] }
 0x5c8   :  { %v1615_v48 = vadd.f32 1.0, %v7363_v15  ;;  %v7365_v60 = vpop.eup %7364  ;;  %v8142_v15 = vpack.c.bf16 %v1726_v14, %v1725_v57 }
 0x5c9   :  { %7368 = vrcp.f32 %v1616_v22  ;;  %v7367_v2 = vpop.eup %7366  ;;  %v1817_v22 = vld [vmem:[%s7665_s12] sm:$0xff] }
 0x5ca   :  { %7370 = vrcp.f32 %v1615_v48  ;;  %6812 = vmatprep.subr.bf16.mxu0 %v8142_v15  ;;  %v1818_v48 = vld [vmem:[%s7665_s12 + $0x8] sm:$0xff] }
 0x5cb   :  { %6814 = vmatpush3.bf16.msra.mxu0 %v8142_v15 }
 0x5cc   :  { %6824 = vmatprep.subr.bf16.mxu0 %v7723_v12 }
 0x5d3   :  { %v7369_v62 = vpop.eup %7368 }
 0x5d4   :  { %v7371_v23 = vpop.eup %7370  ;;  %v1624_v26 = vmul.f32 %v7369_v62, %v7365_v60  ;;  %v8149_v60 = vpack.c.bf16 %v1818_v48, %v1817_v22  ;;  %v8971_v48 = vmov 0.0|0.0  }
 0x5d5   :  { %v1623_v4 = vmul.f32 %v7371_v23, %v7367_v2  ;;  %v8154_v2 = vld [vmem:[%s8970_s15] ss:$0 sm:$0xff]  ;;  %v8157_v23 = vld [vmem:[%s8970_s15 + $0x1] ss:$0 sm:$0xff] }
 0x5d6   :  { %6816 = vmatprep.subr.bf16.mxu1 %v8149_v60 }
 0x5d7   :  { %6022 = vmatprep.mubr.msk.f32.mxu1 %vm296_vm1, %v1623_v4 }
 0x5d8   :  { %6023 = vmatmul.mubr.msk.f32.vlgmr.msra.gmra.mrb[12].mxu1 %vm296_vm1, %v1624_v26 }
 0x5d9   :  { %6818 = vmatpush3.bf16.msra.mxu1 %v8149_v60 }
 0x6ab   :  { %v6024_v62 = vpop.f32.mrb[12].mxu1 }
 0x6ac   :  { %v7279_v26 = vadd.f32 %v6024_v62, %v8154_v2  ;;  %v1710_v4 = vpop.f32.mrb[13].mxu1  ;;  %v1820_v62 = vld [vmem:[%s7665_s12 + $0x18] sm:$0xff] }
 0x6ad   :  { %v7281_v58 = vadd.f32 %v8154_v2, %v1710_v4  ;;  %v8169_v59 = vpack.c.bf16 %v1820_v62, %v1819_v5  ;;  %v8194_v5 = vld [vmem:[%s7670_s4] ss:$0 sm:$0xff] }
 0x6ae   :  { %v7280_v50 = vadd.f32 %v7279_v26, %v8157_v23  ;;  %v8175_v26 = vld [vmem:[%s7660_s20] ss:$0 sm:$0xff] }
 0x6af   :  { %v7282_v57 = vadd.f32 %v7281_v58, %v8157_v23  ;;  %6820 = vmatprep.subr.bf16.mxu1 %v8169_v59 }
 0x6b0   :  { %v1722_v22 = vmul.f32 0.70710677, %v7280_v50  ;;  %6822 = vmatpush3.bf16.msra.mxu1 %v8169_v59 }
 0x6b1   :  { %v1721_v14 = vmul.f32 0.70710677, %v7282_v57  ;;  %6834 = vmatprep.subr.bf16.mxu1 %v7760_v27 }
 0x6b3   :  { %6033 = vmatprep.mubr.msk.f32.mxu0 %vm296_vm1, %v1721_v14 }
 0x6b4   :  { %6034 = vmatmul.mubr.msk.f32.vlgmr.msra.gmra.mrb[12].mxu0 %vm296_vm1, %v1722_v22 }
 0x6b5   :  { %6826 = vmatpush3.bf16.msra.mxu0 %v7723_v12 }
 0x6b6   :  { %6827 = vmatprep.subr.bf16.mxu0 %v8971_v48 }
 0x787   :  { %v6035_v4 = vpop.f32.mrb[12].mxu0 }
 0x788   :  { %v1812_v58 = vadd.f32 %v6035_v4, %v8175_v26  ;;  %v1806_v50 = vpop.f32.mrb[13].mxu0 }
 0x789   :  { %v1807_v57 = vadd.f32 %v8175_v26, %v1806_v50 }
 0x78a   :  { %v1816_v22 = vmax.f32 %v1812_v58, 0.0 }
 0x78b   :  { %v1815_v14 = vmax.f32 %v1807_v57, 0.0 }
 0x78d   :  { %6044 = vmatprep.mubr.msk.f32.mxu1 %vm296_vm1, %v1815_v14 }
 0x78e   :  { %6045 = vmatmul.mubr.msk.f32.vlgmr.msra.gmra.mrb[16].mxu1 %vm296_vm1, %v1816_v22 }
 0x78f   :  { %6836 = vmatpush3.bf16.msra.mxu1 %v7760_v27 }
 0x790   :  { %6838 = vmatprep.subr.bf16.mxu1 %v7767_v32 }
 0x793   :  { %6840 = vmatpush3.bf16.msra.mxu1 %v7767_v32 }
 0x794   :  { %6842 = vmatprep.subr.bf16.mxu1 %v7782_v40 }
 0x797   :  { %6844 = vmatpush3.bf16.msra.mxu1 %v7782_v40 }
 0x798   :  { %6846 = vmatprep.subr.bf16.mxu1 %v7794_v46 }
 0x79b   :  { %6848 = vmatpush3.bf16.msra.mxu1 %v7794_v46 }
 0x79c   :  { %6850 = vmatprep.subr.bf16.mxu1 %v7806_v52 }
 0x79f   :  { %6852 = vmatpush3.bf16.msra.mxu1 %v7806_v52 }
 0x7a0   :  { %6854 = vmatprep.subr.bf16.mxu1 %v7839_v6 }
 0x7a3   :  { %6856 = vmatpush3.bf16.msra.mxu1 %v7839_v6 }
 0x7a4   :  { %6882 = vmatprep.subr.bf16.mxu1 %v7913_v34 }
 0x861   :  { %v6046_v62 = vpop.f32.mrb[16].mxu1 }
 0x862   :  { %v1906_v4 = vadd.f32 %v6046_v62, %v8194_v5  ;;  %v1900_v58 = vpop.f32.mrb[17].mxu1  ;;  %v8973_v62 = vmov 0.0  }
 0x863   :  { %v1901_v50 = vadd.f32 %v8194_v5, %v1900_v58 }
 0x864   :  { %v1910_v57 = vmul.f32 0.25, %v1906_v4 }
 0x865   :  { %v1909_v14 = vmul.f32 0.25, %v1901_v50 }
 0x866   :  { %v8202_v52 = vadd.f32 %v1910_v57, %v7736_v16 }
 0x867   :  { %v8199_v22 = vadd.f32 %v1909_v14, %v7727_v13  ;;  %v8214_v13 = vld [vmem:[%s7550_s25 + $0x1] sm:$0x1] }
 0x868   :  { %8972 = vst [vmem:[#allocation41_spill] sm:$0xff] %v8202_v52 }
 0x869   :  { %6051 = vmatprep.mubr.msk.f32.mxu0 %vm691_vm2, %v8199_v22 }
 0x86a   :  { %6052 = vmatmul.mubr.msk.f32.vlgmr.msra.gmra.mrb[14].mxu0 %vm691_vm2, %v8202_v52 }
 0x86b   :  { %6829 = vmatpush3.bf16.msra.mxu0 %v7738_v17  ;;  %6062 = vmatprep.mubr.msk.f32.mxu0 %vm7510_vm3, %v8973_v62 }
 0x86c   :  { %6830 = vmatprep.subr.bf16.mxu0 %v8971_v48 }
 0x86f   :  { %6832 = vmatpush3.bf16.msra.mxu0 %v7746_v21 }
 0x870   :  { %6858 = vmatprep.subr.bf16.mxu0 %v7765_v31 }
 0x872   :  { %6063 = vmatmul.mubr.msk.f32.vlgmr.msra.gmra.mrb[16].mxu0 %vm296_vm1, %v8214_v13 }
 0x873   :  { %6860 = vmatpush3.bf16.msra.mxu0 %v7765_v31 }
 0x874   :  { %6862 = vmatprep.subr.bf16.mxu0 %v7773_v36 }
 0x877   :  { %6864 = vmatpush3.bf16.msra.mxu0 %v7773_v36 }
 0x878   :  { %6866 = vmatprep.subr.bf16.mxu0 %v7785_v41 }
 0x87b   :  { %6868 = vmatpush3.bf16.msra.mxu0 %v7785_v41 }
 0x87c   :  { %6870 = vmatprep.subr.bf16.mxu0 %v7797_v47 }
 0x87f   :  { %6872 = vmatpush3.bf16.msra.mxu0 %v7797_v47 }
 0x880   :  { %6874 = vmatprep.subr.bf16.mxu0 %v7809_v53 }
 0x883   :  { %6876 = vmatpush3.bf16.msra.mxu0 %v7809_v53 }
 0x884   :  { %6878 = vmatprep.subr.bf16.mxu0 %v7845_v9 }
 0x887   :  { %6880 = vmatpush3.bf16.msra.mxu0 %v7845_v9 }
 0x888   :  { %6890 = vmatprep.subr.bf16.mxu0 %v7918_v43 }
 0x93d   :  { %v6053_v16 = vpop.f32.mrb[14].mxu0 }
 0x93e   :  { %v1986_v4 = vpop.f32.mrb[15].mxu0  ;;  %v8232_v58 = vadd.f32 %v6053_v16, %v7843_v8 }
 0x93f   :  { %v8235_v50 = vadd.f32 %v7843_v8, %v1986_v4 }
 0x940   :  { %v8881_v53 = vmax.f32 %v8232_v58, 0.0 }
 0x941   :  { %v8882_v41 = vmax.f32 %v8235_v50, 0.0 }
 0x945   :  { %v2066_v57 = vpop.f32.mrb[16].mxu0 }
 0x946   :  { %v2067_v14 = vadd.f32 %v2066_v57, %v7849_v10  ;;  %v6064_v47 = vpop.f32.mrb[17].mxu0 }
 0x948   :  { %v2073_v9 = vrot.slane %v2067_v14, %v7860_v19 }
 0x94a   :  { %v2075_v36 = vadd.f32 %v2073_v9, %v8881_v53  ;;  %v2074_v16 = vadd.f32 %v2073_v9, %v8882_v41 }
 0x94c   :  { %2092 = vrot.lane.b32.xlu1 %v2075_v36, %s7512_s17  ;;  %v2077_v8 = vrot.slane %v2075_v36, 7  ;;  %v2083_v4 = vrot.slane %v2075_v36, 1  ;;  %2090 = vrot.lane.b32.xlu0 %v2074_v16, %s7512_s17  ;;  %v2076_v10 = vrot.slane %v2074_v16, 7  ;;  %v2082_v47 = vrot.slane %v2074_v16, 1 }
 0x94e   :  { %v2085_v57 = vsel %vm868_vm7, %v2083_v4, %v2082_v47  ;;  %v2084_v14 = vsel %vm868_vm7, %v2082_v47, %v2083_v4  ;;  %v2078_v53 = vsel %vm861_vm6, %v2076_v10, %v2077_v8  ;;  %v2079_v9 = vsel %vm861_vm6, %v2077_v8, %v2076_v10 }
 0x94f   :  { %v2087_v41 = vmul.f32 %v7875_v35, %v2085_v57  ;;  %v2086_v36 = vmul.f32 %v7878_v37, %v2084_v14  ;;  %v2081_v21 = vmul.f32 %v7895_v61, %v2078_v53  ;;  %v2080_v4 = vmul.f32 %v7898_v1, %v2079_v9 }
 0x951   :  { %2100 = vrot.lane.b32.xlu1 %v2087_v41, %s7513_s21  ;;  %2098 = vrot.lane.b32.xlu0 %v2086_v36, %s7513_s21 }
 0x9be   :  { %v2093_v16 = vpop.permute.xlu1 %2092  ;;  %v2091_v31 = vpop.permute.xlu0 %2090 }
 0x9bf   :  { %v2105_v47 = vsel %vm296_vm1, %v2081_v21, %v2093_v16  ;;  %v2104_v17 = vsel %vm296_vm1, %v2080_v4, %v2091_v31 }
 0x9c3   :  { %v2101_v52 = vpop.permute.xlu1 %2100  ;;  %v2099_v8 = vpop.permute.xlu0 %2098 }
 0x9c4   :  { %v2107_v10 = vsel %vm167_vm0, %v2105_v47, %v2101_v52  ;;  %v2106_v57 = vsel %vm167_vm0, %v2104_v17, %v2099_v8 }
 0x9c5   :  { %6089 = vmatprep.mubr.msk.f32.mxu1 %vm912_vm10, %v2106_v57  ;;  %6116 = vmatprep.mubr.msk.f32.mxu0 %vm912_vm10, %v2106_v57 }
 0x9c6   :  { %6090 = vmatmul.mubr.msk.f32.vlgmr.msra.gmra.mrb[18].mxu1 %vm912_vm10, %v2107_v10  ;;  %6117 = vmatmul.mubr.msk.f32.vlgmr.msra.gmra.mrb[18].mxu0 %vm912_vm10, %v2107_v10 }
 0x9c7   :  { %6884 = vmatpush3.bf16.msra.mxu1 %v7913_v34  ;;  %6892 = vmatpush3.bf16.msra.mxu0 %v7918_v43 }
 0x9c8   :  { %6886 = vmatprep.subr.bf16.mxu1 %v7920_v44  ;;  %6894 = vmatprep.subr.bf16.mxu0 %v7925_v49 }
 0x9cb   :  { %6888 = vmatpush3.bf16.msra.mxu1 %v7920_v44  ;;  %6896 = vmatpush3.bf16.msra.mxu0 %v7925_v49 }
 0x9cc   :  { %6897 = vmatprep.subr.bf16.mxu1 %v8971_v48  ;;  %6904 = vmatprep.subr.bf16.mxu0 %v7985_v63 }
 0xa99   :  { %v6091_v17 = vpop.f32.mrb[18].mxu1  ;;  %v6118_v21 = vpop.f32.mrb[18].mxu0 }
 0xa9a   :  { %v2186_v31 = vadd.f32 %v6091_v17, %v7937_v51  ;;  %v2180_v41 = vpop.f32.mrb[19].mxu1  ;;  %v2257_v52 = vpop.f32.mrb[19].mxu0  ;;  %v2263_v4 = vadd.f32 %v6118_v21, %v7950_v33 }
 0xa9b   :  { %v2181_v53 = vadd.f32 %v7937_v51, %v2180_v41  ;;  %v2258_v47 = vadd.f32 %v7950_v33, %v2257_v52  ;;  %v8975_v33 = vld [vmem:[#allocation31_spill] sm:$0xff]  ;;  %v8976_v52 = vld [vmem:[#allocation30_spill] sm:$0xff] }
 0xa9c   :  { %v2190_v14 = vadd.f32 %v2186_v31, %v7940_v3  ;;  %v2267_v8 = vadd.f32 %v2263_v4, %v7956_v56  ;;  %v8980_v4 = vld [vmem:[#allocation34_spill] sm:$0xff] }
 0xa9d   :  { %v2189_v9 = vadd.f32 %v2181_v53, %v7944_v11  ;;  %v2266_v10 = vadd.f32 %v2258_v47, %v7959_v42 }
 0xa9e   :  { %v5288_v36 = vmul.f32 -1.442695, %v2190_v14 }
 0xa9f   :  { %v5287_v16 = vmul.f32 -1.442695, %v2189_v9 }
 0xaa0   :  { %7372 = vpow2.f32 %v5288_v36  ;;  %v8977_v36 = vld [vmem:[#allocation33_spill] sm:$0xff] }
 0xaa1   :  { %7374 = vpow2.f32 %v5287_v16  ;;  %v8978_v16 = vld [vmem:[#allocation32_spill] sm:$0xff] }
 0xaa2   :  { %7376 = vtanh.f32 %v2267_v8 }
 0xaa3   :  { %7378 = vtanh.f32 %v2266_v10  ;;  %v8981_v10 = vld [vmem:[#allocation35_spill] sm:$0xff] }
 0xaaa   :  { %v7373_v57 = vpop.eup %7372 }
 0xaab   :  { %v7375_v17 = vpop.eup %7374  ;;  %v2275_v49 = vadd.f32 1.0, %v7373_v57 }
 0xaac   :  { %v2274_v51 = vadd.f32 1.0, %v7375_v17  ;;  %v7377_v31 = vpop.eup %7376 }
 0xaad   :  { %7380 = vrcp.f32 %v2275_v49  ;;  %v7379_v41 = vpop.eup %7378  ;;  %v8974_v49 = vld [vmem:[#allocation29_spill] sm:$0xff] }
 0xaae   :  { %7382 = vrcp.f32 %v2274_v51  ;;  %v8982_v51 = vmax.f32 %v8232_v58, 0.0 }
 0xab7   :  { %v7381_v53 = vpop.eup %7380 }
 0xab8   :  { %v7383_v14 = vpop.eup %7382  ;;  %v2283_v9 = vmul.f32 %v7381_v53, %v7377_v31 }
 0xab9   :  { %v2282_v21 = vmul.f32 %v7383_v14, %v7379_v41  ;;  %v8983_v41 = vmax.f32 %v8235_v50, 0.0 }
 0xabb   :  { %6127 = vmatprep.mubr.msk.f32.mxu1 %vm296_vm1, %v2282_v21  ;;  %6138 = vmatprep.mubr.msk.f32.mxu0 %vm296_vm1, %v2282_v21 }
 0xabc   :  { %6128 = vmatmul.mubr.msk.f32.vlgmr.msra.gmra.mrb[20].mxu1 %vm296_vm1, %v2283_v9  ;;  %6139 = vmatmul.mubr.msk.f32.vlgmr.msra.gmra.mrb[20].mxu0 %vm296_vm1, %v2283_v9 }
 0xabd   :  { %6899 = vmatpush3.bf16.msra.mxu1 %v7965_v30  ;;  %6149 = vmatprep.mubr.msk.f32.mxu1 %vm7510_vm3, %v8973_v62 }
 0xabe   :  { %6900 = vmatprep.subr.bf16.mxu1 %v8971_v48  ;;  %6906 = vmatpush3.bf16.msra.mxu0 %v7985_v63 }
 0xabf   :  { %6908 = vmatprep.subr.bf16.mxu0 %v7992_v7 }
 0xac1   :  { %6902 = vmatpush3.bf16.msra.mxu1 %v7974_v39 }
 0xac2   :  { %6928 = vmatprep.subr.bf16.mxu1 %v7990_v55  ;;  %6910 = vmatpush3.bf16.msra.mxu0 %v7992_v7 }
 0xac3   :  { %6912 = vmatprep.subr.bf16.mxu0 %v8007_v38 }
 0xac4   :  { %6150 = vmatmul.mubr.msk.f32.vlgmr.msra.gmra.mrb[22].mxu1 %vm296_vm1, %v8214_v13  ;;  %v8979_v13 = vld [vmem:[#allocation36_spill] sm:$0xff] }
 0xac5   :  { %6930 = vmatpush3.bf16.msra.mxu1 %v7990_v55 }
 0xac6   :  { %6932 = vmatprep.subr.bf16.mxu1 %v8974_v49  ;;  %6914 = vmatpush3.bf16.msra.mxu0 %v8007_v38 }
 0xac7   :  { %6916 = vmatprep.subr.bf16.mxu0 %v8975_v33 }
 0xac9   :  { %6934 = vmatpush3.bf16.msra.mxu1 %v8974_v49 }
 0xaca   :  { %6936 = vmatprep.subr.bf16.mxu1 %v8976_v52  ;;  %6918 = vmatpush3.bf16.msra.mxu0 %v8975_v33 }
 0xacb   :  { %6920 = vmatprep.subr.bf16.mxu0 %v8977_v36 }
 0xacd   :  { %6938 = vmatpush3.bf16.msra.mxu1 %v8976_v52 }
 0xace   :  { %6940 = vmatprep.subr.bf16.mxu1 %v8978_v16  ;;  %6922 = vmatpush3.bf16.msra.mxu0 %v8977_v36 }
 0xacf   :  { %6924 = vmatprep.subr.bf16.mxu0 %v8979_v13 }
 0xad1   :  { %6942 = vmatpush3.bf16.msra.mxu1 %v8978_v16 }
 0xad2   :  { %6944 = vmatprep.subr.bf16.mxu1 %v8980_v4  ;;  %6926 = vmatpush3.bf16.msra.mxu0 %v8979_v13 }
 0xad3   :  { %6952 = vmatprep.subr.bf16.mxu0 %v8095_v45 }
 0xad5   :  { %6946 = vmatpush3.bf16.msra.mxu1 %v8980_v4 }
 0xad6   :  { %6948 = vmatprep.subr.bf16.mxu1 %v8053_v28 }
 0xad9   :  { %6950 = vmatpush3.bf16.msra.mxu1 %v8053_v28 }
 0xada   :  { %6960 = vmatprep.subr.bf16.mxu1 %v8136_v18 }
 0xb8f   :  { %v6129_v47 = vpop.f32.mrb[20].mxu1 }
 0xb90   :  { %v2356_v8 = vpop.f32.mrb[21].mxu1  ;;  %v2362_v57 = vadd.f32 %v6129_v47, %v8981_v10 }
 0xb91   :  { %v2357_v17 = vadd.f32 %v8981_v10, %v2356_v8 }
 0xb92   :  { %v2441_v31 = vadd.f32 %v2362_v57, %v8982_v51 }
 0xb93   :  { %v2440_v53 = vadd.f32 %v2357_v17, %v8983_v41 }
 0xb94   :  { %v2443_v4 = vmul.f32 0.70710677, %v2441_v31 }
 0xb95   :  { %v2442_v28 = vmul.f32 0.70710677, %v2440_v53 }
 0xb97   :  { %v2512_v14 = vpop.f32.mrb[22].mxu1 }
 0xb98   :  { %v2513_v9 = vadd.f32 %v8057_v20, %v2512_v14  ;;  %v6151_v21 = vpop.f32.mrb[23].mxu1 }
 0xb9a   :  { %v2519_v13 = vrot.slane %v2513_v9, %v7860_v19 }
 0xb9c   :  { %v2521_v16 = vadd.f32 %v2519_v13, %v2443_v4  ;;  %v2520_v36 = vadd.f32 %v2519_v13, %v2442_v28 }
 0xb9e   :  { %2538 = vrot.lane.b32.xlu1 %v2521_v16, %s7512_s17  ;;  %v2523_v47 = vrot.slane %v2521_v16, 7  ;;  %v2529_v8 = vrot.slane %v2521_v16, 1  ;;  %2536 = vrot.lane.b32.xlu0 %v2520_v36, %s7512_s17  ;;  %v2522_v58 = vrot.slane %v2520_v36, 7  ;;  %v2528_v10 = vrot.slane %v2520_v36, 1 }
 0xba0   :  { %v2531_v50 = vsel %vm868_vm7, %v2529_v8, %v2528_v10  ;;  %v2530_v20 = vsel %vm868_vm7, %v2528_v10, %v2529_v8  ;;  %v2524_v57 = vsel %vm861_vm6, %v2522_v58, %v2523_v47  ;;  %v2525_v28 = vsel %vm861_vm6, %v2523_v47, %v2522_v58  ;;  %v8984_v47 = vld [vmem:[#allocation38_spill] sm:$0xff] }
 0xba1   :  { %v2533_v13 = vmul.f32 %v7875_v35, %v2531_v50  ;;  %v2532_v16 = vmul.f32 %v7878_v37, %v2530_v20  ;;  %v2527_v17 = vmul.f32 %v7895_v61, %v2524_v57  ;;  %v2526_v51 = vmul.f32 %v7898_v1, %v2525_v28 }
 0xba3   :  { %2546 = vrot.lane.b32.xlu1 %v2533_v13, %s7513_s21  ;;  %2544 = vrot.lane.b32.xlu0 %v2532_v16, %s7513_s21 }
 0xc10   :  { %v2539_v36 = vpop.permute.xlu1 %2538  ;;  %v2537_v4 = vpop.permute.xlu0 %2536 }
 0xc11   :  { %v2551_v31 = vsel %vm296_vm1, %v2527_v17, %v2539_v36  ;;  %v2550_v41 = vsel %vm296_vm1, %v2526_v51, %v2537_v4  ;;  %v8985_v51 = vld [vmem:[#allocation39_spill] sm:$0xff] }
 0xc15   :  { %v2547_v53 = vpop.permute.xlu1 %2546  ;;  %v2545_v14 = vpop.permute.xlu0 %2544 }
 0xc16   :  { %v2553_v9 = vsel %vm167_vm0, %v2551_v31, %v2547_v53  ;;  %v2552_v21 = vsel %vm167_vm0, %v2550_v41, %v2545_v14  ;;  %v8986_v41 = vld [vmem:[#allocation40_spill] sm:$0xff] }
 0xc17   :  { %6176 = vmatprep.mubr.msk.f32.mxu0 %vm912_vm10, %v2552_v21  ;;  %6203 = vmatprep.mubr.msk.f32.mxu1 %vm912_vm10, %v2552_v21 }
 0xc18   :  { %6177 = vmatmul.mubr.msk.f32.vlgmr.msra.gmra.mrb[22].mxu0 %vm912_vm10, %v2553_v9  ;;  %6204 = vmatmul.mubr.msk.f32.vlgmr.msra.gmra.mrb[24].mxu1 %vm912_vm10, %v2553_v9 }
 0xc19   :  { %6954 = vmatpush3.bf16.msra.mxu0 %v8095_v45  ;;  %6962 = vmatpush3.bf16.msra.mxu1 %v8136_v18 }
 0xc1a   :  { %6956 = vmatprep.subr.bf16.mxu0 %v8984_v47  ;;  %6964 = vmatprep.subr.bf16.mxu1 %v8142_v15 }
 0xc1d   :  { %6958 = vmatpush3.bf16.msra.mxu0 %v8984_v47  ;;  %6966 = vmatpush3.bf16.msra.mxu1 %v8142_v15 }
 0xc1e   :  { %6968 = vmatprep.subr.bf16.mxu0 %v8149_v60  ;;  %6976 = vmatprep.subr.bf16.mxu1 %v7723_v12 }
 0xceb   :  { %v6178_v8 = vpop.f32.mrb[22].mxu0  ;;  %v6205_v58 = vpop.f32.mrb[24].mxu1 }
 0xcec   :  { %v2632_v10 = vadd.f32 %v6178_v8, %v8106_v24  ;;  %v2626_v50 = vpop.f32.mrb[23].mxu0  ;;  %v2703_v20 = vpop.f32.mrb[25].mxu1  ;;  %v2709_v4 = vadd.f32 %v6205_v58, %v8119_v54 }
 0xced   :  { %v2627_v57 = vadd.f32 %v8106_v24, %v2626_v50  ;;  %v2704_v17 = vadd.f32 %v8119_v54, %v2703_v20  ;;  %v8377_v54 = vadd.f32 %v8157_v23, %v8154_v2 }
 0xcee   :  { %v2636_v28 = vadd.f32 %v2632_v10, %v8109_v29  ;;  %v2713_v31 = vadd.f32 %v2709_v4, %v8985_v51 }
 0xcef   :  { %v2635_v13 = vadd.f32 %v2627_v57, %v8113_v25  ;;  %v2712_v53 = vadd.f32 %v2704_v17, %v8986_v41 }
 0xcf0   :  { %v5299_v16 = vmul.f32 -1.442695, %v2636_v28 }
 0xcf1   :  { %v5298_v36 = vmul.f32 -1.442695, %v2635_v13 }
 0xcf2   :  { %7384 = vpow2.f32 %v5299_v16 }
 0xcf3   :  { %7386 = vpow2.f32 %v5298_v36 }
 0xcf4   :  { %7388 = vtanh.f32 %v2713_v31 }
 0xcf5   :  { %7390 = vtanh.f32 %v2712_v53 }
 0xcfc   :  { %v7385_v14 = vpop.eup %7384 }
 0xcfd   :  { %v7387_v9 = vpop.eup %7386  ;;  %v2721_v21 = vadd.f32 1.0, %v7385_v14 }
 0xcfe   :  { %v2720_v24 = vadd.f32 1.0, %v7387_v9  ;;  %v7389_v8 = vpop.eup %7388 }
 0xcff   :  { %7392 = vrcp.f32 %v2721_v21  ;;  %v7391_v10 = vpop.eup %7390 }
 0xd00   :  { %7394 = vrcp.f32 %v2720_v24 }
 0xd09   :  { %v7393_v50 = vpop.eup %7392 }
 0xd0a   :  { %v7395_v57 = vpop.eup %7394  ;;  %v2729_v28 = vmul.f32 %v7393_v50, %v7389_v8 }
 0xd0b   :  { %v2728_v58 = vmul.f32 %v7395_v57, %v7391_v10 }
 0xd0d   :  { %6214 = vmatprep.mubr.msk.f32.mxu0 %vm296_vm1, %v2728_v58  ;;  %v8988_v58 = vld [vmem:[#allocation41_spill] sm:$0xff] }
 0xd0e   :  { %6215 = vmatmul.mubr.msk.f32.vlgmr.msra.gmra.mrb[20].mxu0 %vm296_vm1, %v2729_v28 }
 0xd0f   :  { %6970 = vmatpush3.bf16.msra.mxu0 %v8149_v60 }
 0xd10   :  { %6972 = vmatprep.subr.bf16.mxu0 %v8169_v59 }
 0xd13   :  { %6974 = vmatpush3.bf16.msra.mxu0 %v8169_v59 }
 0xd14   :  { %6986 = vmatprep.subr.bf16.mxu0 %v7760_v27 }
 0xde1   :  { %v6216_v20 = vpop.f32.mrb[20].mxu0 }
 0xde2   :  { %v7284_v13 = vadd.f32 %v8377_v54, %v6216_v20  ;;  %v2802_v16 = vpop.f32.mrb[21].mxu0 }
 0xde3   :  { %v7286_v36 = vadd.f32 %v8377_v54, %v2802_v16  ;;  %v8991_v16 = vld [vmem:[#allocation20_spill] sm:$0xff] }
 0xde4   :  { %v2814_v17 = vmul.f32 0.70710677, %v7284_v13  ;;  %v8989_v13 = vld [vmem:[#allocation18_spill] sm:$0xff] }
 0xde5   :  { %v2813_v4 = vmul.f32 0.70710677, %v7286_v36  ;;  %v8992_v36 = vld [vmem:[#allocation21_spill] sm:$0xff] }
 0xde7   :  { %6225 = vmatprep.mubr.msk.f32.mxu1 %vm296_vm1, %v2813_v4  ;;  %v8993_v4 = vld [vmem:[#allocation22_spill] sm:$0xff] }
 0xde8   :  { %6226 = vmatmul.mubr.msk.f32.vlgmr.msra.gmra.mrb[26].mxu1 %vm296_vm1, %v2814_v17  ;;  %v8994_v17 = vld [vmem:[#allocation23_spill] sm:$0xff] }
 0xde9   :  { %6978 = vmatpush3.bf16.msra.mxu1 %v7723_v12 }
 0xdea   :  { %6979 = vmatprep.subr.bf16.mxu1 %v8971_v48 }
 0xebb   :  { %v6227_v31 = vpop.f32.mrb[26].mxu1 }
 0xebc   :  { %v2893_v2 = vadd.f32 %v6227_v31, %v8175_v26  ;;  %v2887_v23 = vpop.f32.mrb[27].mxu1  ;;  %v8995_v31 = vld [vmem:[#allocation25_spill] sm:$0xff] }
 0xebd   :  { %v2888_v53 = vadd.f32 %v8175_v26, %v2887_v23  ;;  %v8987_v26 = vld [vmem:[#allocation24_spill] sm:$0xff] }
 0xebe   :  { %v2897_v9 = vmax.f32 %v2893_v2, 0.0  ;;  %v8996_v2 = vld [vmem:[#allocation26_spill] sm:$0xff] }
 0xebf   :  { %v2896_v14 = vmax.f32 %v2888_v53, 0.0 }
 0xec1   :  { %6236 = vmatprep.mubr.msk.f32.mxu0 %vm296_vm1, %v2896_v14  ;;  %v8437_v14 = vld [vmem:[%s8943_s9] ss:$0 sm:$0xff] }
 0xec2   :  { %6237 = vmatmul.mubr.msk.f32.vlgmr.msra.gmra.mrb[24].mxu0 %vm296_vm1, %v2897_v9  ;;  %8997 = vst [vmem:[#allocation29_spill] sm:$0xff] %v8437_v14 }
 0xec3   :  { %6988 = vmatpush3.bf16.msra.mxu0 %v7760_v27 }
 0xec4   :  { %6990 = vmatprep.subr.bf16.mxu0 %v7767_v32 }
 0xec7   :  { %6992 = vmatpush3.bf16.msra.mxu0 %v7767_v32 }
 0xec8   :  { %6994 = vmatprep.subr.bf16.mxu0 %v7782_v40 }
 0xecb   :  { %6996 = vmatpush3.bf16.msra.mxu0 %v7782_v40 }
 0xecc   :  { %6998 = vmatprep.subr.bf16.mxu0 %v7794_v46 }
 0xecf   :  { %7000 = vmatpush3.bf16.msra.mxu0 %v7794_v46 }
 0xed0   :  { %7002 = vmatprep.subr.bf16.mxu0 %v8987_v26 }
 0xed3   :  { %7004 = vmatpush3.bf16.msra.mxu0 %v8987_v26 }
 0xed4   :  { %7006 = vmatprep.subr.bf16.mxu0 %v7839_v6 }
 0xed7   :  { %7008 = vmatpush3.bf16.msra.mxu0 %v7839_v6 }
 0xed8   :  { %7034 = vmatprep.subr.bf16.mxu0 %v7913_v34 }
 0xf95   :  { %v6238_v21 = vpop.f32.mrb[24].mxu0 }
 0xf96   :  { %v2976_v24 = vadd.f32 %v6238_v21, %v8194_v5  ;;  %v2970_v8 = vpop.f32.mrb[25].mxu0 }
 0xf97   :  { %v2971_v10 = vadd.f32 %v8194_v5, %v2970_v8  ;;  %v8990_v5 = vld [vmem:[#allocation19_spill] sm:$0xff]  ;;  %v8446_v8 = vld [vmem:[%s8944_s13] sm:$0x1] }
 0xf98   :  { %v2980_v50 = vmul.f32 0.25, %v2976_v24  ;;  %8998 = vst [vmem:[#allocation31_spill] sm:$0xff] %v8446_v8 }
 0xf99   :  { %v2979_v57 = vmul.f32 0.25, %v2971_v10 }
 0xf9a   :  { %v8407_v20 = vadd.f32 %v2980_v50, %v8988_v58 }
 0xf9b   :  { %v8404_v28 = vadd.f32 %v2979_v57, %v8199_v22  ;;  %v8419_v22 = vld [vmem:[%s7550_s25 + $0x2] sm:$0x1] }
 0xf9d   :  { %6243 = vmatprep.mubr.msk.f32.mxu1 %vm691_vm2, %v8404_v28 }
 0xf9e   :  { %6244 = vmatmul.mubr.msk.f32.vlgmr.msra.gmra.mrb[28].mxu1 %vm691_vm2, %v8407_v20 }
 0xf9f   :  { %6981 = vmatpush3.bf16.msra.mxu1 %v8989_v13  ;;  %6254 = vmatprep.mubr.msk.f32.mxu1 %vm7510_vm3, %v8973_v62 }
 0xfa0   :  { %6982 = vmatprep.subr.bf16.mxu1 %v8971_v48 }
 0xfa3   :  { %6984 = vmatpush3.bf16.msra.mxu1 %v8990_v5 }
 0xfa4   :  { %7010 = vmatprep.subr.bf16.mxu1 %v8991_v16 }
 0xfa6   :  { %6255 = vmatmul.mubr.msk.f32.vlgmr.msra.gmra.mrb[30].mxu1 %vm296_vm1, %v8419_v22 }
 0xfa7   :  { %7012 = vmatpush3.bf16.msra.mxu1 %v8991_v16 }
 0xfa8   :  { %7014 = vmatprep.subr.bf16.mxu1 %v8992_v36 }
 0xfab   :  { %7016 = vmatpush3.bf16.msra.mxu1 %v8992_v36 }
 0xfac   :  { %7018 = vmatprep.subr.bf16.mxu1 %v8993_v4 }
 0xfaf   :  { %7020 = vmatpush3.bf16.msra.mxu1 %v8993_v4 }
 0xfb0   :  { %7022 = vmatprep.subr.bf16.mxu1 %v8994_v17 }
 0xfb3   :  { %7024 = vmatpush3.bf16.msra.mxu1 %v8994_v17 }
 0xfb4   :  { %7026 = vmatprep.subr.bf16.mxu1 %v8995_v31 }
 0xfb7   :  { %7028 = vmatpush3.bf16.msra.mxu1 %v8995_v31 }
 0xfb8   :  { %7030 = vmatprep.subr.bf16.mxu1 %v8996_v2 }
 0xfbb   :  { %7032 = vmatpush3.bf16.msra.mxu1 %v8996_v2 }
 0xfbc   :  { %7042 = vmatprep.subr.bf16.mxu1 %v7918_v43 }
0x1071   :  { %v6245_v23 = vpop.f32.mrb[28].mxu1 }
0x1072   :  { %v3056_v53 = vpop.f32.mrb[29].mxu1  ;;  %v8440_v9 = vadd.f32 %v8437_v14, %v6245_v23 }
0x1073   :  { %v8443_v21 = vadd.f32 %v8437_v14, %v3056_v53 }
0x1074   :  { %v8903_v57 = vmax.f32 %v8440_v9, 0.0 }
0x1075   :  { %v8904_v58 = vmax.f32 %v8443_v21, 0.0 }
0x1079   :  { %v3136_v24 = vpop.f32.mrb[30].mxu1 }
0x107a   :  { %v3137_v10 = vadd.f32 %v8446_v8, %v3136_v24  ;;  %v6256_v50 = vpop.f32.mrb[31].mxu1 }
0x107c   :  { %v3143_v2 = vrot.slane %v3137_v10, %v7860_v19 }
0x107e   :  { %v3145_v31 = vadd.f32 %v3143_v2, %v8903_v57  ;;  %v3144_v23 = vadd.f32 %v3143_v2, %v8904_v58 }
0x1080   :  { %3162 = vrot.lane.b32.xlu1 %v3145_v31, %s7512_s17  ;;  %v3147_v53 = vrot.slane %v3145_v31, 7  ;;  %v3153_v14 = vrot.slane %v3145_v31, 1  ;;  %3160 = vrot.lane.b32.xlu0 %v3144_v23, %s7512_s17  ;;  %v3146_v24 = vrot.slane %v3144_v23, 7  ;;  %v3152_v50 = vrot.slane %v3144_v23, 1 }
0x1082   :  { %v3155_v8 = vsel %vm868_vm7, %v3153_v14, %v3152_v50  ;;  %v3154_v10 = vsel %vm868_vm7, %v3152_v50, %v3153_v14  ;;  %v3148_v57 = vsel %vm861_vm6, %v3146_v24, %v3147_v53  ;;  %v3149_v2 = vsel %vm861_vm6, %v3147_v53, %v3146_v24 }
0x1083   :  { %v3157_v58 = vmul.f32 %v7875_v35, %v3155_v8  ;;  %v3156_v31 = vmul.f32 %v7878_v37, %v3154_v10  ;;  %v3151_v4 = vmul.f32 %v7895_v61, %v3148_v57  ;;  %v3150_v14 = vmul.f32 %v7898_v1, %v3149_v2 }
0x1085   :  { %3170 = vrot.lane.b32.xlu1 %v3157_v58, %s7513_s21  ;;  %3168 = vrot.lane.b32.xlu0 %v3156_v31, %s7513_s21 }
0x10f2   :  { %v3163_v23 = vpop.permute.xlu1 %3162  ;;  %v3161_v17 = vpop.permute.xlu0 %3160 }
0x10f3   :  { %v3175_v50 = vsel %vm296_vm1, %v3151_v4, %v3163_v23  ;;  %v3174_v36 = vsel %vm296_vm1, %v3150_v14, %v3161_v17  ;;  %v8999_v4 = vld [vmem:[#allocation28_spill] sm:$0xff] }
0x10f4   :  { %v8489_v17 = vld [vmem:[%s8949_s14] ss:$0 sm:$0xff] }
0x10f5   :  { %9000 = vst [vmem:[#allocation35_spill] sm:$0xff] %v8489_v17 }
0x10f7   :  { %v3171_v16 = vpop.permute.xlu1 %3170  ;;  %v3169_v53 = vpop.permute.xlu0 %3168 }
0x10f8   :  { %v3177_v8 = vsel %vm167_vm0, %v3175_v50, %v3171_v16  ;;  %v3176_v24 = vsel %vm167_vm0, %v3174_v36, %v3169_v53  ;;  %v8496_v53 = vld [vmem:[%s8952_s19] ss:$0 sm:$0xff] }
0x10f9   :  { %6281 = vmatprep.mubr.msk.f32.mxu0 %vm912_vm10, %v3176_v24  ;;  %6308 = vmatprep.mubr.msk.f32.mxu1 %vm912_vm10, %v3176_v24 }
0x10fa   :  { %6282 = vmatmul.mubr.msk.f32.vlgmr.msra.gmra.mrb[26].mxu0 %vm912_vm10, %v3177_v8  ;;  %6309 = vmatmul.mubr.msk.f32.vlgmr.msra.gmra.mrb[32].mxu1 %vm912_vm10, %v3177_v8 }
0x10fb   :  { %7036 = vmatpush3.bf16.msra.mxu0 %v7913_v34  ;;  %7044 = vmatpush3.bf16.msra.mxu1 %v7918_v43 }
0x10fc   :  { %7038 = vmatprep.subr.bf16.mxu0 %v7920_v44  ;;  %7046 = vmatprep.subr.bf16.mxu1 %v8999_v4 }
0x10ff   :  { %7040 = vmatpush3.bf16.msra.mxu0 %v7920_v44  ;;  %7048 = vmatpush3.bf16.msra.mxu1 %v8999_v4 }
0x1100   :  { %7049 = vmatprep.subr.bf16.mxu0 %v8971_v48  ;;  %7056 = vmatprep.subr.bf16.mxu1 %v7985_v63 }
0x11cd   :  { %v6283_v16 = vpop.f32.mrb[26].mxu0  ;;  %v6310_v36 = vpop.f32.mrb[32].mxu1 }
0x11ce   :  { %v3256_v57 = vadd.f32 %v8489_v17, %v6283_v16  ;;  %v3250_v58 = vpop.f32.mrb[27].mxu0  ;;  %v3327_v10 = vpop.f32.mrb[33].mxu1  ;;  %v3333_v8 = vadd.f32 %v8496_v53, %v6310_v36 }
0x11cf   :  { %v3251_v2 = vadd.f32 %v8489_v17, %v3250_v58  ;;  %v3328_v24 = vadd.f32 %v8496_v53, %v3327_v10  ;;  %v9005_v10 = vld [vmem:[#allocation37_spill] sm:$0xff] }
0x11d0   :  { %v3260_v31 = vadd.f32 %v3256_v57, %v7940_v3  ;;  %v3337_v16 = vadd.f32 %v3333_v8, %v7956_v56 }
0x11d1   :  { %v3259_v23 = vadd.f32 %v3251_v2, %v7944_v11  ;;  %v3336_v4 = vadd.f32 %v3328_v24, %v7959_v42 }
0x11d2   :  { %v5314_v14 = vmul.f32 -1.442695, %v3260_v31 }
0x11d3   :  { %v5313_v50 = vmul.f32 -1.442695, %v3259_v23 }
0x11d4   :  { %7396 = vpow2.f32 %v5314_v14 }
0x11d5   :  { %7398 = vpow2.f32 %v5313_v50 }
0x11d6   :  { %7400 = vtanh.f32 %v3337_v16  ;;  %v8539_v16 = vld [vmem:[%s8958_s30] ss:$0 sm:$0xff] }
0x11d7   :  { %7402 = vtanh.f32 %v3336_v4  ;;  %v9003_v4 = vld [vmem:[#allocation36_spill] sm:$0xff] }
0x11de   :  { %v7397_v44 = vpop.eup %7396 }
0x11df   :  { %v7399_v58 = vpop.eup %7398  ;;  %v3345_v17 = vadd.f32 1.0, %v7397_v44  ;;  %v9001_v44 = vld [vmem:[#allocation33_spill] sm:$0xff] }
0x11e0   :  { %v3344_v57 = vadd.f32 1.0, %v7399_v58  ;;  %v7401_v2 = vpop.eup %7400 }
0x11e1   :  { %7404 = vrcp.f32 %v3345_v17  ;;  %v7403_v31 = vpop.eup %7402  ;;  %v9004_v17 = vld [vmem:[#allocation34_spill] sm:$0xff] }
0x11e2   :  { %7406 = vrcp.f32 %v3344_v57 }
0x11eb   :  { %v7405_v23 = vpop.eup %7404 }
0x11ec   :  { %v7407_v14 = vpop.eup %7406  ;;  %v3353_v50 = vmul.f32 %v7405_v23, %v7401_v2  ;;  %v9006_v2 = vmax.f32 %v8440_v9, 0.0  ;;  %v9007_v23 = vmax.f32 %v8443_v21, 0.0 }
0x11ed   :  { %v3352_v36 = vmul.f32 %v7407_v14, %v7403_v31 }
0x11ef   :  { %6319 = vmatprep.mubr.msk.f32.mxu0 %vm296_vm1, %v3352_v36  ;;  %6330 = vmatprep.mubr.msk.f32.mxu1 %vm296_vm1, %v3352_v36  ;;  %v8548_v36 = vld [vmem:[%s8944_s13 + $0x1] sm:$0x1] }
0x11f0   :  { %6320 = vmatmul.mubr.msk.f32.vlgmr.msra.gmra.mrb[28].mxu0 %vm296_vm1, %v3353_v50  ;;  %6331 = vmatmul.mubr.msk.f32.vlgmr.msra.gmra.mrb[34].mxu1 %vm296_vm1, %v3353_v50 }
0x11f1   :  { %7051 = vmatpush3.bf16.msra.mxu0 %v7965_v30  ;;  %6341 = vmatprep.mubr.msk.f32.mxu0 %vm7510_vm3, %v8973_v62 }
0x11f2   :  { %7052 = vmatprep.subr.bf16.mxu0 %v8971_v48  ;;  %7058 = vmatpush3.bf16.msra.mxu1 %v7985_v63 }
0x11f3   :  { %7060 = vmatprep.subr.bf16.mxu1 %v7992_v7 }
0x11f5   :  { %7054 = vmatpush3.bf16.msra.mxu0 %v7974_v39 }
0x11f6   :  { %7080 = vmatprep.subr.bf16.mxu0 %v7990_v55  ;;  %7062 = vmatpush3.bf16.msra.mxu1 %v7992_v7 }
0x11f7   :  { %7064 = vmatprep.subr.bf16.mxu1 %v8007_v38 }
0x11f8   :  { %6342 = vmatmul.mubr.msk.f32.vlgmr.msra.gmra.mrb[30].mxu0 %vm296_vm1, %v8419_v22  ;;  %v9002_v22 = vld [vmem:[#allocation32_spill] sm:$0xff] }
0x11f9   :  { %7082 = vmatpush3.bf16.msra.mxu0 %v7990_v55 }
0x11fa   :  { %7084 = vmatprep.subr.bf16.mxu0 %v8974_v49  ;;  %7066 = vmatpush3.bf16.msra.mxu1 %v8007_v38 }
0x11fb   :  { %7068 = vmatprep.subr.bf16.mxu1 %v8975_v33 }
0x11fd   :  { %7086 = vmatpush3.bf16.msra.mxu0 %v8974_v49 }
0x11fe   :  { %7088 = vmatprep.subr.bf16.mxu0 %v8976_v52  ;;  %7070 = vmatpush3.bf16.msra.mxu1 %v8975_v33 }
0x11ff   :  { %7072 = vmatprep.subr.bf16.mxu1 %v9001_v44 }
0x1201   :  { %7090 = vmatpush3.bf16.msra.mxu0 %v8976_v52 }
0x1202   :  { %7092 = vmatprep.subr.bf16.mxu0 %v9002_v22  ;;  %7074 = vmatpush3.bf16.msra.mxu1 %v9001_v44 }
0x1203   :  { %7076 = vmatprep.subr.bf16.mxu1 %v9003_v4 }
0x1205   :  { %7094 = vmatpush3.bf16.msra.mxu0 %v9002_v22 }
0x1206   :  { %7096 = vmatprep.subr.bf16.mxu0 %v9004_v17  ;;  %7078 = vmatpush3.bf16.msra.mxu1 %v9003_v4 }
0x1207   :  { %7104 = vmatprep.subr.bf16.mxu1 %v8095_v45 }
0x1209   :  { %7098 = vmatpush3.bf16.msra.mxu0 %v9004_v17 }
0x120a   :  { %7100 = vmatprep.subr.bf16.mxu0 %v9005_v10 }
0x120d   :  { %7102 = vmatpush3.bf16.msra.mxu0 %v9005_v10 }
0x120e   :  { %7112 = vmatprep.subr.bf16.mxu0 %v8136_v18 }
0x12c3   :  { %v6321_v8 = vpop.f32.mrb[28].mxu0 }
0x12c4   :  { %v3426_v24 = vpop.f32.mrb[29].mxu0  ;;  %v3432_v58 = vadd.f32 %v8539_v16, %v6321_v8 }
0x12c5   :  { %v3427_v57 = vadd.f32 %v8539_v16, %v3426_v24 }
0x12c6   :  { %v3511_v31 = vadd.f32 %v3432_v58, %v9006_v2 }
0x12c7   :  { %v3510_v14 = vadd.f32 %v3427_v57, %v9007_v23 }
0x12c8   :  { %v3513_v4 = vmul.f32 0.70710677, %v3511_v31 }
0x12c9   :  { %v3512_v22 = vmul.f32 0.70710677, %v3510_v14 }
0x12cb   :  { %v3582_v50 = vpop.f32.mrb[30].mxu0 }
0x12cc   :  { %v3583_v10 = vadd.f32 %v8548_v36, %v3582_v50  ;;  %v6343_v17 = vpop.f32.mrb[31].mxu0 }
0x12ce   :  { %v3589_v44 = vrot.slane %v3583_v10, %v7860_v19 }
0x12d0   :  { %v3591_v52 = vadd.f32 %v3589_v44, %v3513_v4  ;;  %v3590_v8 = vadd.f32 %v3589_v44, %v3512_v22 }
0x12d2   :  { %3608 = vrot.lane.b32.xlu1 %v3591_v52, %s7512_s17  ;;  %v3593_v24 = vrot.slane %v3591_v52, 7  ;;  %v3599_v9 = vrot.slane %v3591_v52, 1  ;;  %3606 = vrot.lane.b32.xlu0 %v3590_v8, %s7512_s17  ;;  %v3592_v21 = vrot.slane %v3590_v8, 7  ;;  %v3598_v58 = vrot.slane %v3590_v8, 1 }
0x12d4   :  { %v3601_v57 = vsel %vm868_vm7, %v3599_v9, %v3598_v58  ;;  %v3600_v17 = vsel %vm868_vm7, %v3598_v58, %v3599_v9  ;;  %v3594_v2 = vsel %vm861_vm6, %v3592_v21, %v3593_v24  ;;  %v3595_v44 = vsel %vm861_vm6, %v3593_v24, %v3592_v21 }
0x12d5   :  { %v3603_v22 = vmul.f32 %v7875_v35, %v3601_v57  ;;  %v3602_v52 = vmul.f32 %v7878_v37, %v3600_v17  ;;  %v3597_v31 = vmul.f32 %v7895_v61, %v3594_v2  ;;  %v3596_v23 = vmul.f32 %v7898_v1, %v3595_v44  ;;  %v8585_v17 = vld [vmem:[%s8949_s14 + $0x1] ss:$0 sm:$0xff] }
0x12d7   :  { %3616 = vrot.lane.b32.xlu1 %v3603_v22, %s7513_s21  ;;  %3614 = vrot.lane.b32.xlu0 %v3602_v52, %s7513_s21 }
0x1344   :  { %v3609_v4 = vpop.permute.xlu1 %3608  ;;  %v3607_v10 = vpop.permute.xlu0 %3606 }
0x1345   :  { %v3621_v14 = vsel %vm296_vm1, %v3597_v31, %v3609_v4  ;;  %v3620_v50 = vsel %vm296_vm1, %v3596_v23, %v3607_v10 }
0x1349   :  { %v3617_v8 = vpop.permute.xlu1 %3616  ;;  %v3615_v24 = vpop.permute.xlu0 %3614 }
0x134a   :  { %v3623_v9 = vsel %vm167_vm0, %v3621_v14, %v3617_v8  ;;  %v3622_v21 = vsel %vm167_vm0, %v3620_v50, %v3615_v24  ;;  %v8592_v14 = vld [vmem:[%s8952_s19 + $0x1] ss:$0 sm:$0xff] }
0x134b   :  { %6368 = vmatprep.mubr.msk.f32.mxu1 %vm912_vm10, %v3622_v21  ;;  %6395 = vmatprep.mubr.msk.f32.mxu0 %vm912_vm10, %v3622_v21 }
0x134c   :  { %6369 = vmatmul.mubr.msk.f32.vlgmr.msra.gmra.mrb[36].mxu1 %vm912_vm10, %v3623_v9  ;;  %6396 = vmatmul.mubr.msk.f32.vlgmr.msra.gmra.mrb[32].mxu0 %vm912_vm10, %v3623_v9 }
0x134d   :  { %7106 = vmatpush3.bf16.msra.mxu1 %v8095_v45  ;;  %7114 = vmatpush3.bf16.msra.mxu0 %v8136_v18 }
0x134e   :  { %7108 = vmatprep.subr.bf16.mxu1 %v8984_v47  ;;  %7116 = vmatprep.subr.bf16.mxu0 %v8142_v15 }
0x1351   :  { %7110 = vmatpush3.bf16.msra.mxu1 %v8984_v47  ;;  %7118 = vmatpush3.bf16.msra.mxu0 %v8142_v15 }
0x1352   :  { %7120 = vmatprep.subr.bf16.mxu1 %v8149_v60  ;;  %7128 = vmatprep.subr.bf16.mxu0 %v7723_v12 }
0x141f   :  { %v6370_v58 = vpop.f32.mrb[36].mxu1  ;;  %v6397_v57 = vpop.f32.mrb[32].mxu0 }
0x1420   :  { %v3702_v2 = vadd.f32 %v8585_v17, %v6370_v58  ;;  %v3696_v44 = vpop.f32.mrb[37].mxu1  ;;  %v3773_v22 = vpop.f32.mrb[33].mxu0  ;;  %v3779_v50 = vadd.f32 %v8592_v14, %v6397_v57 }
0x1421   :  { %v3697_v52 = vadd.f32 %v8585_v17, %v3696_v44  ;;  %v3774_v8 = vadd.f32 %v8592_v14, %v3773_v22 }
0x1422   :  { %v3706_v4 = vadd.f32 %v3702_v2, %v8109_v29  ;;  %v3783_v24 = vadd.f32 %v3779_v50, %v8985_v51 }
0x1423   :  { %v3705_v10 = vadd.f32 %v3697_v52, %v8113_v25  ;;  %v3782_v9 = vadd.f32 %v3774_v8, %v8986_v41 }
0x1424   :  { %v5325_v31 = vmul.f32 -1.442695, %v3706_v4 }
0x1425   :  { %v5324_v23 = vmul.f32 -1.442695, %v3705_v10 }
0x1426   :  { %7408 = vpow2.f32 %v5325_v31 }
0x1427   :  { %7410 = vpow2.f32 %v5324_v23 }
0x1428   :  { %7412 = vtanh.f32 %v3783_v24 }
0x1429   :  { %7414 = vtanh.f32 %v3782_v9 }
0x1430   :  { %v7409_v21 = vpop.eup %7408 }
0x1431   :  { %v7411_v58 = vpop.eup %7410  ;;  %v3791_v44 = vadd.f32 1.0, %v7409_v21 }
0x1432   :  { %v3790_v2 = vadd.f32 1.0, %v7411_v58  ;;  %v7413_v52 = vpop.eup %7412 }
0x1433   :  { %7416 = vrcp.f32 %v3791_v44  ;;  %v7415_v4 = vpop.eup %7414  ;;  %v8611_v44 = vld [vmem:[%s7660_s20] ss:$0 sm:$0xff] }
0x1434   :  { %7418 = vrcp.f32 %v3790_v2 }
0x143d   :  { %v7417_v10 = vpop.eup %7416 }
0x143e   :  { %v7419_v31 = vpop.eup %7418  ;;  %v3799_v23 = vmul.f32 %v7417_v10, %v7413_v52 }
0x143f   :  { %v3798_v57 = vmul.f32 %v7419_v31, %v7415_v4 }
0x1441   :  { %6406 = vmatprep.mubr.msk.f32.mxu1 %vm296_vm1, %v3798_v57 }
0x1442   :  { %6407 = vmatmul.mubr.msk.f32.vlgmr.msra.gmra.mrb[34].mxu1 %vm296_vm1, %v3799_v23 }
0x1443   :  { %7122 = vmatpush3.bf16.msra.mxu1 %v8149_v60 }
0x1444   :  { %7124 = vmatprep.subr.bf16.mxu1 %v8169_v59 }
0x1447   :  { %7126 = vmatpush3.bf16.msra.mxu1 %v8169_v59 }
0x1448   :  { %7138 = vmatprep.subr.bf16.mxu1 %v7760_v27 }
0x1515   :  { %v6408_v22 = vpop.f32.mrb[34].mxu1 }
0x1516   :  { %v7288_v50 = vadd.f32 %v8377_v54, %v6408_v22  ;;  %v3872_v8 = vpop.f32.mrb[35].mxu1 }
0x1517   :  { %v7290_v24 = vadd.f32 %v8377_v54, %v3872_v8  ;;  %v9013_v8 = vld [vmem:[#allocation26_spill] sm:$0xff] }
0x1518   :  { %v3884_v21 = vmul.f32 0.70710677, %v7288_v50  ;;  %v9011_v50 = vld [vmem:[#allocation23_spill] sm:$0xff] }
0x1519   :  { %v3883_v9 = vmul.f32 0.70710677, %v7290_v24 }
0x151b   :  { %6417 = vmatprep.mubr.msk.f32.mxu0 %vm296_vm1, %v3883_v9 }
0x151c   :  { %6418 = vmatmul.mubr.msk.f32.vlgmr.msra.gmra.mrb[34].mxu0 %vm296_vm1, %v3884_v21  ;;  %v9014_v21 = vld [vmem:[#allocation29_spill] sm:$0xff] }
0x151d   :  { %7130 = vmatpush3.bf16.msra.mxu0 %v7723_v12 }
0x151e   :  { %7131 = vmatprep.subr.bf16.mxu0 %v8971_v48 }
0x15ef   :  { %v6419_v58 = vpop.f32.mrb[34].mxu0 }
0x15f0   :  { %v3963_v2 = vadd.f32 %v8611_v44, %v6419_v58  ;;  %v3957_v52 = vpop.f32.mrb[35].mxu0 }
0x15f1   :  { %v3958_v4 = vadd.f32 %v8611_v44, %v3957_v52 }
0x15f2   :  { %v3967_v31 = vmax.f32 %v3963_v2, 0.0 }
0x15f3   :  { %v3966_v10 = vmax.f32 %v3958_v4, 0.0  ;;  %v9015_v4 = vld [vmem:[#allocation31_spill] sm:$0xff] }
0x15f5   :  { %6428 = vmatprep.mubr.msk.f32.mxu1 %vm296_vm1, %v3966_v10 }
0x15f6   :  { %6429 = vmatmul.mubr.msk.f32.vlgmr.msra.gmra.mrb[38].mxu1 %vm296_vm1, %v3967_v31 }
0x15f7   :  { %7140 = vmatpush3.bf16.msra.mxu1 %v7760_v27  ;;  %v8630_v27 = vld [vmem:[%s7670_s4] ss:$0 sm:$0xff] }
0x15f8   :  { %7142 = vmatprep.subr.bf16.mxu1 %v7767_v32 }
0x15fb   :  { %7144 = vmatpush3.bf16.msra.mxu1 %v7767_v32 }
0x15fc   :  { %7146 = vmatprep.subr.bf16.mxu1 %v7782_v40 }
0x15ff   :  { %7148 = vmatpush3.bf16.msra.mxu1 %v7782_v40 }
0x1600   :  { %7150 = vmatprep.subr.bf16.mxu1 %v7794_v46 }
0x1603   :  { %7152 = vmatpush3.bf16.msra.mxu1 %v7794_v46 }
0x1604   :  { %7154 = vmatprep.subr.bf16.mxu1 %v8987_v26 }
0x1607   :  { %7156 = vmatpush3.bf16.msra.mxu1 %v8987_v26 }
0x1608   :  { %7158 = vmatprep.subr.bf16.mxu1 %v7839_v6 }
0x160b   :  { %7160 = vmatpush3.bf16.msra.mxu1 %v7839_v6  ;;  %v8650_v6 = vld [vmem:[%s7550_s25 + $0x3] sm:$0x1]  ;;  %s7514_s25 = smov [#allocation2]  }
0x160c   :  { %7186 = vmatprep.subr.bf16.mxu1 %v7913_v34  ;;  %s5136_s12 = sshll.u32 %s7514_s25, 4  ;;  %s5137_s12 = int_to_ptr.vmem [resolvable:$true] %s5136_s12 }
0x160d   :  { %s7454_s20 = scalar_lea.vmem %s5137_s12, 256  ;;  %p7459_p1 = scmp.lt.s32.totalorder %s5137_s12, %s5137_s12 }
0x160e   :  { %p7455_p0 = scmp.ne.s32.totalorder %s5137_s12, %s7454_s20  ;;  %p7460_p2 = scmp.lt.s32.totalorder %s7454_s20, %s7454_s20 }
0x1610   :  { %p7461_p3 = por %p7460_p2, %p7459_p1 }
0x1612   :  { %p7462_p4 = pnand %p7461_p3, %p7455_p0 }
0x16c9   :  { %v6430_v12 = vpop.f32.mrb[38].mxu1 }
0x16ca   :  { %v4046_v32 = vadd.f32 %v8630_v27, %v6430_v12  ;;  %v4040_v40 = vpop.f32.mrb[39].mxu1 }
0x16cb   :  { %v4041_v23 = vadd.f32 %v8630_v27, %v4040_v40 }
0x16cc   :  { %v4050_v46 = vmul.f32 0.25, %v4046_v32 }
0x16cd   :  { %v4049_v57 = vmul.f32 0.25, %v4041_v23 }
0x16ce   :  { %v8638_v26 = vadd.f32 %v4050_v46, %v8407_v20  ;;  %v9009_v20 = vld [vmem:[#allocation21_spill] sm:$0xff] }
0x16cf   :  { %v8635_v22 = vadd.f32 %v4049_v57, %v8404_v28  ;;  %v9008_v28 = vld [vmem:[#allocation20_spill] sm:$0xff] }
0x16d1   :  { %6435 = vmatprep.mubr.msk.f32.mxu0 %vm691_vm2, %v8635_v22 }
0x16d2   :  { %6436 = vmatmul.mubr.msk.f32.vlgmr.msra.gmra.mrb[36].mxu0 %vm691_vm2, %v8638_v26 }
0x16d3   :  { %7133 = vmatpush3.bf16.msra.mxu0 %v8989_v13  ;;  %6446 = vmatprep.mubr.msk.f32.mxu0 %vm7510_vm3, %v8973_v62  ;;  %v9010_v13 = vld [vmem:[#allocation22_spill] sm:$0xff] }
0x16d4   :  { %7134 = vmatprep.subr.bf16.mxu0 %v8971_v48 }
0x16d7   :  { %7136 = vmatpush3.bf16.msra.mxu0 %v8990_v5  ;;  %v9012_v5 = vld [vmem:[#allocation25_spill] sm:$0xff] }
0x16d8   :  { %7162 = vmatprep.subr.bf16.mxu0 %v9008_v28 }
0x16da   :  { %6447 = vmatmul.mubr.msk.f32.vlgmr.msra.gmra.mrb[38].mxu0 %vm296_vm1, %v8650_v6 }
0x16db   :  { %7164 = vmatpush3.bf16.msra.mxu0 %v9008_v28 }
0x16dc   :  { %7166 = vmatprep.subr.bf16.mxu0 %v9009_v20 }
0x16df   :  { %7168 = vmatpush3.bf16.msra.mxu0 %v9009_v20 }
0x16e0   :  { %7170 = vmatprep.subr.bf16.mxu0 %v9010_v13 }
0x16e3   :  { %7172 = vmatpush3.bf16.msra.mxu0 %v9010_v13 }
0x16e4   :  { %7174 = vmatprep.subr.bf16.mxu0 %v9011_v50 }
0x16e7   :  { %7176 = vmatpush3.bf16.msra.mxu0 %v9011_v50 }
0x16e8   :  { %7178 = vmatprep.subr.bf16.mxu0 %v9012_v5 }
0x16eb   :  { %7180 = vmatpush3.bf16.msra.mxu0 %v9012_v5 }
0x16ec   :  { %7182 = vmatprep.subr.bf16.mxu0 %v9013_v8 }
0x16ef   :  { %7184 = vmatpush3.bf16.msra.mxu0 %v9013_v8 }
0x16f0   :  { %7194 = vmatprep.subr.bf16.mxu0 %v7918_v43 }
0x17a5   :  { %v6437_v24 = vpop.f32.mrb[36].mxu0 }
0x17a6   :  { %v4126_v9 = vpop.f32.mrb[37].mxu0  ;;  %v8668_v58 = vadd.f32 %v9014_v21, %v6437_v24 }
0x17a7   :  { %v8671_v2 = vadd.f32 %v9014_v21, %v4126_v9 }
0x17a8   :  { %v4136_v12 = vmax.f32 %v8668_v58, 0.0 }
0x17a9   :  { %v4135_v32 = vmax.f32 %v8671_v2, 0.0 }
0x17ad   :  { %v4206_v52 = vpop.f32.mrb[38].mxu0 }
0x17ae   :  { %v4207_v10 = vadd.f32 %v9015_v4, %v4206_v52  ;;  %v6448_v31 = vpop.f32.mrb[39].mxu0 }
0x17b0   :  { %v4213_v40 = vrot.slane %v4207_v10, %v7860_v19 }
0x17b2   :  { %v4215_v23 = vadd.f32 %v4213_v40, %v4136_v12  ;;  %v4214_v46 = vadd.f32 %v4213_v40, %v4135_v32 }
0x17b4   :  { %4232 = vrot.lane.b32.xlu1 %v4215_v23, %s7512_s17  ;;  %v4217_v57 = vrot.slane %v4215_v23, 7  ;;  %v4223_v28 = vrot.slane %v4215_v23, 1  ;;  %4230 = vrot.lane.b32.xlu0 %v4214_v46, %s7512_s17  ;;  %v4216_v20 = vrot.slane %v4214_v46, 7  ;;  %v4222_v13 = vrot.slane %v4214_v46, 1 }
0x17b6   :  { %v4225_v50 = vsel %vm868_vm7, %v4223_v28, %v4222_v13  ;;  %v4224_v5 = vsel %vm868_vm7, %v4222_v13, %v4223_v28  ;;  %v4218_v8 = vsel %vm861_vm6, %v4216_v20, %v4217_v57  ;;  %v4219_v24 = vsel %vm861_vm6, %v4217_v57, %v4216_v20  ;;  %v9016_v13 = vld [vmem:[#allocation27_spill] sm:$0xff] }
0x17b7   :  { %v4227_v9 = vmul.f32 %v7875_v35, %v4225_v50  ;;  %v4226_v21 = vmul.f32 %v7878_v37, %v4224_v5  ;;  %v4221_v10 = vmul.f32 %v7895_v61, %v4218_v8  ;;  %v4220_v31 = vmul.f32 %v7898_v1, %v4219_v24  ;;  %v9017_v50 = vld [vmem:[#allocation28_spill] sm:$0xff]  ;;  %v9018_v24 = vld [vmem:[#allocation35_spill] sm:$0xff] }
0x17b9   :  { %4240 = vrot.lane.b32.xlu1 %v4227_v9, %s7513_s21  ;;  %4238 = vrot.lane.b32.xlu0 %v4226_v21, %s7513_s21 }
0x1826   :  { %v4233_v52 = vpop.permute.xlu1 %4232  ;;  %v4231_v4 = vpop.permute.xlu0 %4230 }
0x1827   :  { %v4245_v40 = vsel %vm296_vm1, %v4221_v10, %v4233_v52  ;;  %v4244_v23 = vsel %vm296_vm1, %v4220_v31, %v4231_v4 }
0x182b   :  { %v4241_v46 = vpop.permute.xlu1 %4240  ;;  %v4239_v57 = vpop.permute.xlu0 %4238 }
0x182c   :  { %v4247_v28 = vsel %vm167_vm0, %v4245_v40, %v4241_v46  ;;  %v4246_v20 = vsel %vm167_vm0, %v4244_v23, %v4239_v57 }
0x182d   :  { %6473 = vmatprep.mubr.msk.f32.mxu1 %vm912_vm10, %v4246_v20  ;;  %6500 = vmatprep.mubr.msk.f32.mxu0 %vm912_vm10, %v4246_v20 }
0x182e   :  { %6474 = vmatmul.mubr.msk.f32.vlgmr.msra.gmra.mrb[40].mxu1 %vm912_vm10, %v4247_v28  ;;  %6501 = vmatmul.mubr.msk.f32.vlgmr.msra.gmra.mrb[40].mxu0 %vm912_vm10, %v4247_v28 }
0x182f   :  { %7188 = vmatpush3.bf16.msra.mxu1 %v7913_v34  ;;  %7196 = vmatpush3.bf16.msra.mxu0 %v7918_v43 }
0x1830   :  { %7190 = vmatprep.subr.bf16.mxu1 %v9016_v13  ;;  %7198 = vmatprep.subr.bf16.mxu0 %v9017_v50 }
0x1833   :  { %7192 = vmatpush3.bf16.msra.mxu1 %v9016_v13  ;;  %7200 = vmatpush3.bf16.msra.mxu0 %v9017_v50 }
0x1834   :  { %7201 = vmatprep.subr.bf16.mxu1 %v8971_v48  ;;  %7208 = vmatprep.subr.bf16.mxu0 %v7985_v63 }
0x1901   :  { %v6475_v5 = vpop.f32.mrb[40].mxu1  ;;  %v6502_v8 = vpop.f32.mrb[40].mxu0 }
0x1902   :  { %v4326_v9 = vadd.f32 %v9018_v24, %v6475_v5  ;;  %v4320_v21 = vpop.f32.mrb[41].mxu1  ;;  %v4397_v34 = vpop.f32.mrb[41].mxu0  ;;  %v4403_v40 = vadd.f32 %v8496_v53, %v6502_v8 }
0x1903   :  { %v4321_v43 = vadd.f32 %v9018_v24, %v4320_v21  ;;  %v4398_v23 = vadd.f32 %v8496_v53, %v4397_v34 }
0x1904   :  { %v4330_v52 = vadd.f32 %v4326_v9, %v7940_v3  ;;  %v4407_v46 = vadd.f32 %v4403_v40, %v7956_v56  ;;  %v9019_v56 = vld [vmem:[#allocation30_spill] sm:$0xff] }
0x1905   :  { %v4329_v4 = vadd.f32 %v4321_v43, %v7944_v11  ;;  %v4406_v57 = vadd.f32 %v4398_v23, %v7959_v42  ;;  %v9020_v42 = vld [vmem:[#allocation33_spill] sm:$0xff] }
0x1906   :  { %v5340_v10 = vmul.f32 -1.442695, %v4330_v52 }
0x1907   :  { %v5339_v31 = vmul.f32 -1.442695, %v4329_v4 }
0x1908   :  { %7420 = vpow2.f32 %v5340_v10 }
0x1909   :  { %7422 = vpow2.f32 %v5339_v31 }
0x190a   :  { %7424 = vtanh.f32 %v4407_v46 }
0x190b   :  { %7426 = vtanh.f32 %v4406_v57 }
0x1912   :  { %v7421_v28 = vpop.eup %7420 }
0x1913   :  { %v7423_v20 = vpop.eup %7422  ;;  %v4415_v13 = vadd.f32 1.0, %v7421_v28 }
0x1914   :  { %v4414_v50 = vadd.f32 1.0, %v7423_v20  ;;  %v7425_v3 = vpop.eup %7424 }
0x1915   :  { %7428 = vrcp.f32 %v4415_v13  ;;  %v7427_v11 = vpop.eup %7426 }
0x1916   :  { %7430 = vrcp.f32 %v4414_v50 }
0x191f   :  { %v7429_v5 = vpop.eup %7428 }
0x1920   :  { %v7431_v24 = vpop.eup %7430  ;;  %v4423_v9 = vmul.f32 %v7429_v5, %v7425_v3 }
0x1921   :  { %v4422_v8 = vmul.f32 %v7431_v24, %v7427_v11 }
0x1923   :  { %6511 = vmatprep.mubr.msk.f32.mxu1 %vm296_vm1, %v4422_v8  ;;  %6522 = vmatprep.mubr.msk.f32.mxu0 %vm296_vm1, %v4422_v8 }
0x1924   :  { %6512 = vmatmul.mubr.msk.f32.vlgmr.msra.gmra.mrb[42].mxu1 %vm296_vm1, %v4423_v9  ;;  %6523 = vmatmul.mubr.msk.f32.vlgmr.msra.gmra.mrb[42].mxu0 %vm296_vm1, %v4423_v9 }
0x1925   :  { %7203 = vmatpush3.bf16.msra.mxu1 %v7965_v30  ;;  %6533 = vmatprep.mubr.msk.f32.mxu1 %vm7510_vm3, %v8973_v62  ;;  %v9021_v30 = vld [vmem:[#allocation32_spill] sm:$0xff] }
0x1926   :  { %7204 = vmatprep.subr.bf16.mxu1 %v8971_v48  ;;  %7210 = vmatpush3.bf16.msra.mxu0 %v7985_v63  ;;  %v9023_v63 = vld [vmem:[#allocation34_spill] sm:$0xff] }
0x1927   :  { %7212 = vmatprep.subr.bf16.mxu0 %v7992_v7 }
0x1929   :  { %7206 = vmatpush3.bf16.msra.mxu1 %v7974_v39  ;;  %v9022_v39 = vld [vmem:[#allocation36_spill] sm:$0xff] }
0x192a   :  { %7232 = vmatprep.subr.bf16.mxu1 %v7990_v55  ;;  %7214 = vmatpush3.bf16.msra.mxu0 %v7992_v7 }
0x192b   :  { %7216 = vmatprep.subr.bf16.mxu0 %v8007_v38 }
0x192c   :  { %6534 = vmatmul.mubr.msk.f32.vlgmr.msra.gmra.mrb[44].mxu1 %vm296_vm1, %v8650_v6 }
0x192d   :  { %7234 = vmatpush3.bf16.msra.mxu1 %v7990_v55  ;;  %v9024_v55 = vld [vmem:[#allocation37_spill] sm:$0xff] }
0x192e   :  { %7236 = vmatprep.subr.bf16.mxu1 %v8974_v49  ;;  %7218 = vmatpush3.bf16.msra.mxu0 %v8007_v38 }
0x192f   :  { %7220 = vmatprep.subr.bf16.mxu0 %v8975_v33 }
0x1931   :  { %7238 = vmatpush3.bf16.msra.mxu1 %v8974_v49 }
0x1932   :  { %7240 = vmatprep.subr.bf16.mxu1 %v9019_v56  ;;  %7222 = vmatpush3.bf16.msra.mxu0 %v8975_v33 }
0x1933   :  { %7224 = vmatprep.subr.bf16.mxu0 %v9020_v42 }
0x1935   :  { %7242 = vmatpush3.bf16.msra.mxu1 %v9019_v56 }
0x1936   :  { %7244 = vmatprep.subr.bf16.mxu1 %v9021_v30  ;;  %7226 = vmatpush3.bf16.msra.mxu0 %v9020_v42 }
0x1937   :  { %7228 = vmatprep.subr.bf16.mxu0 %v9022_v39 }
0x1939   :  { %7246 = vmatpush3.bf16.msra.mxu1 %v9021_v30 }
0x193a   :  { %7248 = vmatprep.subr.bf16.mxu1 %v9023_v63  ;;  %7230 = vmatpush3.bf16.msra.mxu0 %v9022_v39 }
0x193b   :  { %7256 = vmatprep.subr.bf16.mxu0 %v8095_v45 }
0x193d   :  { %7250 = vmatpush3.bf16.msra.mxu1 %v9023_v63 }
0x193e   :  { %7252 = vmatprep.subr.bf16.mxu1 %v9024_v55 }
0x1941   :  { %7254 = vmatpush3.bf16.msra.mxu1 %v9024_v55 }
0x1942   :  { %7264 = vmatprep.subr.bf16.mxu1 %v8136_v18 }
0x19f7   :  { %v6513_v7 = vpop.f32.mrb[42].mxu1 }
0x19f8   :  { %v4496_v38 = vpop.f32.mrb[43].mxu1  ;;  %v4502_v48 = vadd.f32 %v8539_v16, %v6513_v7 }
0x19f9   :  { %v4497_v62 = vadd.f32 %v8539_v16, %v4496_v38 }
0x19fa   :  { %v4581_v49 = vadd.f32 %v4502_v48, %v4136_v12 }
0x19fb   :  { %v4580_v33 = vadd.f32 %v4497_v62, %v4135_v32 }
0x19fc   :  { %v4583_v34 = vmul.f32 0.70710677, %v4581_v49 }
0x19fd   :  { %v4582_v43 = vmul.f32 0.70710677, %v4580_v33 }
0x19ff   :  { %v4652_v53 = vpop.f32.mrb[44].mxu1 }
0x1a00   :  { %v4653_v6 = vadd.f32 %v8548_v36, %v4652_v53  ;;  %v6535_v21 = vpop.f32.mrb[45].mxu1 }
0x1a02   :  { %v4659_v52 = vrot.slane %v4653_v6, %v7860_v19 }
0x1a04   :  { %v4661_v4 = vadd.f32 %v4659_v52, %v4583_v34  ;;  %v4660_v10 = vadd.f32 %v4659_v52, %v4582_v43 }
0x1a06   :  { %4678 = vrot.lane.b32.xlu1 %v4661_v4, %s7512_s17  ;;  %v4663_v31 = vrot.slane %v4661_v4, 7  ;;  %v4669_v16 = vrot.slane %v4661_v4, 1  ;;  %4676 = vrot.lane.b32.xlu0 %v4660_v10, %s7512_s17  ;;  %v4662_v58 = vrot.slane %v4660_v10, 7  ;;  %v4668_v12 = vrot.slane %v4660_v10, 1 }
0x1a08   :  { %v4671_v2 = vsel %vm868_vm7, %v4669_v16, %v4668_v12  ;;  %v4670_v36 = vsel %vm868_vm7, %v4668_v12, %v4669_v16  ;;  %v4664_v32 = vsel %vm861_vm6, %v4662_v58, %v4663_v31  ;;  %v4665_v19 = vsel %vm861_vm6, %v4663_v31, %v4662_v58 }
0x1a09   :  { %v4673_v40 = vmul.f32 %v7875_v35, %v4671_v2  ;;  %v4672_v23 = vmul.f32 %v7878_v37, %v4670_v36  ;;  %v4667_v28 = vmul.f32 %v7895_v61, %v4664_v32  ;;  %v4666_v20 = vmul.f32 %v7898_v1, %v4665_v19 }
0x1a0b   :  { %4686 = vrot.lane.b32.xlu1 %v4673_v40, %s7513_s21  ;;  %4684 = vrot.lane.b32.xlu0 %v4672_v23, %s7513_s21 }
0x1a78   :  { %v4679_v46 = vpop.permute.xlu1 %4678  ;;  %v4677_v57 = vpop.permute.xlu0 %4676 }
0x1a79   :  { %v4691_v13 = vsel %vm296_vm1, %v4667_v28, %v4679_v46  ;;  %v4690_v50 = vsel %vm296_vm1, %v4666_v20, %v4677_v57 }
0x1a7d   :  { %v4687_v0 = vpop.permute.xlu1 %4686  ;;  %v4685_v3 = vpop.permute.xlu0 %4684 }
0x1a7e   :  { %v4693_v35 = vsel %vm167_vm0, %v4691_v13, %v4687_v0  ;;  %v4692_v37 = vsel %vm167_vm0, %v4690_v50, %v4685_v3 }
0x1a7f   :  { %6560 = vmatprep.mubr.msk.f32.mxu0 %vm912_vm10, %v4692_v37  ;;  %6587 = vmatprep.mubr.msk.f32.mxu1 %vm912_vm10, %v4692_v37 }
0x1a80   :  { %6561 = vmatmul.mubr.msk.f32.vlgmr.msra.gmra.mrb[44].mxu0 %vm912_vm10, %v4693_v35  ;;  %6588 = vmatmul.mubr.msk.f32.vlgmr.msra.gmra.mrb[46].mxu1 %vm912_vm10, %v4693_v35 }
0x1a81   :  { %7258 = vmatpush3.bf16.msra.mxu0 %v8095_v45  ;;  %7266 = vmatpush3.bf16.msra.mxu1 %v8136_v18 }
0x1a82   :  { %7260 = vmatprep.subr.bf16.mxu0 %v8984_v47  ;;  %7268 = vmatprep.subr.bf16.mxu1 %v8142_v15 }
0x1a85   :  { %7262 = vmatpush3.bf16.msra.mxu0 %v8984_v47  ;;  %7270 = vmatpush3.bf16.msra.mxu1 %v8142_v15 }
0x1a86   :  { %7272 = vmatprep.subr.bf16.mxu0 %v8149_v60 }
0x1b53   :  { %v6562_v61 = vpop.f32.mrb[44].mxu0  ;;  %v6589_v1 = vpop.f32.mrb[46].mxu1 }
0x1b54   :  { %v4772_v11 = vadd.f32 %v8585_v17, %v6562_v61  ;;  %v4766_v5 = vpop.f32.mrb[45].mxu0  ;;  %v4843_v24 = vpop.f32.mrb[47].mxu1  ;;  %v4849_v15 = vadd.f32 %v8592_v14, %v6589_v1 }
0x1b55   :  { %v4767_v45 = vadd.f32 %v8585_v17, %v4766_v5  ;;  %v4844_v47 = vadd.f32 %v8592_v14, %v4843_v24 }
0x1b56   :  { %v4776_v18 = vadd.f32 %v4772_v11, %v8109_v29  ;;  %v4853_v42 = vadd.f32 %v4849_v15, %v8985_v51 }
0x1b57   :  { %v4775_v9 = vadd.f32 %v4767_v45, %v8113_v25  ;;  %v4852_v30 = vadd.f32 %v4844_v47, %v8986_v41 }
0x1b58   :  { %v5351_v8 = vmul.f32 -1.442695, %v4776_v18 }
0x1b59   :  { %v5350_v56 = vmul.f32 -1.442695, %v4775_v9 }
0x1b5a   :  { %7432 = vpow2.f32 %v5351_v8 }
0x1b5b   :  { %7434 = vpow2.f32 %v5350_v56 }
0x1b5c   :  { %7436 = vtanh.f32 %v4853_v42 }
0x1b5d   :  { %7438 = vtanh.f32 %v4852_v30 }
0x1b64   :  { %v7433_v39 = vpop.eup %7432 }
0x1b65   :  { %v7435_v63 = vpop.eup %7434  ;;  %v4861_v55 = vadd.f32 1.0, %v7433_v39 }
0x1b66   :  { %v4860_v17 = vadd.f32 1.0, %v7435_v63  ;;  %v7437_v29 = vpop.eup %7436 }
0x1b67   :  { %7440 = vrcp.f32 %v4861_v55  ;;  %v7439_v25 = vpop.eup %7438 }
0x1b68   :  { %7442 = vrcp.f32 %v4860_v17 }
0x1b71   :  { %v7441_v7 = vpop.eup %7440 }
0x1b72   :  { %v7443_v38 = vpop.eup %7442  ;;  %v4869_v48 = vmul.f32 %v7441_v7, %v7437_v29 }
0x1b73   :  { %v4868_v62 = vmul.f32 %v7443_v38, %v7439_v25 }
0x1b75   :  { %6598 = vmatprep.mubr.msk.f32.mxu0 %vm296_vm1, %v4868_v62 }
0x1b76   :  { %6599 = vmatmul.mubr.msk.f32.vlgmr.msra.gmra.mrb[42].mxu0 %vm296_vm1, %v4869_v48 }
0x1b77   :  { %7274 = vmatpush3.bf16.msra.mxu0 %v8149_v60 }
0x1b78   :  { %7276 = vmatprep.subr.bf16.mxu0 %v8169_v59 }
0x1b7b   :  { %7278 = vmatpush3.bf16.msra.mxu0 %v8169_v59 }
0x1c49   :  { %v6600_v51 = vpop.f32.mrb[42].mxu0 }
0x1c4a   :  { %v7292_v41 = vadd.f32 %v8377_v54, %v6600_v51  ;;  %v4942_v14 = vpop.f32.mrb[43].mxu0 }
0x1c4b   :  { %v7294_v49 = vadd.f32 %v8377_v54, %v4942_v14 }
0x1c4c   :  { %v4954_v53 = vmul.f32 0.70710677, %v7292_v41 }
0x1c4d   :  { %v4953_v33 = vmul.f32 0.70710677, %v7294_v49 }
0x1c4f   :  { %6609 = vmatprep.mubr.msk.f32.mxu1 %vm296_vm1, %v4953_v33 }
0x1c50   :  { %6610 = vmatmul.mubr.msk.f32.vlgmr.msra.gmra.mrb[48].mxu1 %vm296_vm1, %v4954_v53 }
0x1d23   :  { %v6611_v6 = vpop.f32.mrb[48].mxu1 }
0x1d24   :  { %v5033_v21 = vadd.f32 %v8611_v44, %v6611_v6  ;;  %v5027_v60 = vpop.f32.mrb[49].mxu1 }
0x1d25   :  { %v5028_v34 = vadd.f32 %v8611_v44, %v5027_v60 }
0x1d26   :  { %v5037_v59 = vmax.f32 %v5033_v21, 0.0 }
0x1d27   :  { %v5036_v43 = vmax.f32 %v5028_v34, 0.0 }
0x1d29   :  { %6620 = vmatprep.mubr.msk.f32.mxu0 %vm296_vm1, %v5036_v43 }
0x1d2a   :  { %6621 = vmatmul.mubr.msk.f32.vlgmr.msra.gmra.mrb[46].mxu0 %vm296_vm1, %v5037_v59 }
0x1dfd   :  { %v6622_v52 = vpop.f32.mrb[46].mxu0 }
0x1dfe   :  { %v5116_v54 = vadd.f32 %v8630_v27, %v6622_v52  ;;  %v5110_v4 = vpop.f32.mrb[47].mxu0 }
0x1dff   :  { %v5111_v10 = vadd.f32 %v8630_v27, %v5110_v4 }
0x1e00   :  { %v5120_v31 = vmul.f32 0.25, %v5116_v54 }
0x1e01   :  { %v5119_v16 = vmul.f32 0.25, %v5111_v10 }
0x1e02   :  { %v5122_v58 = vadd.f32 %v5120_v31, %v8638_v26 }
0x1e03   :  { %v5121_v12 = vadd.f32 %v5119_v16, %v8635_v22 }
0x1e04   :  { %v5124_v2 = vadd.f32 1.0, %v5122_v58 }
0x1e05   :  { %v5123_v44 = vadd.f32 1.0, %v5121_v12 }
0x1e06   :  { %v5126_v36 = vmul.f32 7.0, %v5124_v2 }
0x1e07   :  { %v5125_v32 = vmul.f32 7.0, %v5123_v44 }
0x1e08   :  { %v5128_v19 = vadd.f32 -12.0, %v5126_v36 }
0x1e09   :  { %v5127_v40 = vadd.f32 -12.0, %v5125_v32 }
0x1e0a   :  { %5130 = vst.msk [vmem:[#allocation2 + $0x8] sm:$0xff] %vm691_vm2, %v5128_v19 }
0x1e0b   :  { %5129 = vst.msk [vmem:[#allocation2] sm:$0xff] %vm691_vm2, %v5127_v40 }
0x1e0c   :  { %7465 = shalt.err (!%p7462_p4)
}
0x1e0d   :  { %s7466_s4 = scalar_lea.hbm %s7675_s27, 256 }
0x1e0e   :  { %p7467_p5 = scmp.ne.s32.totalorder %s7675_s27, %s7466_s4  ;;  %p7470_p6 = scmp.lt.u32.totalorder %s7466_s4, %s7675_s27 }
0x1e10   :  { %p7472_p7 = pnand %p7470_p6, %p7467_p5 }
0x1e12   :  { %7475 = shalt.err (!%p7472_p7)
}
0x1e13   :  { %s7515_s16 = smov 128   ;;  %s7516_s18 = smov 8  }
0x1e14   :  { %5142 = dma.vmem_to_hbm [thread:$0]  %s5137_s12, 256, %s7675_s27, [#allocation3], %s7515_s16, %s7515_s16, %s7516_s18  }
0x1e15   :  { %7476 = dma.done.wait [#allocation3], 256  }
0x1e16   :  { %7477 = vsyncadd [#allocation3], 4294967040 }
0x1e17   :  { %5146 = vsyncpa [#allocation3], 1 }

</bundles_post_ra>
